<compile_context>
chip_gen: v7x
topology: tpu7x:2x2x1
jax: 0.10.0
libtpu: 0.0.40
codegen_flags: <defaults>
</compile_context>

<pallas_src>
import functools

import numpy as np
import jax
import jax.numpy as jnp
from jax.experimental import pallas as pl
from jax.experimental.pallas import tpu as pltpu

# Fixed LeNet_Mnist geometry (28x28 input, k=5, pad=2, stride=2 twice).
K = 5
H_IN, W_IN = 28, 28
C1_OUT, H1, W1 = 12, 14, 14
C2_OUT, H2, W2 = 12, 7, 7
FC_OUT = 10
OUT_PAD = 128          # lane-dense output slab width


def _round_up(x, m):
    return ((x + m - 1) // m) * m


def _cdiv(a, b):
    return (a + b - 1) // b


# ----------------------------------------------------------------------------
# Fused kernel: conv1 + sigmoid + conv2 + sigmoid + fc1 for one batch tile.
# ----------------------------------------------------------------------------
def _lenet_fused_kernel(x_ref, w1_ref, b1_ref, w2_ref, b2_ref, w3_ref, b3_ref,
                        out_ref, a1_ref):
    # x_ref  : (TB, C*784) f32   flat NCHW input, lane = ci*784 + h*28 + w
    # w1_ref : (H1*C, 140, 168) bf16  per-(out-row, cin) folded conv1 matrices
    # b1_ref : (1, 168) f32           conv1 bias, lane = co*14 + ow
    # w2_ref : (5, 168, 84)  bf16     per-kh packed conv2 matrices
    # b2_ref : (1, 84) f32
    # w3_ref : (7, 84, 128)  bf16     per-conv2-row fc1 matrices (lanes 10.. = 0)
    # b3_ref : (1, 128) f32
    # out_ref: (TB, 128) f32          lane-dense logits slab
    # a1_ref : (H1, TB, 168) bf16     VMEM scratch for conv1 activations
    tb = out_ref.shape[0]
    n_ci = x_ref.shape[1] // (H_IN * W_IN)
    b1 = b1_ref[...]
    b2 = b2_ref[...]

    # ---- conv1 + sigmoid: one K=140 dot per (output row, input channel) -----
    for oh in range(H1):
        h0 = min(max(2 * oh - 2, 0), H_IN - K)       # clamped window start row
        acc = None
        for ci in range(n_ci):
            off = ci * (H_IN * W_IN) + h0 * W_IN
            lhs = x_ref[:, off:off + K * W_IN].astype(jnp.bfloat16)
            part = jnp.dot(lhs, w1_ref[oh * n_ci + ci],
                           preferred_element_type=jnp.float32)
            acc = part if acc is None else acc + part
        a1_ref[oh] = jax.nn.sigmoid(acc + b1).astype(jnp.bfloat16)

    # ---- conv2 + sigmoid + fc1 (fc1 accumulated into the output block) ------
    out_ref[...] = jnp.broadcast_to(b3_ref[...], (tb, out_ref.shape[1]))
    for oh in range(H2):
        acc = None
        for kh in range(K):
            h1 = 2 * oh + kh - 2
            if 0 <= h1 < H1:                         # vertical zero-pad: skip
                part = jnp.dot(a1_ref[h1], w2_ref[kh],
                               preferred_element_type=jnp.float32)
                acc = part if acc is None else acc + part
        row = jax.nn.sigmoid(acc + b2).astype(jnp.bfloat16)
        out_ref[...] += jnp.dot(row, w3_ref[oh],
                                preferred_element_type=jnp.float32)


# ----------------------------------------------------------------------------
# One-time weight packing (init-time, host side).
# ----------------------------------------------------------------------------
def pack_params(params):
    """Pack PyTorch-layout weights into the kernel's folded bf16 matrices."""
    w1 = np.asarray(params["conv1_w"], np.float32)   # (12, C, 5, 5)
    b1 = np.asarray(params["conv1_b"], np.float32)   # (12,)
    w2 = np.asarray(params["conv2_w"], np.float32)   # (12, 12, 5, 5)
    b2 = np.asarray(params["conv2_b"], np.float32)   # (12,)
    w3 = np.asarray(params["fc1_w"], np.float32)     # (10, 588)
    b3 = np.asarray(params["fc1_b"], np.float32)     # (10,)
    cin = w1.shape[1]
    co1 = np.arange(C1_OUT)

    # conv1: vertical taps folded into the contraction.  For output row oh the
    # kernel uses a (TB, 140) lane-slice of the flat NCHW input starting at
    # input row h0 = clip(2*oh-2, 0, 23); pack a (140, 168) matrix per (oh, ci)
    # (out lane = co*14 + ow).  Rows/cols falling in the zero padding stay 0.
    w1h = np.zeros((H1 * cin, K * W_IN, C1_OUT * W1), np.float32)
    for oh in range(H1):
        h0 = min(max(2 * oh - 2, 0), H_IN - K)
        for ci in range(cin):
            for r in range(K * W_IN):
                h = h0 + r // W_IN
                w = r % W_IN
                kh = h - (2 * oh - 2)
                if not (0 <= kh < K):
                    continue
                for ow in range(W1):
                    kw = w - (2 * ow - 2)
                    if 0 <= kw < K:
                        w1h[oh * cin + ci, r, co1 * W1 + ow] = w1[:, ci, kh, kw]
    b1h = np.repeat(b1, W1)[None, :]                  # (1, 168)

    # conv2: per-kh packed matrices; width taps + stride-2 + width pad folded.
    co2 = np.arange(C2_OUT)
    w2h = np.zeros((K, C1_OUT * W1, C2_OUT * W2), np.float32)
    for kh in range(K):
        for kw in range(K):
            for ow in range(W2):
                w = 2 * ow + kw - 2
                if 0 <= w < W1:
                    for ci in range(C1_OUT):
                        w2h[kh, ci * W1 + w, co2 * W2 + ow] = w2[:, ci, kh, kw]
    b2h = np.repeat(b2, W2)[None, :]                  # (1, 84)

    # fc1: torch NCHW flatten order c*49 + oh*7 + ow folded into per-conv2-row
    # matrices; output columns padded to 128 for lane-dense stores.
    w3h = np.zeros((H2, C2_OUT * W2, OUT_PAD), np.float32)
    for oh in range(H2):
        for c in range(C2_OUT):
            for ow in range(W2):
                w3h[oh, c * W2 + ow, :FC_OUT] = w3[:, c * (H2 * W2) + oh * W2 + ow]
    b3h = np.zeros((1, OUT_PAD), np.float32)
    b3h[0, :FC_OUT] = b3

    return {
        "w1h": jnp.asarray(w1h, jnp.bfloat16),
        "b1h": jnp.asarray(b1h, jnp.float32),
        "w2h": jnp.asarray(w2h, jnp.bfloat16),
        "b2h": jnp.asarray(b2h, jnp.float32),
        "w3h": jnp.asarray(w3h, jnp.bfloat16),
        "b3h": jnp.asarray(b3h, jnp.float32),
    }


# ----------------------------------------------------------------------------
# Forward wrapper
# ----------------------------------------------------------------------------
@functools.partial(jax.jit, static_argnames=("block_b",))
def lenet_mnist_forward(packed, x, block_b=512):
    """x: (B, C, 28, 28) NCHW float -> logits (B, 10) float32."""
    B, C, H, W = x.shape
    assert (H, W) == (H_IN, W_IN)

    # Pure metadata reshape of NCHW -> (B, C*H*W): no transpose, no extra HBM
    # pass over the input (review item #1).
    x2 = x.astype(jnp.float32).reshape(B, C * H_IN * W_IN)

    # Batch tile: multiple of 16 (bf16 (16,128) tiling), large enough to
    # amortize per-step overhead, small enough for v7x's VMEM (review #2/#3).
    tb = min(block_b, _round_up(B, 16))
    tb = _round_up(tb, 16)
    if _cdiv(B, tb) < 2 and B > 16:
        # v7x megacore: guarantee >= 2 grid steps so both TensorCores get work.
        tb = _round_up(_cdiv(B, 2), 16)
    Bp = _round_up(B, tb)
    if Bp != B:
        x2 = jnp.pad(x2, ((0, Bp - B), (0, 0)))

    const3 = lambda i: (0, 0, 0)
    const2 = lambda i: (0, 0)

    out = pl.pallas_call(
        _lenet_fused_kernel,
        out_shape=jax.ShapeDtypeStruct((Bp, OUT_PAD), jnp.float32),
        grid_spec=pltpu.PrefetchScalarGridSpec(
            num_scalar_prefetch=0,
            grid=(Bp // tb,),
            in_specs=[
                pl.BlockSpec((tb, C * H_IN * W_IN), lambda i: (i, 0)),
                # Weights/biases: constant index_map -> DMA'd to VMEM once per
                # call and resident across all batch tiles.
                pl.BlockSpec(packed["w1h"].shape, const3),
                pl.BlockSpec(packed["b1h"].shape, const2),
                pl.BlockSpec(packed["w2h"].shape, const3),
                pl.BlockSpec(packed["b2h"].shape, const2),
                pl.BlockSpec(packed["w3h"].shape, const3),
                pl.BlockSpec(packed["b3h"].shape, const2),
            ],
            out_specs=pl.BlockSpec((tb, OUT_PAD), lambda i: (i, 0)),
            scratch_shapes=[pltpu.VMEM((H1, tb, C1_OUT * W1), jnp.bfloat16)],
        ),
        compiler_params=pltpu.CompilerParams(
            dimension_semantics=("parallel",),
            vmem_limit_bytes=32 * 1024 * 1024),
    )(x2, packed["w1h"], packed["b1h"], packed["w2h"], packed["b2h"],
      packed["w3h"], packed["b3h"])
    return out[:B, :FC_OUT]


# ----------------------------------------------------------------------------
# Parameter init (PyTorch-style uniform +-1/sqrt(fan_in)) and a pure-JAX ref.
# ----------------------------------------------------------------------------
def init_params(num_channels=1):
    key = jax.random.PRNGKey(0)
    k1, k2, k3, k4, k5, k6 = jax.random.split(key, 6)

    def uni(k, shape, fan_in):
        bound = 1.0 / (fan_in ** 0.5)
        return jax.random.uniform(k, shape, jnp.float32, -bound, bound)

    fan1 = num_channels * 5 * 5
    fan2 = 12 * 5 * 5
    fan3 = 12 * 7 * 7
    return {
        "conv1_w": uni(k1, (12, num_channels, 5, 5), fan1),
        "conv1_b": uni(k2, (12,), fan1),
        "conv2_w": uni(k3, (12, 12, 5, 5), fan2),
        "conv2_b": uni(k4, (12,), fan2),
        "fc1_w":   uni(k5, (10, 12 * 7 * 7), fan3),   # (out, in) like torch
        "fc1_b":   uni(k6, (10,), fan3),
    }


def _reference_forward(params, x):
    """Plain-JAX reference (matches the PyTorch module's forward)."""
    dn = ("NCHW", "OIHW", "NCHW")
    hi = jax.lax.Precision.HIGHEST
    y = jax.lax.conv_general_dilated(
        x, params["conv1_w"], window_strides=(2, 2), padding=((2, 2), (2, 2)),
        dimension_numbers=dn, precision=hi)
    y = jax.nn.sigmoid(y + params["conv1_b"][None, :, None, None])
    y = jax.lax.conv_general_dilated(
        y, params["conv2_w"], window_strides=(2, 2), padding=((2, 2), (2, 2)),
        dimension_numbers=dn, precision=hi)
    y = jax.nn.sigmoid(y + params["conv2_b"][None, :, None, None])
    y = y.reshape(y.shape[0], -1)
    return jnp.dot(y, params["fc1_w"].T, precision=hi) + params["fc1_b"]


if __name__ == "__main__":
    num_channels = 1   # MNIST: fc1 in_features = 12*7*7 implies 28x28 input
    params = init_params(num_channels)
    packed = pack_params(params)

    # Tolerance is looser than the previous f32 version because MXU operands
    # are now bf16 (structural bugs would show up as O(0.1-1) errors).
    TOL = 3e-2

    # Small single-tile check (batch=2).
    x = jax.random.normal(jax.random.PRNGKey(0),
                          (2, num_channels, 28, 28), jnp.float32)
    out = jax.block_until_ready(lenet_mnist_forward(packed, x))
    assert out.shape == (2, 10), out.shape
    assert out.dtype == jnp.float32
    ref = jax.block_until_ready(_reference_forward(params, x))
    err = np.max(np.abs(np.asarray(out) - np.asarray(ref)))
    assert np.allclose(np.asarray(out), np.asarray(ref),
                       atol=TOL, rtol=TOL), f"max abs err {err}"

    # Multi-tile check (exercises batch padding + >=2 grid steps path).
    x2 = jax.random.normal(jax.random.PRNGKey(1),
                           (40, num_channels, 28, 28), jnp.float32)
    out2 = jax.block_until_ready(lenet_mnist_forward(packed, x2))
    assert out2.shape == (40, 10), out2.shape
    ref2 = jax.block_until_ready(_reference_forward(params, x2))
    err2 = np.max(np.abs(np.asarray(out2) - np.asarray(ref2)))
    assert np.allclose(np.asarray(out2), np.asarray(ref2),
                       atol=TOL, rtol=TOL), f"max abs err {err2}"

    print("KERNEL_OK")
</pallas_src>

<mosaic_0001>
module attributes {stable_mosaic.version = 11 : i64} {
  func.func @_lenet_fused_kernel(%arg0: i32, %arg1: memref<16x784xf32, #tpu.memory_space<vmem>>, %arg2: memref<14x140x168xbf16, #tpu.memory_space<vmem>>, %arg3: memref<1x168xf32, #tpu.memory_space<vmem>>, %arg4: memref<5x168x84xbf16, #tpu.memory_space<vmem>>, %arg5: memref<1x84xf32, #tpu.memory_space<vmem>>, %arg6: memref<7x84x128xbf16, #tpu.memory_space<vmem>>, %arg7: memref<1x128xf32, #tpu.memory_space<vmem>>, %arg8: memref<16x128xf32, #tpu.memory_space<vmem>>, %arg9: memref<14x16x168xbf16, #tpu.memory_space<vmem>>) attributes {dimension_semantics = [#tpu.dimension_semantics<parallel>], iteration_bounds = array<i64: 1>, scalar_prefetch = 0 : i64, scratch_operands = 1 : i64, tpu.core_type = #tpu.core_type<tc>, window_params = [{transform_indices = @transform_0, window_bounds = array<i64: 16, 784>}, {pipeline_mode = #tpu.pipeline_mode<synchronous>, transform_indices = @transform_1, window_bounds = array<i64: 14, 140, 168>}, {pipeline_mode = #tpu.pipeline_mode<synchronous>, transform_indices = @transform_2, window_bounds = array<i64: 1, 168>}, {pipeline_mode = #tpu.pipeline_mode<synchronous>, transform_indices = @transform_3, window_bounds = array<i64: 5, 168, 84>}, {pipeline_mode = #tpu.pipeline_mode<synchronous>, transform_indices = @transform_4, window_bounds = array<i64: 1, 84>}, {pipeline_mode = #tpu.pipeline_mode<synchronous>, transform_indices = @transform_5, window_bounds = array<i64: 7, 84, 128>}, {pipeline_mode = #tpu.pipeline_mode<synchronous>, transform_indices = @transform_6, window_bounds = array<i64: 1, 128>}, {transform_indices = @transform_7, window_bounds = array<i64: 16, 128>}]} {
    %c0 = arith.constant 0 : index
    %c0_0 = arith.constant 0 : index
    %0 = vector.load %arg3[%c0, %c0_0] : memref<1x168xf32, #tpu.memory_space<vmem>>, vector<1x168xf32>
    %c0_1 = arith.constant 0 : index
    %c0_2 = arith.constant 0 : index
    %1 = vector.load %arg5[%c0_1, %c0_2] : memref<1x84xf32, #tpu.memory_space<vmem>>, vector<1x84xf32>
    %c0_3 = arith.constant 0 : index
    %c0_4 = arith.constant 0 : index
    %2 = vector.load %arg1[%c0_3, %c0_4] : memref<16x784xf32, #tpu.memory_space<vmem>>, vector<16x140xf32>
    %3 = arith.truncf %2 : vector<16x140xf32> to vector<16x140xbf16>
    %c0_5 = arith.constant 0 : index
    %c0_6 = arith.constant 0 : index
    %c0_7 = arith.constant 0 : index
    %4 = vector.load %arg2[%c0_5, %c0_6, %c0_7] : memref<14x140x168xbf16, #tpu.memory_space<vmem>>, vector<1x140x168xbf16>
    %5 = vector.shape_cast %4 : vector<1x140x168xbf16> to vector<140x168xbf16>
    %cst = arith.constant dense<0.000000e+00> : vector<16x168xf32>
    %6 = tpu.matmul %3, %5, %cst {dimension_numbers = #tpu.dot_dimension_numbers<[1], [0], [0], [1], [0, 0, 1, 1], [], []>} : vector<16x140xbf16>, vector<140x168xbf16>, vector<16x168xf32> -> vector<16x168xf32>
    %7 = vector.broadcast %0 : vector<1x168xf32> to vector<16x168xf32>
    %8 = arith.addf %6, %7 : vector<16x168xf32>
    %9 = arith.negf %8 : vector<16x168xf32>
    %10 = math.exp %9 : vector<16x168xf32>
    %cst_8 = arith.constant 1.000000e+00 : f32
    %11 = vector.broadcast %cst_8 : f32 to vector<16x168xf32>
    %12 = arith.addf %11, %10 : vector<16x168xf32>
    %13 = arith.divf %11, %12 : vector<16x168xf32>
    %14 = arith.truncf %13 : vector<16x168xf32> to vector<16x168xbf16>
    %c0_9 = arith.constant 0 : index
    %c0_10 = arith.constant 0 : index
    %c0_11 = arith.constant 0 : index
    %15 = vector.load %arg9[%c0_9, %c0_10, %c0_11] : memref<14x16x168xbf16, #tpu.memory_space<vmem>>, vector<1x16x168xbf16>
    %16 = vector.shape_cast %15 : vector<1x16x168xbf16> to vector<16x168xbf16>
    %17 = vector.shape_cast %14 : vector<16x168xbf16> to vector<1x16x168xbf16>
    tpu.vector_store %arg9[%c0_9, %c0_10, %c0_11], %17 {strides = array<i32>} : memref<14x16x168xbf16, #tpu.memory_space<vmem>>, vector<1x16x168xbf16>,
    %c0_12 = arith.constant 0 : index
    %c0_13 = arith.constant 0 : index
    %18 = vector.load %arg1[%c0_12, %c0_13] : memref<16x784xf32, #tpu.memory_space<vmem>>, vector<16x140xf32>
    %19 = arith.truncf %18 : vector<16x140xf32> to vector<16x140xbf16>
    %c1 = arith.constant 1 : index
    %c0_14 = arith.constant 0 : index
    %c0_15 = arith.constant 0 : index
    %20 = vector.load %arg2[%c1, %c0_14, %c0_15] : memref<14x140x168xbf16, #tpu.memory_space<vmem>>, vector<1x140x168xbf16>
    %21 = vector.shape_cast %20 : vector<1x140x168xbf16> to vector<140x168xbf16>
    %cst_16 = arith.constant dense<0.000000e+00> : vector<16x168xf32>
    %22 = tpu.matmul %19, %21, %cst_16 {dimension_numbers = #tpu.dot_dimension_numbers<[1], [0], [0], [1], [0, 0, 1, 1], [], []>} : vector<16x140xbf16>, vector<140x168xbf16>, vector<16x168xf32> -> vector<16x168xf32>
    %23 = vector.broadcast %0 : vector<1x168xf32> to vector<16x168xf32>
    %24 = arith.addf %22, %23 : vector<16x168xf32>
    %25 = arith.negf %24 : vector<16x168xf32>
    %26 = math.exp %25 : vector<16x168xf32>
    %cst_17 = arith.constant 1.000000e+00 : f32
    %27 = vector.broadcast %cst_17 : f32 to vector<16x168xf32>
    %28 = arith.addf %27, %26 : vector<16x168xf32>
    %29 = arith.divf %27, %28 : vector<16x168xf32>
    %30 = arith.truncf %29 : vector<16x168xf32> to vector<16x168xbf16>
    %c1_18 = arith.constant 1 : index
    %c0_19 = arith.constant 0 : index
    %c0_20 = arith.constant 0 : index
    %31 = vector.load %arg9[%c1_18, %c0_19, %c0_20] : memref<14x16x168xbf16, #tpu.memory_space<vmem>>, vector<1x16x168xbf16>
    %32 = vector.shape_cast %31 : vector<1x16x168xbf16> to vector<16x168xbf16>
    %33 = vector.shape_cast %30 : vector<16x168xbf16> to vector<1x16x168xbf16>
    tpu.vector_store %arg9[%c1_18, %c0_19, %c0_20], %33 {strides = array<i32>} : memref<14x16x168xbf16, #tpu.memory_space<vmem>>, vector<1x16x168xbf16>,
    %c0_21 = arith.constant 0 : index
    %c56 = arith.constant 56 : index
    %34 = vector.load %arg1[%c0_21, %c56] : memref<16x784xf32, #tpu.memory_space<vmem>>, vector<16x140xf32>
    %35 = arith.truncf %34 : vector<16x140xf32> to vector<16x140xbf16>
    %c2 = arith.constant 2 : index
    %c0_22 = arith.constant 0 : index
    %c0_23 = arith.constant 0 : index
    %36 = vector.load %arg2[%c2, %c0_22, %c0_23] : memref<14x140x168xbf16, #tpu.memory_space<vmem>>, vector<1x140x168xbf16>
    %37 = vector.shape_cast %36 : vector<1x140x168xbf16> to vector<140x168xbf16>
    %cst_24 = arith.constant dense<0.000000e+00> : vector<16x168xf32>
    %38 = tpu.matmul %35, %37, %cst_24 {dimension_numbers = #tpu.dot_dimension_numbers<[1], [0], [0], [1], [0, 0, 1, 1], [], []>} : vector<16x140xbf16>, vector<140x168xbf16>, vector<16x168xf32> -> vector<16x168xf32>
    %39 = vector.broadcast %0 : vector<1x168xf32> to vector<16x168xf32>
    %40 = arith.addf %38, %39 : vector<16x168xf32>
    %41 = arith.negf %40 : vector<16x168xf32>
    %42 = math.exp %41 : vector<16x168xf32>
    %cst_25 = arith.constant 1.000000e+00 : f32
    %43 = vector.broadcast %cst_25 : f32 to vector<16x168xf32>
    %44 = arith.addf %43, %42 : vector<16x168xf32>
    %45 = arith.divf %43, %44 : vector<16x168xf32>
    %46 = arith.truncf %45 : vector<16x168xf32> to vector<16x168xbf16>
    %c2_26 = arith.constant 2 : index
    %c0_27 = arith.constant 0 : index
    %c0_28 = arith.constant 0 : index
    %47 = vector.load %arg9[%c2_26, %c0_27, %c0_28] : memref<14x16x168xbf16, #tpu.memory_space<vmem>>, vector<1x16x168xbf16>
    %48 = vector.shape_cast %47 : vector<1x16x168xbf16> to vector<16x168xbf16>
    %49 = vector.shape_cast %46 : vector<16x168xbf16> to vector<1x16x168xbf16>
    tpu.vector_store %arg9[%c2_26, %c0_27, %c0_28], %49 {strides = array<i32>} : memref<14x16x168xbf16, #tpu.memory_space<vmem>>, vector<1x16x168xbf16>,
    %c0_29 = arith.constant 0 : index
    %c112 = arith.constant 112 : index
    %50 = vector.load %arg1[%c0_29, %c112] : memref<16x784xf32, #tpu.memory_space<vmem>>, vector<16x140xf32>
    %51 = arith.truncf %50 : vector<16x140xf32> to vector<16x140xbf16>
    %c3 = arith.constant 3 : index
    %c0_30 = arith.constant 0 : index
    %c0_31 = arith.constant 0 : index
    %52 = vector.load %arg2[%c3, %c0_30, %c0_31] : memref<14x140x168xbf16, #tpu.memory_space<vmem>>, vector<1x140x168xbf16>
    %53 = vector.shape_cast %52 : vector<1x140x168xbf16> to vector<140x168xbf16>
    %cst_32 = arith.constant dense<0.000000e+00> : vector<16x168xf32>
    %54 = tpu.matmul %51, %53, %cst_32 {dimension_numbers = #tpu.dot_dimension_numbers<[1], [0], [0], [1], [0, 0, 1, 1], [], []>} : vector<16x140xbf16>, vector<140x168xbf16>, vector<16x168xf32> -> vector<16x168xf32>
    %55 = vector.broadcast %0 : vector<1x168xf32> to vector<16x168xf32>
    %56 = arith.addf %54, %55 : vector<16x168xf32>
    %57 = arith.negf %56 : vector<16x168xf32>
    %58 = math.exp %57 : vector<16x168xf32>
    %cst_33 = arith.constant 1.000000e+00 : f32
    %59 = vector.broadcast %cst_33 : f32 to vector<16x168xf32>
    %60 = arith.addf %59, %58 : vector<16x168xf32>
    %61 = arith.divf %59, %60 : vector<16x168xf32>
    %62 = arith.truncf %61 : vector<16x168xf32> to vector<16x168xbf16>
    %c3_34 = arith.constant 3 : index
    %c0_35 = arith.constant 0 : index
    %c0_36 = arith.constant 0 : index
    %63 = vector.load %arg9[%c3_34, %c0_35, %c0_36] : memref<14x16x168xbf16, #tpu.memory_space<vmem>>, vector<1x16x168xbf16>
    %64 = vector.shape_cast %63 : vector<1x16x168xbf16> to vector<16x168xbf16>
    %65 = vector.shape_cast %62 : vector<16x168xbf16> to vector<1x16x168xbf16>
    tpu.vector_store %arg9[%c3_34, %c0_35, %c0_36], %65 {strides = array<i32>} : memref<14x16x168xbf16, #tpu.memory_space<vmem>>, vector<1x16x168xbf16>,
    %c0_37 = arith.constant 0 : index
    %c168 = arith.constant 168 : index
    %66 = vector.load %arg1[%c0_37, %c168] : memref<16x784xf32, #tpu.memory_space<vmem>>, vector<16x140xf32>
    %67 = arith.truncf %66 : vector<16x140xf32> to vector<16x140xbf16>
    %c4 = arith.constant 4 : index
    %c0_38 = arith.constant 0 : index
    %c0_39 = arith.constant 0 : index
    %68 = vector.load %arg2[%c4, %c0_38, %c0_39] : memref<14x140x168xbf16, #tpu.memory_space<vmem>>, vector<1x140x168xbf16>
    %69 = vector.shape_cast %68 : vector<1x140x168xbf16> to vector<140x168xbf16>
    %cst_40 = arith.constant dense<0.000000e+00> : vector<16x168xf32>
    %70 = tpu.matmul %67, %69, %cst_40 {dimension_numbers = #tpu.dot_dimension_numbers<[1], [0], [0], [1], [0, 0, 1, 1], [], []>} : vector<16x140xbf16>, vector<140x168xbf16>, vector<16x168xf32> -> vector<16x168xf32>
    %71 = vector.broadcast %0 : vector<1x168xf32> to vector<16x168xf32>
    %72 = arith.addf %70, %71 : vector<16x168xf32>
    %73 = arith.negf %72 : vector<16x168xf32>
    %74 = math.exp %73 : vector<16x168xf32>
    %cst_41 = arith.constant 1.000000e+00 : f32
    %75 = vector.broadcast %cst_41 : f32 to vector<16x168xf32>
    %76 = arith.addf %75, %74 : vector<16x168xf32>
    %77 = arith.divf %75, %76 : vector<16x168xf32>
    %78 = arith.truncf %77 : vector<16x168xf32> to vector<16x168xbf16>
    %c4_42 = arith.constant 4 : index
    %c0_43 = arith.constant 0 : index
    %c0_44 = arith.constant 0 : index
    %79 = vector.load %arg9[%c4_42, %c0_43, %c0_44] : memref<14x16x168xbf16, #tpu.memory_space<vmem>>, vector<1x16x168xbf16>
    %80 = vector.shape_cast %79 : vector<1x16x168xbf16> to vector<16x168xbf16>
    %81 = vector.shape_cast %78 : vector<16x168xbf16> to vector<1x16x168xbf16>
    tpu.vector_store %arg9[%c4_42, %c0_43, %c0_44], %81 {strides = array<i32>} : memref<14x16x168xbf16, #tpu.memory_space<vmem>>, vector<1x16x168xbf16>,
    %c0_45 = arith.constant 0 : index
    %c224 = arith.constant 224 : index
    %82 = vector.load %arg1[%c0_45, %c224] : memref<16x784xf32, #tpu.memory_space<vmem>>, vector<16x140xf32>
    %83 = arith.truncf %82 : vector<16x140xf32> to vector<16x140xbf16>
    %c5 = arith.constant 5 : index
    %c0_46 = arith.constant 0 : index
    %c0_47 = arith.constant 0 : index
    %84 = vector.load %arg2[%c5, %c0_46, %c0_47] : memref<14x140x168xbf16, #tpu.memory_space<vmem>>, vector<1x140x168xbf16>
    %85 = vector.shape_cast %84 : vector<1x140x168xbf16> to vector<140x168xbf16>
    %cst_48 = arith.constant dense<0.000000e+00> : vector<16x168xf32>
    %86 = tpu.matmul %83, %85, %cst_48 {dimension_numbers = #tpu.dot_dimension_numbers<[1], [0], [0], [1], [0, 0, 1, 1], [], []>} : vector<16x140xbf16>, vector<140x168xbf16>, vector<16x168xf32> -> vector<16x168xf32>
    %87 = vector.broadcast %0 : vector<1x168xf32> to vector<16x168xf32>
    %88 = arith.addf %86, %87 : vector<16x168xf32>
    %89 = arith.negf %88 : vector<16x168xf32>
    %90 = math.exp %89 : vector<16x168xf32>
    %cst_49 = arith.constant 1.000000e+00 : f32
    %91 = vector.broadcast %cst_49 : f32 to vector<16x168xf32>
    %92 = arith.addf %91, %90 : vector<16x168xf32>
    %93 = arith.divf %91, %92 : vector<16x168xf32>
    %94 = arith.truncf %93 : vector<16x168xf32> to vector<16x168xbf16>
    %c5_50 = arith.constant 5 : index
    %c0_51 = arith.constant 0 : index
    %c0_52 = arith.constant 0 : index
    %95 = vector.load %arg9[%c5_50, %c0_51, %c0_52] : memref<14x16x168xbf16, #tpu.memory_space<vmem>>, vector<1x16x168xbf16>
    %96 = vector.shape_cast %95 : vector<1x16x168xbf16> to vector<16x168xbf16>
    %97 = vector.shape_cast %94 : vector<16x168xbf16> to vector<1x16x168xbf16>
    tpu.vector_store %arg9[%c5_50, %c0_51, %c0_52], %97 {strides = array<i32>} : memref<14x16x168xbf16, #tpu.memory_space<vmem>>, vector<1x16x168xbf16>,
    %c0_53 = arith.constant 0 : index
    %c280 = arith.constant 280 : index
    %98 = vector.load %arg1[%c0_53, %c280] : memref<16x784xf32, #tpu.memory_space<vmem>>, vector<16x140xf32>
    %99 = arith.truncf %98 : vector<16x140xf32> to vector<16x140xbf16>
    %c6 = arith.constant 6 : index
    %c0_54 = arith.constant 0 : index
    %c0_55 = arith.constant 0 : index
    %100 = vector.load %arg2[%c6, %c0_54, %c0_55] : memref<14x140x168xbf16, #tpu.memory_space<vmem>>, vector<1x140x168xbf16>
    %101 = vector.shape_cast %100 : vector<1x140x168xbf16> to vector<140x168xbf16>
    %cst_56 = arith.constant dense<0.000000e+00> : vector<16x168xf32>
    %102 = tpu.matmul %99, %101, %cst_56 {dimension_numbers = #tpu.dot_dimension_numbers<[1], [0], [0], [1], [0, 0, 1, 1], [], []>} : vector<16x140xbf16>, vector<140x168xbf16>, vector<16x168xf32> -> vector<16x168xf32>
    %103 = vector.broadcast %0 : vector<1x168xf32> to vector<16x168xf32>
    %104 = arith.addf %102, %103 : vector<16x168xf32>
    %105 = arith.negf %104 : vector<16x168xf32>
    %106 = math.exp %105 : vector<16x168xf32>
    %cst_57 = arith.constant 1.000000e+00 : f32
    %107 = vector.broadcast %cst_57 : f32 to vector<16x168xf32>
    %108 = arith.addf %107, %106 : vector<16x168xf32>
    %109 = arith.divf %107, %108 : vector<16x168xf32>
    %110 = arith.truncf %109 : vector<16x168xf32> to vector<16x168xbf16>
    %c6_58 = arith.constant 6 : index
    %c0_59 = arith.constant 0 : index
    %c0_60 = arith.constant 0 : index
    %111 = vector.load %arg9[%c6_58, %c0_59, %c0_60] : memref<14x16x168xbf16, #tpu.memory_space<vmem>>, vector<1x16x168xbf16>
    %112 = vector.shape_cast %111 : vector<1x16x168xbf16> to vector<16x168xbf16>
    %113 = vector.shape_cast %110 : vector<16x168xbf16> to vector<1x16x168xbf16>
    tpu.vector_store %arg9[%c6_58, %c0_59, %c0_60], %113 {strides = array<i32>} : memref<14x16x168xbf16, #tpu.memory_space<vmem>>, vector<1x16x168xbf16>,
    %c0_61 = arith.constant 0 : index
    %c336 = arith.constant 336 : index
    %114 = vector.load %arg1[%c0_61, %c336] : memref<16x784xf32, #tpu.memory_space<vmem>>, vector<16x140xf32>
    %115 = arith.truncf %114 : vector<16x140xf32> to vector<16x140xbf16>
    %c7 = arith.constant 7 : index
    %c0_62 = arith.constant 0 : index
    %c0_63 = arith.constant 0 : index
    %116 = vector.load %arg2[%c7, %c0_62, %c0_63] : memref<14x140x168xbf16, #tpu.memory_space<vmem>>, vector<1x140x168xbf16>
    %117 = vector.shape_cast %116 : vector<1x140x168xbf16> to vector<140x168xbf16>
    %cst_64 = arith.constant dense<0.000000e+00> : vector<16x168xf32>
    %118 = tpu.matmul %115, %117, %cst_64 {dimension_numbers = #tpu.dot_dimension_numbers<[1], [0], [0], [1], [0, 0, 1, 1], [], []>} : vector<16x140xbf16>, vector<140x168xbf16>, vector<16x168xf32> -> vector<16x168xf32>
    %119 = vector.broadcast %0 : vector<1x168xf32> to vector<16x168xf32>
    %120 = arith.addf %118, %119 : vector<16x168xf32>
    %121 = arith.negf %120 : vector<16x168xf32>
    %122 = math.exp %121 : vector<16x168xf32>
    %cst_65 = arith.constant 1.000000e+00 : f32
    %123 = vector.broadcast %cst_65 : f32 to vector<16x168xf32>
    %124 = arith.addf %123, %122 : vector<16x168xf32>
    %125 = arith.divf %123, %124 : vector<16x168xf32>
    %126 = arith.truncf %125 : vector<16x168xf32> to vector<16x168xbf16>
    %c7_66 = arith.constant 7 : index
    %c0_67 = arith.constant 0 : index
    %c0_68 = arith.constant 0 : index
    %127 = vector.load %arg9[%c7_66, %c0_67, %c0_68] : memref<14x16x168xbf16, #tpu.memory_space<vmem>>, vector<1x16x168xbf16>
    %128 = vector.shape_cast %127 : vector<1x16x168xbf16> to vector<16x168xbf16>
    %129 = vector.shape_cast %126 : vector<16x168xbf16> to vector<1x16x168xbf16>
    tpu.vector_store %arg9[%c7_66, %c0_67, %c0_68], %129 {strides = array<i32>} : memref<14x16x168xbf16, #tpu.memory_space<vmem>>, vector<1x16x168xbf16>,
    %c0_69 = arith.constant 0 : index
    %c392 = arith.constant 392 : index
    %130 = vector.load %arg1[%c0_69, %c392] : memref<16x784xf32, #tpu.memory_space<vmem>>, vector<16x140xf32>
    %131 = arith.truncf %130 : vector<16x140xf32> to vector<16x140xbf16>
    %c8 = arith.constant 8 : index
    %c0_70 = arith.constant 0 : index
    %c0_71 = arith.constant 0 : index
    %132 = vector.load %arg2[%c8, %c0_70, %c0_71] : memref<14x140x168xbf16, #tpu.memory_space<vmem>>, vector<1x140x168xbf16>
    %133 = vector.shape_cast %132 : vector<1x140x168xbf16> to vector<140x168xbf16>
    %cst_72 = arith.constant dense<0.000000e+00> : vector<16x168xf32>
    %134 = tpu.matmul %131, %133, %cst_72 {dimension_numbers = #tpu.dot_dimension_numbers<[1], [0], [0], [1], [0, 0, 1, 1], [], []>} : vector<16x140xbf16>, vector<140x168xbf16>, vector<16x168xf32> -> vector<16x168xf32>
    %135 = vector.broadcast %0 : vector<1x168xf32> to vector<16x168xf32>
    %136 = arith.addf %134, %135 : vector<16x168xf32>
    %137 = arith.negf %136 : vector<16x168xf32>
    %138 = math.exp %137 : vector<16x168xf32>
    %cst_73 = arith.constant 1.000000e+00 : f32
    %139 = vector.broadcast %cst_73 : f32 to vector<16x168xf32>
    %140 = arith.addf %139, %138 : vector<16x168xf32>
    %141 = arith.divf %139, %140 : vector<16x168xf32>
    %142 = arith.truncf %141 : vector<16x168xf32> to vector<16x168xbf16>
    %c8_74 = arith.constant 8 : index
    %c0_75 = arith.constant 0 : index
    %c0_76 = arith.constant 0 : index
    %143 = vector.load %arg9[%c8_74, %c0_75, %c0_76] : memref<14x16x168xbf16, #tpu.memory_space<vmem>>, vector<1x16x168xbf16>
    %144 = vector.shape_cast %143 : vector<1x16x168xbf16> to vector<16x168xbf16>
    %145 = vector.shape_cast %142 : vector<16x168xbf16> to vector<1x16x168xbf16>
    tpu.vector_store %arg9[%c8_74, %c0_75, %c0_76], %145 {strides = array<i32>} : memref<14x16x168xbf16, #tpu.memory_space<vmem>>, vector<1x16x168xbf16>,
    %c0_77 = arith.constant 0 : index
    %c448 = arith.constant 448 : index
    %146 = vector.load %arg1[%c0_77, %c448] : memref<16x784xf32, #tpu.memory_space<vmem>>, vector<16x140xf32>
    %147 = arith.truncf %146 : vector<16x140xf32> to vector<16x140xbf16>
    %c9 = arith.constant 9 : index
    %c0_78 = arith.constant 0 : index
    %c0_79 = arith.constant 0 : index
    %148 = vector.load %arg2[%c9, %c0_78, %c0_79] : memref<14x140x168xbf16, #tpu.memory_space<vmem>>, vector<1x140x168xbf16>
    %149 = vector.shape_cast %148 : vector<1x140x168xbf16> to vector<140x168xbf16>
    %cst_80 = arith.constant dense<0.000000e+00> : vector<16x168xf32>
    %150 = tpu.matmul %147, %149, %cst_80 {dimension_numbers = #tpu.dot_dimension_numbers<[1], [0], [0], [1], [0, 0, 1, 1], [], []>} : vector<16x140xbf16>, vector<140x168xbf16>, vector<16x168xf32> -> vector<16x168xf32>
    %151 = vector.broadcast %0 : vector<1x168xf32> to vector<16x168xf32>
    %152 = arith.addf %150, %151 : vector<16x168xf32>
    %153 = arith.negf %152 : vector<16x168xf32>
    %154 = math.exp %153 : vector<16x168xf32>
    %cst_81 = arith.constant 1.000000e+00 : f32
    %155 = vector.broadcast %cst_81 : f32 to vector<16x168xf32>
    %156 = arith.addf %155, %154 : vector<16x168xf32>
    %157 = arith.divf %155, %156 : vector<16x168xf32>
    %158 = arith.truncf %157 : vector<16x168xf32> to vector<16x168xbf16>
    %c9_82 = arith.constant 9 : index
    %c0_83 = arith.constant 0 : index
    %c0_84 = arith.constant 0 : index
    %159 = vector.load %arg9[%c9_82, %c0_83, %c0_84] : memref<14x16x168xbf16, #tpu.memory_space<vmem>>, vector<1x16x168xbf16>
    %160 = vector.shape_cast %159 : vector<1x16x168xbf16> to vector<16x168xbf16>
    %161 = vector.shape_cast %158 : vector<16x168xbf16> to vector<1x16x168xbf16>
    tpu.vector_store %arg9[%c9_82, %c0_83, %c0_84], %161 {strides = array<i32>} : memref<14x16x168xbf16, #tpu.memory_space<vmem>>, vector<1x16x168xbf16>,
    %c0_85 = arith.constant 0 : index
    %c504 = arith.constant 504 : index
    %162 = vector.load %arg1[%c0_85, %c504] : memref<16x784xf32, #tpu.memory_space<vmem>>, vector<16x140xf32>
    %163 = arith.truncf %162 : vector<16x140xf32> to vector<16x140xbf16>
    %c10 = arith.constant 10 : index
    %c0_86 = arith.constant 0 : index
    %c0_87 = arith.constant 0 : index
    %164 = vector.load %arg2[%c10, %c0_86, %c0_87] : memref<14x140x168xbf16, #tpu.memory_space<vmem>>, vector<1x140x168xbf16>
    %165 = vector.shape_cast %164 : vector<1x140x168xbf16> to vector<140x168xbf16>
    %cst_88 = arith.constant dense<0.000000e+00> : vector<16x168xf32>
    %166 = tpu.matmul %163, %165, %cst_88 {dimension_numbers = #tpu.dot_dimension_numbers<[1], [0], [0], [1], [0, 0, 1, 1], [], []>} : vector<16x140xbf16>, vector<140x168xbf16>, vector<16x168xf32> -> vector<16x168xf32>
    %167 = vector.broadcast %0 : vector<1x168xf32> to vector<16x168xf32>
    %168 = arith.addf %166, %167 : vector<16x168xf32>
    %169 = arith.negf %168 : vector<16x168xf32>
    %170 = math.exp %169 : vector<16x168xf32>
    %cst_89 = arith.constant 1.000000e+00 : f32
    %171 = vector.broadcast %cst_89 : f32 to vector<16x168xf32>
    %172 = arith.addf %171, %170 : vector<16x168xf32>
    %173 = arith.divf %171, %172 : vector<16x168xf32>
    %174 = arith.truncf %173 : vector<16x168xf32> to vector<16x168xbf16>
    %c10_90 = arith.constant 10 : index
    %c0_91 = arith.constant 0 : index
    %c0_92 = arith.constant 0 : index
    %175 = vector.load %arg9[%c10_90, %c0_91, %c0_92] : memref<14x16x168xbf16, #tpu.memory_space<vmem>>, vector<1x16x168xbf16>
    %176 = vector.shape_cast %175 : vector<1x16x168xbf16> to vector<16x168xbf16>
    %177 = vector.shape_cast %174 : vector<16x168xbf16> to vector<1x16x168xbf16>
    tpu.vector_store %arg9[%c10_90, %c0_91, %c0_92], %177 {strides = array<i32>} : memref<14x16x168xbf16, #tpu.memory_space<vmem>>, vector<1x16x168xbf16>,
    %c0_93 = arith.constant 0 : index
    %c560 = arith.constant 560 : index
    %178 = vector.load %arg1[%c0_93, %c560] : memref<16x784xf32, #tpu.memory_space<vmem>>, vector<16x140xf32>
    %179 = arith.truncf %178 : vector<16x140xf32> to vector<16x140xbf16>
    %c11 = arith.constant 11 : index
    %c0_94 = arith.constant 0 : index
    %c0_95 = arith.constant 0 : index
    %180 = vector.load %arg2[%c11, %c0_94, %c0_95] : memref<14x140x168xbf16, #tpu.memory_space<vmem>>, vector<1x140x168xbf16>
    %181 = vector.shape_cast %180 : vector<1x140x168xbf16> to vector<140x168xbf16>
    %cst_96 = arith.constant dense<0.000000e+00> : vector<16x168xf32>
    %182 = tpu.matmul %179, %181, %cst_96 {dimension_numbers = #tpu.dot_dimension_numbers<[1], [0], [0], [1], [0, 0, 1, 1], [], []>} : vector<16x140xbf16>, vector<140x168xbf16>, vector<16x168xf32> -> vector<16x168xf32>
    %183 = vector.broadcast %0 : vector<1x168xf32> to vector<16x168xf32>
    %184 = arith.addf %182, %183 : vector<16x168xf32>
    %185 = arith.negf %184 : vector<16x168xf32>
    %186 = math.exp %185 : vector<16x168xf32>
    %cst_97 = arith.constant 1.000000e+00 : f32
    %187 = vector.broadcast %cst_97 : f32 to vector<16x168xf32>
    %188 = arith.addf %187, %186 : vector<16x168xf32>
    %189 = arith.divf %187, %188 : vector<16x168xf32>
    %190 = arith.truncf %189 : vector<16x168xf32> to vector<16x168xbf16>
    %c11_98 = arith.constant 11 : index
    %c0_99 = arith.constant 0 : index
    %c0_100 = arith.constant 0 : index
    %191 = vector.load %arg9[%c11_98, %c0_99, %c0_100] : memref<14x16x168xbf16, #tpu.memory_space<vmem>>, vector<1x16x168xbf16>
    %192 = vector.shape_cast %191 : vector<1x16x168xbf16> to vector<16x168xbf16>
    %193 = vector.shape_cast %190 : vector<16x168xbf16> to vector<1x16x168xbf16>
    tpu.vector_store %arg9[%c11_98, %c0_99, %c0_100], %193 {strides = array<i32>} : memref<14x16x168xbf16, #tpu.memory_space<vmem>>, vector<1x16x168xbf16>,
    %c0_101 = arith.constant 0 : index
    %c616 = arith.constant 616 : index
    %194 = vector.load %arg1[%c0_101, %c616] : memref<16x784xf32, #tpu.memory_space<vmem>>, vector<16x140xf32>
    %195 = arith.truncf %194 : vector<16x140xf32> to vector<16x140xbf16>
    %c12 = arith.constant 12 : index
    %c0_102 = arith.constant 0 : index
    %c0_103 = arith.constant 0 : index
    %196 = vector.load %arg2[%c12, %c0_102, %c0_103] : memref<14x140x168xbf16, #tpu.memory_space<vmem>>, vector<1x140x168xbf16>
    %197 = vector.shape_cast %196 : vector<1x140x168xbf16> to vector<140x168xbf16>
    %cst_104 = arith.constant dense<0.000000e+00> : vector<16x168xf32>
    %198 = tpu.matmul %195, %197, %cst_104 {dimension_numbers = #tpu.dot_dimension_numbers<[1], [0], [0], [1], [0, 0, 1, 1], [], []>} : vector<16x140xbf16>, vector<140x168xbf16>, vector<16x168xf32> -> vector<16x168xf32>
    %199 = vector.broadcast %0 : vector<1x168xf32> to vector<16x168xf32>
    %200 = arith.addf %198, %199 : vector<16x168xf32>
    %201 = arith.negf %200 : vector<16x168xf32>
    %202 = math.exp %201 : vector<16x168xf32>
    %cst_105 = arith.constant 1.000000e+00 : f32
    %203 = vector.broadcast %cst_105 : f32 to vector<16x168xf32>
    %204 = arith.addf %203, %202 : vector<16x168xf32>
    %205 = arith.divf %203, %204 : vector<16x168xf32>
    %206 = arith.truncf %205 : vector<16x168xf32> to vector<16x168xbf16>
    %c12_106 = arith.constant 12 : index
    %c0_107 = arith.constant 0 : index
    %c0_108 = arith.constant 0 : index
    %207 = vector.load %arg9[%c12_106, %c0_107, %c0_108] : memref<14x16x168xbf16, #tpu.memory_space<vmem>>, vector<1x16x168xbf16>
    %208 = vector.shape_cast %207 : vector<1x16x168xbf16> to vector<16x168xbf16>
    %209 = vector.shape_cast %206 : vector<16x168xbf16> to vector<1x16x168xbf16>
    tpu.vector_store %arg9[%c12_106, %c0_107, %c0_108], %209 {strides = array<i32>} : memref<14x16x168xbf16, #tpu.memory_space<vmem>>, vector<1x16x168xbf16>,
    %c0_109 = arith.constant 0 : index
    %c644 = arith.constant 644 : index
    %210 = vector.load %arg1[%c0_109, %c644] : memref<16x784xf32, #tpu.memory_space<vmem>>, vector<16x140xf32>
    %211 = arith.truncf %210 : vector<16x140xf32> to vector<16x140xbf16>
    %c13 = arith.constant 13 : index
    %c0_110 = arith.constant 0 : index
    %c0_111 = arith.constant 0 : index
    %212 = vector.load %arg2[%c13, %c0_110, %c0_111] : memref<14x140x168xbf16, #tpu.memory_space<vmem>>, vector<1x140x168xbf16>
    %213 = vector.shape_cast %212 : vector<1x140x168xbf16> to vector<140x168xbf16>
    %cst_112 = arith.constant dense<0.000000e+00> : vector<16x168xf32>
    %214 = tpu.matmul %211, %213, %cst_112 {dimension_numbers = #tpu.dot_dimension_numbers<[1], [0], [0], [1], [0, 0, 1, 1], [], []>} : vector<16x140xbf16>, vector<140x168xbf16>, vector<16x168xf32> -> vector<16x168xf32>
    %215 = vector.broadcast %0 : vector<1x168xf32> to vector<16x168xf32>
    %216 = arith.addf %214, %215 : vector<16x168xf32>
    %217 = arith.negf %216 : vector<16x168xf32>
    %218 = math.exp %217 : vector<16x168xf32>
    %cst_113 = arith.constant 1.000000e+00 : f32
    %219 = vector.broadcast %cst_113 : f32 to vector<16x168xf32>
    %220 = arith.addf %219, %218 : vector<16x168xf32>
    %221 = arith.divf %219, %220 : vector<16x168xf32>
    %222 = arith.truncf %221 : vector<16x168xf32> to vector<16x168xbf16>
    %c13_114 = arith.constant 13 : index
    %c0_115 = arith.constant 0 : index
    %c0_116 = arith.constant 0 : index
    %223 = vector.load %arg9[%c13_114, %c0_115, %c0_116] : memref<14x16x168xbf16, #tpu.memory_space<vmem>>, vector<1x16x168xbf16>
    %224 = vector.shape_cast %223 : vector<1x16x168xbf16> to vector<16x168xbf16>
    %225 = vector.shape_cast %222 : vector<16x168xbf16> to vector<1x16x168xbf16>
    tpu.vector_store %arg9[%c13_114, %c0_115, %c0_116], %225 {strides = array<i32>} : memref<14x16x168xbf16, #tpu.memory_space<vmem>>, vector<1x16x168xbf16>,
    %c0_117 = arith.constant 0 : index
    %c0_118 = arith.constant 0 : index
    %226 = vector.load %arg7[%c0_117, %c0_118] : memref<1x128xf32, #tpu.memory_space<vmem>>, vector<1x128xf32>
    %227 = vector.shape_cast %226 : vector<1x128xf32> to vector<1x128xf32>
    %228 = vector.broadcast %227 : vector<1x128xf32> to vector<16x128xf32>
    %c0_119 = arith.constant 0 : index
    %c0_120 = arith.constant 0 : index
    %229 = vector.load %arg8[%c0_119, %c0_120] : memref<16x128xf32, #tpu.memory_space<vmem>>, vector<16x128xf32>
    tpu.vector_store %arg8[%c0_119, %c0_120], %228 {strides = array<i32>} : memref<16x128xf32, #tpu.memory_space<vmem>>, vector<16x128xf32>,
    %c0_121 = arith.constant 0 : index
    %c0_122 = arith.constant 0 : index
    %c0_123 = arith.constant 0 : index
    %230 = vector.load %arg9[%c0_121, %c0_122, %c0_123] : memref<14x16x168xbf16, #tpu.memory_space<vmem>>, vector<1x16x168xbf16>
    %231 = vector.shape_cast %230 : vector<1x16x168xbf16> to vector<16x168xbf16>
    %c2_124 = arith.constant 2 : index
    %c0_125 = arith.constant 0 : index
    %c0_126 = arith.constant 0 : index
    %232 = vector.load %arg4[%c2_124, %c0_125, %c0_126] : memref<5x168x84xbf16, #tpu.memory_space<vmem>>, vector<1x168x84xbf16>
    %233 = vector.shape_cast %232 : vector<1x168x84xbf16> to vector<168x84xbf16>
    %cst_127 = arith.constant dense<0.000000e+00> : vector<16x84xf32>
    %234 = tpu.matmul %231, %233, %cst_127 {dimension_numbers = #tpu.dot_dimension_numbers<[1], [0], [0], [1], [0, 0, 1, 1], [], []>} : vector<16x168xbf16>, vector<168x84xbf16>, vector<16x84xf32> -> vector<16x84xf32>
    %c1_128 = arith.constant 1 : index
    %c0_129 = arith.constant 0 : index
    %c0_130 = arith.constant 0 : index
    %235 = vector.load %arg9[%c1_128, %c0_129, %c0_130] : memref<14x16x168xbf16, #tpu.memory_space<vmem>>, vector<1x16x168xbf16>
    %236 = vector.shape_cast %235 : vector<1x16x168xbf16> to vector<16x168xbf16>
    %c3_131 = arith.constant 3 : index
    %c0_132 = arith.constant 0 : index
    %c0_133 = arith.constant 0 : index
    %237 = vector.load %arg4[%c3_131, %c0_132, %c0_133] : memref<5x168x84xbf16, #tpu.memory_space<vmem>>, vector<1x168x84xbf16>
    %238 = vector.shape_cast %237 : vector<1x168x84xbf16> to vector<168x84xbf16>
    %cst_134 = arith.constant dense<0.000000e+00> : vector<16x84xf32>
    %239 = tpu.matmul %236, %238, %cst_134 {dimension_numbers = #tpu.dot_dimension_numbers<[1], [0], [0], [1], [0, 0, 1, 1], [], []>} : vector<16x168xbf16>, vector<168x84xbf16>, vector<16x84xf32> -> vector<16x84xf32>
    %240 = arith.addf %234, %239 : vector<16x84xf32>
    %c2_135 = arith.constant 2 : index
    %c0_136 = arith.constant 0 : index
    %c0_137 = arith.constant 0 : index
    %241 = vector.load %arg9[%c2_135, %c0_136, %c0_137] : memref<14x16x168xbf16, #tpu.memory_space<vmem>>, vector<1x16x168xbf16>
    %242 = vector.shape_cast %241 : vector<1x16x168xbf16> to vector<16x168xbf16>
    %c4_138 = arith.constant 4 : index
    %c0_139 = arith.constant 0 : index
    %c0_140 = arith.constant 0 : index
    %243 = vector.load %arg4[%c4_138, %c0_139, %c0_140] : memref<5x168x84xbf16, #tpu.memory_space<vmem>>, vector<1x168x84xbf16>
    %244 = vector.shape_cast %243 : vector<1x168x84xbf16> to vector<168x84xbf16>
    %cst_141 = arith.constant dense<0.000000e+00> : vector<16x84xf32>
    %245 = tpu.matmul %242, %244, %cst_141 {dimension_numbers = #tpu.dot_dimension_numbers<[1], [0], [0], [1], [0, 0, 1, 1], [], []>} : vector<16x168xbf16>, vector<168x84xbf16>, vector<16x84xf32> -> vector<16x84xf32>
    %246 = arith.addf %240, %245 : vector<16x84xf32>
    %247 = vector.broadcast %1 : vector<1x84xf32> to vector<16x84xf32>
    %248 = arith.addf %246, %247 : vector<16x84xf32>
    %249 = arith.negf %248 : vector<16x84xf32>
    %250 = math.exp %249 : vector<16x84xf32>
    %cst_142 = arith.constant 1.000000e+00 : f32
    %251 = vector.broadcast %cst_142 : f32 to vector<16x84xf32>
    %252 = arith.addf %251, %250 : vector<16x84xf32>
    %253 = arith.divf %251, %252 : vector<16x84xf32>
    %254 = arith.truncf %253 : vector<16x84xf32> to vector<16x84xbf16>
    %c0_143 = arith.constant 0 : index
    %c0_144 = arith.constant 0 : index
    %255 = vector.load %arg8[%c0_143, %c0_144] : memref<16x128xf32, #tpu.memory_space<vmem>>, vector<16x128xf32>
    %c0_145 = arith.constant 0 : index
    %c0_146 = arith.constant 0 : index
    %c0_147 = arith.constant 0 : index
    %256 = vector.load %arg6[%c0_145, %c0_146, %c0_147] : memref<7x84x128xbf16, #tpu.memory_space<vmem>>, vector<1x84x128xbf16>
    %257 = vector.shape_cast %256 : vector<1x84x128xbf16> to vector<84x128xbf16>
    %cst_148 = arith.constant dense<0.000000e+00> : vector<16x128xf32>
    %258 = tpu.matmul %254, %257, %cst_148 {dimension_numbers = #tpu.dot_dimension_numbers<[1], [0], [0], [1], [0, 0, 1, 1], [], []>} : vector<16x84xbf16>, vector<84x128xbf16>, vector<16x128xf32> -> vector<16x128xf32>
    %259 = arith.addf %255, %258 : vector<16x128xf32>
    %c0_149 = arith.constant 0 : index
    %c0_150 = arith.constant 0 : index
    %260 = vector.load %arg8[%c0_149, %c0_150] : memref<16x128xf32, #tpu.memory_space<vmem>>, vector<16x128xf32>
    tpu.vector_store %arg8[%c0_149, %c0_150], %259 {strides = array<i32>} : memref<16x128xf32, #tpu.memory_space<vmem>>, vector<16x128xf32>,
    %c0_151 = arith.constant 0 : index
    %c0_152 = arith.constant 0 : index
    %c0_153 = arith.constant 0 : index
    %261 = vector.load %arg9[%c0_151, %c0_152, %c0_153] : memref<14x16x168xbf16, #tpu.memory_space<vmem>>, vector<1x16x168xbf16>
    %262 = vector.shape_cast %261 : vector<1x16x168xbf16> to vector<16x168xbf16>
    %c0_154 = arith.constant 0 : index
    %c0_155 = arith.constant 0 : index
    %c0_156 = arith.constant 0 : index
    %263 = vector.load %arg4[%c0_154, %c0_155, %c0_156] : memref<5x168x84xbf16, #tpu.memory_space<vmem>>, vector<1x168x84xbf16>
    %264 = vector.shape_cast %263 : vector<1x168x84xbf16> to vector<168x84xbf16>
    %cst_157 = arith.constant dense<0.000000e+00> : vector<16x84xf32>
    %265 = tpu.matmul %262, %264, %cst_157 {dimension_numbers = #tpu.dot_dimension_numbers<[1], [0], [0], [1], [0, 0, 1, 1], [], []>} : vector<16x168xbf16>, vector<168x84xbf16>, vector<16x84xf32> -> vector<16x84xf32>
    %c1_158 = arith.constant 1 : index
    %c0_159 = arith.constant 0 : index
    %c0_160 = arith.constant 0 : index
    %266 = vector.load %arg9[%c1_158, %c0_159, %c0_160] : memref<14x16x168xbf16, #tpu.memory_space<vmem>>, vector<1x16x168xbf16>
    %267 = vector.shape_cast %266 : vector<1x16x168xbf16> to vector<16x168xbf16>
    %c1_161 = arith.constant 1 : index
    %c0_162 = arith.constant 0 : index
    %c0_163 = arith.constant 0 : index
    %268 = vector.load %arg4[%c1_161, %c0_162, %c0_163] : memref<5x168x84xbf16, #tpu.memory_space<vmem>>, vector<1x168x84xbf16>
    %269 = vector.shape_cast %268 : vector<1x168x84xbf16> to vector<168x84xbf16>
    %cst_164 = arith.constant dense<0.000000e+00> : vector<16x84xf32>
    %270 = tpu.matmul %267, %269, %cst_164 {dimension_numbers = #tpu.dot_dimension_numbers<[1], [0], [0], [1], [0, 0, 1, 1], [], []>} : vector<16x168xbf16>, vector<168x84xbf16>, vector<16x84xf32> -> vector<16x84xf32>
    %271 = arith.addf %265, %270 : vector<16x84xf32>
    %c2_165 = arith.constant 2 : index
    %c0_166 = arith.constant 0 : index
    %c0_167 = arith.constant 0 : index
    %272 = vector.load %arg9[%c2_165, %c0_166, %c0_167] : memref<14x16x168xbf16, #tpu.memory_space<vmem>>, vector<1x16x168xbf16>
    %273 = vector.shape_cast %272 : vector<1x16x168xbf16> to vector<16x168xbf16>
    %c2_168 = arith.constant 2 : index
    %c0_169 = arith.constant 0 : index
    %c0_170 = arith.constant 0 : index
    %274 = vector.load %arg4[%c2_168, %c0_169, %c0_170] : memref<5x168x84xbf16, #tpu.memory_space<vmem>>, vector<1x168x84xbf16>
    %275 = vector.shape_cast %274 : vector<1x168x84xbf16> to vector<168x84xbf16>
    %cst_171 = arith.constant dense<0.000000e+00> : vector<16x84xf32>
    %276 = tpu.matmul %273, %275, %cst_171 {dimension_numbers = #tpu.dot_dimension_numbers<[1], [0], [0], [1], [0, 0, 1, 1], [], []>} : vector<16x168xbf16>, vector<168x84xbf16>, vector<16x84xf32> -> vector<16x84xf32>
    %277 = arith.addf %271, %276 : vector<16x84xf32>
    %c3_172 = arith.constant 3 : index
    %c0_173 = arith.constant 0 : index
    %c0_174 = arith.constant 0 : index
    %278 = vector.load %arg9[%c3_172, %c0_173, %c0_174] : memref<14x16x168xbf16, #tpu.memory_space<vmem>>, vector<1x16x168xbf16>
    %279 = vector.shape_cast %278 : vector<1x16x168xbf16> to vector<16x168xbf16>
    %c3_175 = arith.constant 3 : index
    %c0_176 = arith.constant 0 : index
    %c0_177 = arith.constant 0 : index
    %280 = vector.load %arg4[%c3_175, %c0_176, %c0_177] : memref<5x168x84xbf16, #tpu.memory_space<vmem>>, vector<1x168x84xbf16>
    %281 = vector.shape_cast %280 : vector<1x168x84xbf16> to vector<168x84xbf16>
    %cst_178 = arith.constant dense<0.000000e+00> : vector<16x84xf32>
    %282 = tpu.matmul %279, %281, %cst_178 {dimension_numbers = #tpu.dot_dimension_numbers<[1], [0], [0], [1], [0, 0, 1, 1], [], []>} : vector<16x168xbf16>, vector<168x84xbf16>, vector<16x84xf32> -> vector<16x84xf32>
    %283 = arith.addf %277, %282 : vector<16x84xf32>
    %c4_179 = arith.constant 4 : index
    %c0_180 = arith.constant 0 : index
    %c0_181 = arith.constant 0 : index
    %284 = vector.load %arg9[%c4_179, %c0_180, %c0_181] : memref<14x16x168xbf16, #tpu.memory_space<vmem>>, vector<1x16x168xbf16>
    %285 = vector.shape_cast %284 : vector<1x16x168xbf16> to vector<16x168xbf16>
    %c4_182 = arith.constant 4 : index
    %c0_183 = arith.constant 0 : index
    %c0_184 = arith.constant 0 : index
    %286 = vector.load %arg4[%c4_182, %c0_183, %c0_184] : memref<5x168x84xbf16, #tpu.memory_space<vmem>>, vector<1x168x84xbf16>
    %287 = vector.shape_cast %286 : vector<1x168x84xbf16> to vector<168x84xbf16>
    %cst_185 = arith.constant dense<0.000000e+00> : vector<16x84xf32>
    %288 = tpu.matmul %285, %287, %cst_185 {dimension_numbers = #tpu.dot_dimension_numbers<[1], [0], [0], [1], [0, 0, 1, 1], [], []>} : vector<16x168xbf16>, vector<168x84xbf16>, vector<16x84xf32> -> vector<16x84xf32>
    %289 = arith.addf %283, %288 : vector<16x84xf32>
    %290 = vector.broadcast %1 : vector<1x84xf32> to vector<16x84xf32>
    %291 = arith.addf %289, %290 : vector<16x84xf32>
    %292 = arith.negf %291 : vector<16x84xf32>
    %293 = math.exp %292 : vector<16x84xf32>
    %cst_186 = arith.constant 1.000000e+00 : f32
    %294 = vector.broadcast %cst_186 : f32 to vector<16x84xf32>
    %295 = arith.addf %294, %293 : vector<16x84xf32>
    %296 = arith.divf %294, %295 : vector<16x84xf32>
    %297 = arith.truncf %296 : vector<16x84xf32> to vector<16x84xbf16>
    %c0_187 = arith.constant 0 : index
    %c0_188 = arith.constant 0 : index
    %298 = vector.load %arg8[%c0_187, %c0_188] : memref<16x128xf32, #tpu.memory_space<vmem>>, vector<16x128xf32>
    %c1_189 = arith.constant 1 : index
    %c0_190 = arith.constant 0 : index
    %c0_191 = arith.constant 0 : index
    %299 = vector.load %arg6[%c1_189, %c0_190, %c0_191] : memref<7x84x128xbf16, #tpu.memory_space<vmem>>, vector<1x84x128xbf16>
    %300 = vector.shape_cast %299 : vector<1x84x128xbf16> to vector<84x128xbf16>
    %cst_192 = arith.constant dense<0.000000e+00> : vector<16x128xf32>
    %301 = tpu.matmul %297, %300, %cst_192 {dimension_numbers = #tpu.dot_dimension_numbers<[1], [0], [0], [1], [0, 0, 1, 1], [], []>} : vector<16x84xbf16>, vector<84x128xbf16>, vector<16x128xf32> -> vector<16x128xf32>
    %302 = arith.addf %298, %301 : vector<16x128xf32>
    %c0_193 = arith.constant 0 : index
    %c0_194 = arith.constant 0 : index
    %303 = vector.load %arg8[%c0_193, %c0_194] : memref<16x128xf32, #tpu.memory_space<vmem>>, vector<16x128xf32>
    tpu.vector_store %arg8[%c0_193, %c0_194], %302 {strides = array<i32>} : memref<16x128xf32, #tpu.memory_space<vmem>>, vector<16x128xf32>,
    %c2_195 = arith.constant 2 : index
    %c0_196 = arith.constant 0 : index
    %c0_197 = arith.constant 0 : index
    %304 = vector.load %arg9[%c2_195, %c0_196, %c0_197] : memref<14x16x168xbf16, #tpu.memory_space<vmem>>, vector<1x16x168xbf16>
    %305 = vector.shape_cast %304 : vector<1x16x168xbf16> to vector<16x168xbf16>
    %c0_198 = arith.constant 0 : index
    %c0_199 = arith.constant 0 : index
    %c0_200 = arith.constant 0 : index
    %306 = vector.load %arg4[%c0_198, %c0_199, %c0_200] : memref<5x168x84xbf16, #tpu.memory_space<vmem>>, vector<1x168x84xbf16>
    %307 = vector.shape_cast %306 : vector<1x168x84xbf16> to vector<168x84xbf16>
    %cst_201 = arith.constant dense<0.000000e+00> : vector<16x84xf32>
    %308 = tpu.matmul %305, %307, %cst_201 {dimension_numbers = #tpu.dot_dimension_numbers<[1], [0], [0], [1], [0, 0, 1, 1], [], []>} : vector<16x168xbf16>, vector<168x84xbf16>, vector<16x84xf32> -> vector<16x84xf32>
    %c3_202 = arith.constant 3 : index
    %c0_203 = arith.constant 0 : index
    %c0_204 = arith.constant 0 : index
    %309 = vector.load %arg9[%c3_202, %c0_203, %c0_204] : memref<14x16x168xbf16, #tpu.memory_space<vmem>>, vector<1x16x168xbf16>
    %310 = vector.shape_cast %309 : vector<1x16x168xbf16> to vector<16x168xbf16>
    %c1_205 = arith.constant 1 : index
    %c0_206 = arith.constant 0 : index
    %c0_207 = arith.constant 0 : index
    %311 = vector.load %arg4[%c1_205, %c0_206, %c0_207] : memref<5x168x84xbf16, #tpu.memory_space<vmem>>, vector<1x168x84xbf16>
    %312 = vector.shape_cast %311 : vector<1x168x84xbf16> to vector<168x84xbf16>
    %cst_208 = arith.constant dense<0.000000e+00> : vector<16x84xf32>
    %313 = tpu.matmul %310, %312, %cst_208 {dimension_numbers = #tpu.dot_dimension_numbers<[1], [0], [0], [1], [0, 0, 1, 1], [], []>} : vector<16x168xbf16>, vector<168x84xbf16>, vector<16x84xf32> -> vector<16x84xf32>
    %314 = arith.addf %308, %313 : vector<16x84xf32>
    %c4_209 = arith.constant 4 : index
    %c0_210 = arith.constant 0 : index
    %c0_211 = arith.constant 0 : index
    %315 = vector.load %arg9[%c4_209, %c0_210, %c0_211] : memref<14x16x168xbf16, #tpu.memory_space<vmem>>, vector<1x16x168xbf16>
    %316 = vector.shape_cast %315 : vector<1x16x168xbf16> to vector<16x168xbf16>
    %c2_212 = arith.constant 2 : index
    %c0_213 = arith.constant 0 : index
    %c0_214 = arith.constant 0 : index
    %317 = vector.load %arg4[%c2_212, %c0_213, %c0_214] : memref<5x168x84xbf16, #tpu.memory_space<vmem>>, vector<1x168x84xbf16>
    %318 = vector.shape_cast %317 : vector<1x168x84xbf16> to vector<168x84xbf16>
    %cst_215 = arith.constant dense<0.000000e+00> : vector<16x84xf32>
    %319 = tpu.matmul %316, %318, %cst_215 {dimension_numbers = #tpu.dot_dimension_numbers<[1], [0], [0], [1], [0, 0, 1, 1], [], []>} : vector<16x168xbf16>, vector<168x84xbf16>, vector<16x84xf32> -> vector<16x84xf32>
    %320 = arith.addf %314, %319 : vector<16x84xf32>
    %c5_216 = arith.constant 5 : index
    %c0_217 = arith.constant 0 : index
    %c0_218 = arith.constant 0 : index
    %321 = vector.load %arg9[%c5_216, %c0_217, %c0_218] : memref<14x16x168xbf16, #tpu.memory_space<vmem>>, vector<1x16x168xbf16>
    %322 = vector.shape_cast %321 : vector<1x16x168xbf16> to vector<16x168xbf16>
    %c3_219 = arith.constant 3 : index
    %c0_220 = arith.constant 0 : index
    %c0_221 = arith.constant 0 : index
    %323 = vector.load %arg4[%c3_219, %c0_220, %c0_221] : memref<5x168x84xbf16, #tpu.memory_space<vmem>>, vector<1x168x84xbf16>
    %324 = vector.shape_cast %323 : vector<1x168x84xbf16> to vector<168x84xbf16>
    %cst_222 = arith.constant dense<0.000000e+00> : vector<16x84xf32>
    %325 = tpu.matmul %322, %324, %cst_222 {dimension_numbers = #tpu.dot_dimension_numbers<[1], [0], [0], [1], [0, 0, 1, 1], [], []>} : vector<16x168xbf16>, vector<168x84xbf16>, vector<16x84xf32> -> vector<16x84xf32>
    %326 = arith.addf %320, %325 : vector<16x84xf32>
    %c6_223 = arith.constant 6 : index
    %c0_224 = arith.constant 0 : index
    %c0_225 = arith.constant 0 : index
    %327 = vector.load %arg9[%c6_223, %c0_224, %c0_225] : memref<14x16x168xbf16, #tpu.memory_space<vmem>>, vector<1x16x168xbf16>
    %328 = vector.shape_cast %327 : vector<1x16x168xbf16> to vector<16x168xbf16>
    %c4_226 = arith.constant 4 : index
    %c0_227 = arith.constant 0 : index
    %c0_228 = arith.constant 0 : index
    %329 = vector.load %arg4[%c4_226, %c0_227, %c0_228] : memref<5x168x84xbf16, #tpu.memory_space<vmem>>, vector<1x168x84xbf16>
    %330 = vector.shape_cast %329 : vector<1x168x84xbf16> to vector<168x84xbf16>
    %cst_229 = arith.constant dense<0.000000e+00> : vector<16x84xf32>
    %331 = tpu.matmul %328, %330, %cst_229 {dimension_numbers = #tpu.dot_dimension_numbers<[1], [0], [0], [1], [0, 0, 1, 1], [], []>} : vector<16x168xbf16>, vector<168x84xbf16>, vector<16x84xf32> -> vector<16x84xf32>
    %332 = arith.addf %326, %331 : vector<16x84xf32>
    %333 = vector.broadcast %1 : vector<1x84xf32> to vector<16x84xf32>
    %334 = arith.addf %332, %333 : vector<16x84xf32>
    %335 = arith.negf %334 : vector<16x84xf32>
    %336 = math.exp %335 : vector<16x84xf32>
    %cst_230 = arith.constant 1.000000e+00 : f32
    %337 = vector.broadcast %cst_230 : f32 to vector<16x84xf32>
    %338 = arith.addf %337, %336 : vector<16x84xf32>
    %339 = arith.divf %337, %338 : vector<16x84xf32>
    %340 = arith.truncf %339 : vector<16x84xf32> to vector<16x84xbf16>
    %c0_231 = arith.constant 0 : index
    %c0_232 = arith.constant 0 : index
    %341 = vector.load %arg8[%c0_231, %c0_232] : memref<16x128xf32, #tpu.memory_space<vmem>>, vector<16x128xf32>
    %c2_233 = arith.constant 2 : index
    %c0_234 = arith.constant 0 : index
    %c0_235 = arith.constant 0 : index
    %342 = vector.load %arg6[%c2_233, %c0_234, %c0_235] : memref<7x84x128xbf16, #tpu.memory_space<vmem>>, vector<1x84x128xbf16>
    %343 = vector.shape_cast %342 : vector<1x84x128xbf16> to vector<84x128xbf16>
    %cst_236 = arith.constant dense<0.000000e+00> : vector<16x128xf32>
    %344 = tpu.matmul %340, %343, %cst_236 {dimension_numbers = #tpu.dot_dimension_numbers<[1], [0], [0], [1], [0, 0, 1, 1], [], []>} : vector<16x84xbf16>, vector<84x128xbf16>, vector<16x128xf32> -> vector<16x128xf32>
    %345 = arith.addf %341, %344 : vector<16x128xf32>
    %c0_237 = arith.constant 0 : index
    %c0_238 = arith.constant 0 : index
    %346 = vector.load %arg8[%c0_237, %c0_238] : memref<16x128xf32, #tpu.memory_space<vmem>>, vector<16x128xf32>
    tpu.vector_store %arg8[%c0_237, %c0_238], %345 {strides = array<i32>} : memref<16x128xf32, #tpu.memory_space<vmem>>, vector<16x128xf32>,
    %c4_239 = arith.constant 4 : index
    %c0_240 = arith.constant 0 : index
    %c0_241 = arith.constant 0 : index
    %347 = vector.load %arg9[%c4_239, %c0_240, %c0_241] : memref<14x16x168xbf16, #tpu.memory_space<vmem>>, vector<1x16x168xbf16>
    %348 = vector.shape_cast %347 : vector<1x16x168xbf16> to vector<16x168xbf16>
    %c0_242 = arith.constant 0 : index
    %c0_243 = arith.constant 0 : index
    %c0_244 = arith.constant 0 : index
    %349 = vector.load %arg4[%c0_242, %c0_243, %c0_244] : memref<5x168x84xbf16, #tpu.memory_space<vmem>>, vector<1x168x84xbf16>
    %350 = vector.shape_cast %349 : vector<1x168x84xbf16> to vector<168x84xbf16>
    %cst_245 = arith.constant dense<0.000000e+00> : vector<16x84xf32>
    %351 = tpu.matmul %348, %350, %cst_245 {dimension_numbers = #tpu.dot_dimension_numbers<[1], [0], [0], [1], [0, 0, 1, 1], [], []>} : vector<16x168xbf16>, vector<168x84xbf16>, vector<16x84xf32> -> vector<16x84xf32>
    %c5_246 = arith.constant 5 : index
    %c0_247 = arith.constant 0 : index
    %c0_248 = arith.constant 0 : index
    %352 = vector.load %arg9[%c5_246, %c0_247, %c0_248] : memref<14x16x168xbf16, #tpu.memory_space<vmem>>, vector<1x16x168xbf16>
    %353 = vector.shape_cast %352 : vector<1x16x168xbf16> to vector<16x168xbf16>
    %c1_249 = arith.constant 1 : index
    %c0_250 = arith.constant 0 : index
    %c0_251 = arith.constant 0 : index
    %354 = vector.load %arg4[%c1_249, %c0_250, %c0_251] : memref<5x168x84xbf16, #tpu.memory_space<vmem>>, vector<1x168x84xbf16>
    %355 = vector.shape_cast %354 : vector<1x168x84xbf16> to vector<168x84xbf16>
    %cst_252 = arith.constant dense<0.000000e+00> : vector<16x84xf32>
    %356 = tpu.matmul %353, %355, %cst_252 {dimension_numbers = #tpu.dot_dimension_numbers<[1], [0], [0], [1], [0, 0, 1, 1], [], []>} : vector<16x168xbf16>, vector<168x84xbf16>, vector<16x84xf32> -> vector<16x84xf32>
    %357 = arith.addf %351, %356 : vector<16x84xf32>
    %c6_253 = arith.constant 6 : index
    %c0_254 = arith.constant 0 : index
    %c0_255 = arith.constant 0 : index
    %358 = vector.load %arg9[%c6_253, %c0_254, %c0_255] : memref<14x16x168xbf16, #tpu.memory_space<vmem>>, vector<1x16x168xbf16>
    %359 = vector.shape_cast %358 : vector<1x16x168xbf16> to vector<16x168xbf16>
    %c2_256 = arith.constant 2 : index
    %c0_257 = arith.constant 0 : index
    %c0_258 = arith.constant 0 : index
    %360 = vector.load %arg4[%c2_256, %c0_257, %c0_258] : memref<5x168x84xbf16, #tpu.memory_space<vmem>>, vector<1x168x84xbf16>
    %361 = vector.shape_cast %360 : vector<1x168x84xbf16> to vector<168x84xbf16>
    %cst_259 = arith.constant dense<0.000000e+00> : vector<16x84xf32>
    %362 = tpu.matmul %359, %361, %cst_259 {dimension_numbers = #tpu.dot_dimension_numbers<[1], [0], [0], [1], [0, 0, 1, 1], [], []>} : vector<16x168xbf16>, vector<168x84xbf16>, vector<16x84xf32> -> vector<16x84xf32>
    %363 = arith.addf %357, %362 : vector<16x84xf32>
    %c7_260 = arith.constant 7 : index
    %c0_261 = arith.constant 0 : index
    %c0_262 = arith.constant 0 : index
    %364 = vector.load %arg9[%c7_260, %c0_261, %c0_262] : memref<14x16x168xbf16, #tpu.memory_space<vmem>>, vector<1x16x168xbf16>
    %365 = vector.shape_cast %364 : vector<1x16x168xbf16> to vector<16x168xbf16>
    %c3_263 = arith.constant 3 : index
    %c0_264 = arith.constant 0 : index
    %c0_265 = arith.constant 0 : index
    %366 = vector.load %arg4[%c3_263, %c0_264, %c0_265] : memref<5x168x84xbf16, #tpu.memory_space<vmem>>, vector<1x168x84xbf16>
    %367 = vector.shape_cast %366 : vector<1x168x84xbf16> to vector<168x84xbf16>
    %cst_266 = arith.constant dense<0.000000e+00> : vector<16x84xf32>
    %368 = tpu.matmul %365, %367, %cst_266 {dimension_numbers = #tpu.dot_dimension_numbers<[1], [0], [0], [1], [0, 0, 1, 1], [], []>} : vector<16x168xbf16>, vector<168x84xbf16>, vector<16x84xf32> -> vector<16x84xf32>
    %369 = arith.addf %363, %368 : vector<16x84xf32>
    %c8_267 = arith.constant 8 : index
    %c0_268 = arith.constant 0 : index
    %c0_269 = arith.constant 0 : index
    %370 = vector.load %arg9[%c8_267, %c0_268, %c0_269] : memref<14x16x168xbf16, #tpu.memory_space<vmem>>, vector<1x16x168xbf16>
    %371 = vector.shape_cast %370 : vector<1x16x168xbf16> to vector<16x168xbf16>
    %c4_270 = arith.constant 4 : index
    %c0_271 = arith.constant 0 : index
    %c0_272 = arith.constant 0 : index
    %372 = vector.load %arg4[%c4_270, %c0_271, %c0_272] : memref<5x168x84xbf16, #tpu.memory_space<vmem>>, vector<1x168x84xbf16>
    %373 = vector.shape_cast %372 : vector<1x168x84xbf16> to vector<168x84xbf16>
    %cst_273 = arith.constant dense<0.000000e+00> : vector<16x84xf32>
    %374 = tpu.matmul %371, %373, %cst_273 {dimension_numbers = #tpu.dot_dimension_numbers<[1], [0], [0], [1], [0, 0, 1, 1], [], []>} : vector<16x168xbf16>, vector<168x84xbf16>, vector<16x84xf32> -> vector<16x84xf32>
    %375 = arith.addf %369, %374 : vector<16x84xf32>
    %376 = vector.broadcast %1 : vector<1x84xf32> to vector<16x84xf32>
    %377 = arith.addf %375, %376 : vector<16x84xf32>
    %378 = arith.negf %377 : vector<16x84xf32>
    %379 = math.exp %378 : vector<16x84xf32>
    %cst_274 = arith.constant 1.000000e+00 : f32
    %380 = vector.broadcast %cst_274 : f32 to vector<16x84xf32>
    %381 = arith.addf %380, %379 : vector<16x84xf32>
    %382 = arith.divf %380, %381 : vector<16x84xf32>
    %383 = arith.truncf %382 : vector<16x84xf32> to vector<16x84xbf16>
    %c0_275 = arith.constant 0 : index
    %c0_276 = arith.constant 0 : index
    %384 = vector.load %arg8[%c0_275, %c0_276] : memref<16x128xf32, #tpu.memory_space<vmem>>, vector<16x128xf32>
    %c3_277 = arith.constant 3 : index
    %c0_278 = arith.constant 0 : index
    %c0_279 = arith.constant 0 : index
    %385 = vector.load %arg6[%c3_277, %c0_278, %c0_279] : memref<7x84x128xbf16, #tpu.memory_space<vmem>>, vector<1x84x128xbf16>
    %386 = vector.shape_cast %385 : vector<1x84x128xbf16> to vector<84x128xbf16>
    %cst_280 = arith.constant dense<0.000000e+00> : vector<16x128xf32>
    %387 = tpu.matmul %383, %386, %cst_280 {dimension_numbers = #tpu.dot_dimension_numbers<[1], [0], [0], [1], [0, 0, 1, 1], [], []>} : vector<16x84xbf16>, vector<84x128xbf16>, vector<16x128xf32> -> vector<16x128xf32>
    %388 = arith.addf %384, %387 : vector<16x128xf32>
    %c0_281 = arith.constant 0 : index
    %c0_282 = arith.constant 0 : index
    %389 = vector.load %arg8[%c0_281, %c0_282] : memref<16x128xf32, #tpu.memory_space<vmem>>, vector<16x128xf32>
    tpu.vector_store %arg8[%c0_281, %c0_282], %388 {strides = array<i32>} : memref<16x128xf32, #tpu.memory_space<vmem>>, vector<16x128xf32>,
    %c6_283 = arith.constant 6 : index
    %c0_284 = arith.constant 0 : index
    %c0_285 = arith.constant 0 : index
    %390 = vector.load %arg9[%c6_283, %c0_284, %c0_285] : memref<14x16x168xbf16, #tpu.memory_space<vmem>>, vector<1x16x168xbf16>
    %391 = vector.shape_cast %390 : vector<1x16x168xbf16> to vector<16x168xbf16>
    %c0_286 = arith.constant 0 : index
    %c0_287 = arith.constant 0 : index
    %c0_288 = arith.constant 0 : index
    %392 = vector.load %arg4[%c0_286, %c0_287, %c0_288] : memref<5x168x84xbf16, #tpu.memory_space<vmem>>, vector<1x168x84xbf16>
    %393 = vector.shape_cast %392 : vector<1x168x84xbf16> to vector<168x84xbf16>
    %cst_289 = arith.constant dense<0.000000e+00> : vector<16x84xf32>
    %394 = tpu.matmul %391, %393, %cst_289 {dimension_numbers = #tpu.dot_dimension_numbers<[1], [0], [0], [1], [0, 0, 1, 1], [], []>} : vector<16x168xbf16>, vector<168x84xbf16>, vector<16x84xf32> -> vector<16x84xf32>
    %c7_290 = arith.constant 7 : index
    %c0_291 = arith.constant 0 : index
    %c0_292 = arith.constant 0 : index
    %395 = vector.load %arg9[%c7_290, %c0_291, %c0_292] : memref<14x16x168xbf16, #tpu.memory_space<vmem>>, vector<1x16x168xbf16>
    %396 = vector.shape_cast %395 : vector<1x16x168xbf16> to vector<16x168xbf16>
    %c1_293 = arith.constant 1 : index
    %c0_294 = arith.constant 0 : index
    %c0_295 = arith.constant 0 : index
    %397 = vector.load %arg4[%c1_293, %c0_294, %c0_295] : memref<5x168x84xbf16, #tpu.memory_space<vmem>>, vector<1x168x84xbf16>
    %398 = vector.shape_cast %397 : vector<1x168x84xbf16> to vector<168x84xbf16>
    %cst_296 = arith.constant dense<0.000000e+00> : vector<16x84xf32>
    %399 = tpu.matmul %396, %398, %cst_296 {dimension_numbers = #tpu.dot_dimension_numbers<[1], [0], [0], [1], [0, 0, 1, 1], [], []>} : vector<16x168xbf16>, vector<168x84xbf16>, vector<16x84xf32> -> vector<16x84xf32>
    %400 = arith.addf %394, %399 : vector<16x84xf32>
    %c8_297 = arith.constant 8 : index
    %c0_298 = arith.constant 0 : index
    %c0_299 = arith.constant 0 : index
    %401 = vector.load %arg9[%c8_297, %c0_298, %c0_299] : memref<14x16x168xbf16, #tpu.memory_space<vmem>>, vector<1x16x168xbf16>
    %402 = vector.shape_cast %401 : vector<1x16x168xbf16> to vector<16x168xbf16>
    %c2_300 = arith.constant 2 : index
    %c0_301 = arith.constant 0 : index
    %c0_302 = arith.constant 0 : index
    %403 = vector.load %arg4[%c2_300, %c0_301, %c0_302] : memref<5x168x84xbf16, #tpu.memory_space<vmem>>, vector<1x168x84xbf16>
    %404 = vector.shape_cast %403 : vector<1x168x84xbf16> to vector<168x84xbf16>
    %cst_303 = arith.constant dense<0.000000e+00> : vector<16x84xf32>
    %405 = tpu.matmul %402, %404, %cst_303 {dimension_numbers = #tpu.dot_dimension_numbers<[1], [0], [0], [1], [0, 0, 1, 1], [], []>} : vector<16x168xbf16>, vector<168x84xbf16>, vector<16x84xf32> -> vector<16x84xf32>
    %406 = arith.addf %400, %405 : vector<16x84xf32>
    %c9_304 = arith.constant 9 : index
    %c0_305 = arith.constant 0 : index
    %c0_306 = arith.constant 0 : index
    %407 = vector.load %arg9[%c9_304, %c0_305, %c0_306] : memref<14x16x168xbf16, #tpu.memory_space<vmem>>, vector<1x16x168xbf16>
    %408 = vector.shape_cast %407 : vector<1x16x168xbf16> to vector<16x168xbf16>
    %c3_307 = arith.constant 3 : index
    %c0_308 = arith.constant 0 : index
    %c0_309 = arith.constant 0 : index
    %409 = vector.load %arg4[%c3_307, %c0_308, %c0_309] : memref<5x168x84xbf16, #tpu.memory_space<vmem>>, vector<1x168x84xbf16>
    %410 = vector.shape_cast %409 : vector<1x168x84xbf16> to vector<168x84xbf16>
    %cst_310 = arith.constant dense<0.000000e+00> : vector<16x84xf32>
    %411 = tpu.matmul %408, %410, %cst_310 {dimension_numbers = #tpu.dot_dimension_numbers<[1], [0], [0], [1], [0, 0, 1, 1], [], []>} : vector<16x168xbf16>, vector<168x84xbf16>, vector<16x84xf32> -> vector<16x84xf32>
    %412 = arith.addf %406, %411 : vector<16x84xf32>
    %c10_311 = arith.constant 10 : index
    %c0_312 = arith.constant 0 : index
    %c0_313 = arith.constant 0 : index
    %413 = vector.load %arg9[%c10_311, %c0_312, %c0_313] : memref<14x16x168xbf16, #tpu.memory_space<vmem>>, vector<1x16x168xbf16>
    %414 = vector.shape_cast %413 : vector<1x16x168xbf16> to vector<16x168xbf16>
    %c4_314 = arith.constant 4 : index
    %c0_315 = arith.constant 0 : index
    %c0_316 = arith.constant 0 : index
    %415 = vector.load %arg4[%c4_314, %c0_315, %c0_316] : memref<5x168x84xbf16, #tpu.memory_space<vmem>>, vector<1x168x84xbf16>
    %416 = vector.shape_cast %415 : vector<1x168x84xbf16> to vector<168x84xbf16>
    %cst_317 = arith.constant dense<0.000000e+00> : vector<16x84xf32>
    %417 = tpu.matmul %414, %416, %cst_317 {dimension_numbers = #tpu.dot_dimension_numbers<[1], [0], [0], [1], [0, 0, 1, 1], [], []>} : vector<16x168xbf16>, vector<168x84xbf16>, vector<16x84xf32> -> vector<16x84xf32>
    %418 = arith.addf %412, %417 : vector<16x84xf32>
    %419 = vector.broadcast %1 : vector<1x84xf32> to vector<16x84xf32>
    %420 = arith.addf %418, %419 : vector<16x84xf32>
    %421 = arith.negf %420 : vector<16x84xf32>
    %422 = math.exp %421 : vector<16x84xf32>
    %cst_318 = arith.constant 1.000000e+00 : f32
    %423 = vector.broadcast %cst_318 : f32 to vector<16x84xf32>
    %424 = arith.addf %423, %422 : vector<16x84xf32>
    %425 = arith.divf %423, %424 : vector<16x84xf32>
    %426 = arith.truncf %425 : vector<16x84xf32> to vector<16x84xbf16>
    %c0_319 = arith.constant 0 : index
    %c0_320 = arith.constant 0 : index
    %427 = vector.load %arg8[%c0_319, %c0_320] : memref<16x128xf32, #tpu.memory_space<vmem>>, vector<16x128xf32>
    %c4_321 = arith.constant 4 : index
    %c0_322 = arith.constant 0 : index
    %c0_323 = arith.constant 0 : index
    %428 = vector.load %arg6[%c4_321, %c0_322, %c0_323] : memref<7x84x128xbf16, #tpu.memory_space<vmem>>, vector<1x84x128xbf16>
    %429 = vector.shape_cast %428 : vector<1x84x128xbf16> to vector<84x128xbf16>
    %cst_324 = arith.constant dense<0.000000e+00> : vector<16x128xf32>
    %430 = tpu.matmul %426, %429, %cst_324 {dimension_numbers = #tpu.dot_dimension_numbers<[1], [0], [0], [1], [0, 0, 1, 1], [], []>} : vector<16x84xbf16>, vector<84x128xbf16>, vector<16x128xf32> -> vector<16x128xf32>
    %431 = arith.addf %427, %430 : vector<16x128xf32>
    %c0_325 = arith.constant 0 : index
    %c0_326 = arith.constant 0 : index
    %432 = vector.load %arg8[%c0_325, %c0_326] : memref<16x128xf32, #tpu.memory_space<vmem>>, vector<16x128xf32>
    tpu.vector_store %arg8[%c0_325, %c0_326], %431 {strides = array<i32>} : memref<16x128xf32, #tpu.memory_space<vmem>>, vector<16x128xf32>,
    %c8_327 = arith.constant 8 : index
    %c0_328 = arith.constant 0 : index
    %c0_329 = arith.constant 0 : index
    %433 = vector.load %arg9[%c8_327, %c0_328, %c0_329] : memref<14x16x168xbf16, #tpu.memory_space<vmem>>, vector<1x16x168xbf16>
    %434 = vector.shape_cast %433 : vector<1x16x168xbf16> to vector<16x168xbf16>
    %c0_330 = arith.constant 0 : index
    %c0_331 = arith.constant 0 : index
    %c0_332 = arith.constant 0 : index
    %435 = vector.load %arg4[%c0_330, %c0_331, %c0_332] : memref<5x168x84xbf16, #tpu.memory_space<vmem>>, vector<1x168x84xbf16>
    %436 = vector.shape_cast %435 : vector<1x168x84xbf16> to vector<168x84xbf16>
    %cst_333 = arith.constant dense<0.000000e+00> : vector<16x84xf32>
    %437 = tpu.matmul %434, %436, %cst_333 {dimension_numbers = #tpu.dot_dimension_numbers<[1], [0], [0], [1], [0, 0, 1, 1], [], []>} : vector<16x168xbf16>, vector<168x84xbf16>, vector<16x84xf32> -> vector<16x84xf32>
    %c9_334 = arith.constant 9 : index
    %c0_335 = arith.constant 0 : index
    %c0_336 = arith.constant 0 : index
    %438 = vector.load %arg9[%c9_334, %c0_335, %c0_336] : memref<14x16x168xbf16, #tpu.memory_space<vmem>>, vector<1x16x168xbf16>
    %439 = vector.shape_cast %438 : vector<1x16x168xbf16> to vector<16x168xbf16>
    %c1_337 = arith.constant 1 : index
    %c0_338 = arith.constant 0 : index
    %c0_339 = arith.constant 0 : index
    %440 = vector.load %arg4[%c1_337, %c0_338, %c0_339] : memref<5x168x84xbf16, #tpu.memory_space<vmem>>, vector<1x168x84xbf16>
    %441 = vector.shape_cast %440 : vector<1x168x84xbf16> to vector<168x84xbf16>
    %cst_340 = arith.constant dense<0.000000e+00> : vector<16x84xf32>
    %442 = tpu.matmul %439, %441, %cst_340 {dimension_numbers = #tpu.dot_dimension_numbers<[1], [0], [0], [1], [0, 0, 1, 1], [], []>} : vector<16x168xbf16>, vector<168x84xbf16>, vector<16x84xf32> -> vector<16x84xf32>
    %443 = arith.addf %437, %442 : vector<16x84xf32>
    %c10_341 = arith.constant 10 : index
    %c0_342 = arith.constant 0 : index
    %c0_343 = arith.constant 0 : index
    %444 = vector.load %arg9[%c10_341, %c0_342, %c0_343] : memref<14x16x168xbf16, #tpu.memory_space<vmem>>, vector<1x16x168xbf16>
    %445 = vector.shape_cast %444 : vector<1x16x168xbf16> to vector<16x168xbf16>
    %c2_344 = arith.constant 2 : index
    %c0_345 = arith.constant 0 : index
    %c0_346 = arith.constant 0 : index
    %446 = vector.load %arg4[%c2_344, %c0_345, %c0_346] : memref<5x168x84xbf16, #tpu.memory_space<vmem>>, vector<1x168x84xbf16>
    %447 = vector.shape_cast %446 : vector<1x168x84xbf16> to vector<168x84xbf16>
    %cst_347 = arith.constant dense<0.000000e+00> : vector<16x84xf32>
    %448 = tpu.matmul %445, %447, %cst_347 {dimension_numbers = #tpu.dot_dimension_numbers<[1], [0], [0], [1], [0, 0, 1, 1], [], []>} : vector<16x168xbf16>, vector<168x84xbf16>, vector<16x84xf32> -> vector<16x84xf32>
    %449 = arith.addf %443, %448 : vector<16x84xf32>
    %c11_348 = arith.constant 11 : index
    %c0_349 = arith.constant 0 : index
    %c0_350 = arith.constant 0 : index
    %450 = vector.load %arg9[%c11_348, %c0_349, %c0_350] : memref<14x16x168xbf16, #tpu.memory_space<vmem>>, vector<1x16x168xbf16>
    %451 = vector.shape_cast %450 : vector<1x16x168xbf16> to vector<16x168xbf16>
    %c3_351 = arith.constant 3 : index
    %c0_352 = arith.constant 0 : index
    %c0_353 = arith.constant 0 : index
    %452 = vector.load %arg4[%c3_351, %c0_352, %c0_353] : memref<5x168x84xbf16, #tpu.memory_space<vmem>>, vector<1x168x84xbf16>
    %453 = vector.shape_cast %452 : vector<1x168x84xbf16> to vector<168x84xbf16>
    %cst_354 = arith.constant dense<0.000000e+00> : vector<16x84xf32>
    %454 = tpu.matmul %451, %453, %cst_354 {dimension_numbers = #tpu.dot_dimension_numbers<[1], [0], [0], [1], [0, 0, 1, 1], [], []>} : vector<16x168xbf16>, vector<168x84xbf16>, vector<16x84xf32> -> vector<16x84xf32>
    %455 = arith.addf %449, %454 : vector<16x84xf32>
    %c12_355 = arith.constant 12 : index
    %c0_356 = arith.constant 0 : index
    %c0_357 = arith.constant 0 : index
    %456 = vector.load %arg9[%c12_355, %c0_356, %c0_357] : memref<14x16x168xbf16, #tpu.memory_space<vmem>>, vector<1x16x168xbf16>
    %457 = vector.shape_cast %456 : vector<1x16x168xbf16> to vector<16x168xbf16>
    %c4_358 = arith.constant 4 : index
    %c0_359 = arith.constant 0 : index
    %c0_360 = arith.constant 0 : index
    %458 = vector.load %arg4[%c4_358, %c0_359, %c0_360] : memref<5x168x84xbf16, #tpu.memory_space<vmem>>, vector<1x168x84xbf16>
    %459 = vector.shape_cast %458 : vector<1x168x84xbf16> to vector<168x84xbf16>
    %cst_361 = arith.constant dense<0.000000e+00> : vector<16x84xf32>
    %460 = tpu.matmul %457, %459, %cst_361 {dimension_numbers = #tpu.dot_dimension_numbers<[1], [0], [0], [1], [0, 0, 1, 1], [], []>} : vector<16x168xbf16>, vector<168x84xbf16>, vector<16x84xf32> -> vector<16x84xf32>
    %461 = arith.addf %455, %460 : vector<16x84xf32>
    %462 = vector.broadcast %1 : vector<1x84xf32> to vector<16x84xf32>
    %463 = arith.addf %461, %462 : vector<16x84xf32>
    %464 = arith.negf %463 : vector<16x84xf32>
    %465 = math.exp %464 : vector<16x84xf32>
    %cst_362 = arith.constant 1.000000e+00 : f32
    %466 = vector.broadcast %cst_362 : f32 to vector<16x84xf32>
    %467 = arith.addf %466, %465 : vector<16x84xf32>
    %468 = arith.divf %466, %467 : vector<16x84xf32>
    %469 = arith.truncf %468 : vector<16x84xf32> to vector<16x84xbf16>
    %c0_363 = arith.constant 0 : index
    %c0_364 = arith.constant 0 : index
    %470 = vector.load %arg8[%c0_363, %c0_364] : memref<16x128xf32, #tpu.memory_space<vmem>>, vector<16x128xf32>
    %c5_365 = arith.constant 5 : index
    %c0_366 = arith.constant 0 : index
    %c0_367 = arith.constant 0 : index
    %471 = vector.load %arg6[%c5_365, %c0_366, %c0_367] : memref<7x84x128xbf16, #tpu.memory_space<vmem>>, vector<1x84x128xbf16>
    %472 = vector.shape_cast %471 : vector<1x84x128xbf16> to vector<84x128xbf16>
    %cst_368 = arith.constant dense<0.000000e+00> : vector<16x128xf32>
    %473 = tpu.matmul %469, %472, %cst_368 {dimension_numbers = #tpu.dot_dimension_numbers<[1], [0], [0], [1], [0, 0, 1, 1], [], []>} : vector<16x84xbf16>, vector<84x128xbf16>, vector<16x128xf32> -> vector<16x128xf32>
    %474 = arith.addf %470, %473 : vector<16x128xf32>
    %c0_369 = arith.constant 0 : index
    %c0_370 = arith.constant 0 : index
    %475 = vector.load %arg8[%c0_369, %c0_370] : memref<16x128xf32, #tpu.memory_space<vmem>>, vector<16x128xf32>
    tpu.vector_store %arg8[%c0_369, %c0_370], %474 {strides = array<i32>} : memref<16x128xf32, #tpu.memory_space<vmem>>, vector<16x128xf32>,
    %c10_371 = arith.constant 10 : index
    %c0_372 = arith.constant 0 : index
    %c0_373 = arith.constant 0 : index
    %476 = vector.load %arg9[%c10_371, %c0_372, %c0_373] : memref<14x16x168xbf16, #tpu.memory_space<vmem>>, vector<1x16x168xbf16>
    %477 = vector.shape_cast %476 : vector<1x16x168xbf16> to vector<16x168xbf16>
    %c0_374 = arith.constant 0 : index
    %c0_375 = arith.constant 0 : index
    %c0_376 = arith.constant 0 : index
    %478 = vector.load %arg4[%c0_374, %c0_375, %c0_376] : memref<5x168x84xbf16, #tpu.memory_space<vmem>>, vector<1x168x84xbf16>
    %479 = vector.shape_cast %478 : vector<1x168x84xbf16> to vector<168x84xbf16>
    %cst_377 = arith.constant dense<0.000000e+00> : vector<16x84xf32>
    %480 = tpu.matmul %477, %479, %cst_377 {dimension_numbers = #tpu.dot_dimension_numbers<[1], [0], [0], [1], [0, 0, 1, 1], [], []>} : vector<16x168xbf16>, vector<168x84xbf16>, vector<16x84xf32> -> vector<16x84xf32>
    %c11_378 = arith.constant 11 : index
    %c0_379 = arith.constant 0 : index
    %c0_380 = arith.constant 0 : index
    %481 = vector.load %arg9[%c11_378, %c0_379, %c0_380] : memref<14x16x168xbf16, #tpu.memory_space<vmem>>, vector<1x16x168xbf16>
    %482 = vector.shape_cast %481 : vector<1x16x168xbf16> to vector<16x168xbf16>
    %c1_381 = arith.constant 1 : index
    %c0_382 = arith.constant 0 : index
    %c0_383 = arith.constant 0 : index
    %483 = vector.load %arg4[%c1_381, %c0_382, %c0_383] : memref<5x168x84xbf16, #tpu.memory_space<vmem>>, vector<1x168x84xbf16>
    %484 = vector.shape_cast %483 : vector<1x168x84xbf16> to vector<168x84xbf16>
    %cst_384 = arith.constant dense<0.000000e+00> : vector<16x84xf32>
    %485 = tpu.matmul %482, %484, %cst_384 {dimension_numbers = #tpu.dot_dimension_numbers<[1], [0], [0], [1], [0, 0, 1, 1], [], []>} : vector<16x168xbf16>, vector<168x84xbf16>, vector<16x84xf32> -> vector<16x84xf32>
    %486 = arith.addf %480, %485 : vector<16x84xf32>
    %c12_385 = arith.constant 12 : index
    %c0_386 = arith.constant 0 : index
    %c0_387 = arith.constant 0 : index
    %487 = vector.load %arg9[%c12_385, %c0_386, %c0_387] : memref<14x16x168xbf16, #tpu.memory_space<vmem>>, vector<1x16x168xbf16>
    %488 = vector.shape_cast %487 : vector<1x16x168xbf16> to vector<16x168xbf16>
    %c2_388 = arith.constant 2 : index
    %c0_389 = arith.constant 0 : index
    %c0_390 = arith.constant 0 : index
    %489 = vector.load %arg4[%c2_388, %c0_389, %c0_390] : memref<5x168x84xbf16, #tpu.memory_space<vmem>>, vector<1x168x84xbf16>
    %490 = vector.shape_cast %489 : vector<1x168x84xbf16> to vector<168x84xbf16>
    %cst_391 = arith.constant dense<0.000000e+00> : vector<16x84xf32>
    %491 = tpu.matmul %488, %490, %cst_391 {dimension_numbers = #tpu.dot_dimension_numbers<[1], [0], [0], [1], [0, 0, 1, 1], [], []>} : vector<16x168xbf16>, vector<168x84xbf16>, vector<16x84xf32> -> vector<16x84xf32>
    %492 = arith.addf %486, %491 : vector<16x84xf32>
    %c13_392 = arith.constant 13 : index
    %c0_393 = arith.constant 0 : index
    %c0_394 = arith.constant 0 : index
    %493 = vector.load %arg9[%c13_392, %c0_393, %c0_394] : memref<14x16x168xbf16, #tpu.memory_space<vmem>>, vector<1x16x168xbf16>
    %494 = vector.shape_cast %493 : vector<1x16x168xbf16> to vector<16x168xbf16>
    %c3_395 = arith.constant 3 : index
    %c0_396 = arith.constant 0 : index
    %c0_397 = arith.constant 0 : index
    %495 = vector.load %arg4[%c3_395, %c0_396, %c0_397] : memref<5x168x84xbf16, #tpu.memory_space<vmem>>, vector<1x168x84xbf16>
    %496 = vector.shape_cast %495 : vector<1x168x84xbf16> to vector<168x84xbf16>
    %cst_398 = arith.constant dense<0.000000e+00> : vector<16x84xf32>
    %497 = tpu.matmul %494, %496, %cst_398 {dimension_numbers = #tpu.dot_dimension_numbers<[1], [0], [0], [1], [0, 0, 1, 1], [], []>} : vector<16x168xbf16>, vector<168x84xbf16>, vector<16x84xf32> -> vector<16x84xf32>
    %498 = arith.addf %492, %497 : vector<16x84xf32>
    %499 = vector.broadcast %1 : vector<1x84xf32> to vector<16x84xf32>
    %500 = arith.addf %498, %499 : vector<16x84xf32>
    %501 = arith.negf %500 : vector<16x84xf32>
    %502 = math.exp %501 : vector<16x84xf32>
    %cst_399 = arith.constant 1.000000e+00 : f32
    %503 = vector.broadcast %cst_399 : f32 to vector<16x84xf32>
    %504 = arith.addf %503, %502 : vector<16x84xf32>
    %505 = arith.divf %503, %504 : vector<16x84xf32>
    %506 = arith.truncf %505 : vector<16x84xf32> to vector<16x84xbf16>
    %c0_400 = arith.constant 0 : index
    %c0_401 = arith.constant 0 : index
    %507 = vector.load %arg8[%c0_400, %c0_401] : memref<16x128xf32, #tpu.memory_space<vmem>>, vector<16x128xf32>
    %c6_402 = arith.constant 6 : index
    %c0_403 = arith.constant 0 : index
    %c0_404 = arith.constant 0 : index
    %508 = vector.load %arg6[%c6_402, %c0_403, %c0_404] : memref<7x84x128xbf16, #tpu.memory_space<vmem>>, vector<1x84x128xbf16>
    %509 = vector.shape_cast %508 : vector<1x84x128xbf16> to vector<84x128xbf16>
    %cst_405 = arith.constant dense<0.000000e+00> : vector<16x128xf32>
    %510 = tpu.matmul %506, %509, %cst_405 {dimension_numbers = #tpu.dot_dimension_numbers<[1], [0], [0], [1], [0, 0, 1, 1], [], []>} : vector<16x84xbf16>, vector<84x128xbf16>, vector<16x128xf32> -> vector<16x128xf32>
    %511 = arith.addf %507, %510 : vector<16x128xf32>
    %c0_406 = arith.constant 0 : index
    %c0_407 = arith.constant 0 : index
    %512 = vector.load %arg8[%c0_406, %c0_407] : memref<16x128xf32, #tpu.memory_space<vmem>>, vector<16x128xf32>
    tpu.vector_store %arg8[%c0_406, %c0_407], %511 {strides = array<i32>} : memref<16x128xf32, #tpu.memory_space<vmem>>, vector<16x128xf32>,
    return
  }
  func.func @transform_0(%arg0: i32) -> (i32, i32) {
    %c0_i32 = arith.constant 0 : i32
    %c0_i32_0 = arith.constant 0 : i32
    return %arg0, %c0_i32 : i32, i32
  }
  func.func @transform_1(%arg0: i32) -> (i32, i32, i32) {
    %c0_i32 = arith.constant 0 : i32
    %c0_i32_0 = arith.constant 0 : i32
    %c0_i32_1 = arith.constant 0 : i32
    %c0_i32_2 = arith.constant 0 : i32
    return %c0_i32, %c0_i32_0, %c0_i32_1 : i32, i32, i32
  }
  func.func @transform_2(%arg0: i32) -> (i32, i32) {
    %c0_i32 = arith.constant 0 : i32
    %c0_i32_0 = arith.constant 0 : i32
    %c0_i32_1 = arith.constant 0 : i32
    return %c0_i32, %c0_i32_0 : i32, i32
  }
  func.func @transform_3(%arg0: i32) -> (i32, i32, i32) {
    %c0_i32 = arith.constant 0 : i32
    %c0_i32_0 = arith.constant 0 : i32
    %c0_i32_1 = arith.constant 0 : i32
    %c0_i32_2 = arith.constant 0 : i32
    return %c0_i32, %c0_i32_0, %c0_i32_1 : i32, i32, i32
  }
  func.func @transform_4(%arg0: i32) -> (i32, i32) {
    %c0_i32 = arith.constant 0 : i32
    %c0_i32_0 = arith.constant 0 : i32
    %c0_i32_1 = arith.constant 0 : i32
    return %c0_i32, %c0_i32_0 : i32, i32
  }
  func.func @transform_5(%arg0: i32) -> (i32, i32, i32) {
    %c0_i32 = arith.constant 0 : i32
    %c0_i32_0 = arith.constant 0 : i32
    %c0_i32_1 = arith.constant 0 : i32
    %c0_i32_2 = arith.constant 0 : i32
    return %c0_i32, %c0_i32_0, %c0_i32_1 : i32, i32, i32
  }
  func.func @transform_6(%arg0: i32) -> (i32, i32) {
    %c0_i32 = arith.constant 0 : i32
    %c0_i32_0 = arith.constant 0 : i32
    %c0_i32_1 = arith.constant 0 : i32
    return %c0_i32, %c0_i32_0 : i32, i32
  }
  func.func @transform_7(%arg0: i32) -> (i32, i32) {
    %c0_i32 = arith.constant 0 : i32
    %c0_i32_0 = arith.constant 0 : i32
    return %arg0, %c0_i32 : i32, i32
  }
}

</mosaic_0001>

<bundles_post_ra>
// kernel: lenet_mnist_forward.1
= control target key start
LH: loop header
LB: loop body
LE: loop exit
PB: predicated region body
PF: predicated region fallthrough
CT: control target
= control target key end

     0   :  { %12 = vsyncpa [#allocation4], 0  ;;  %s11334_s0 = inlined_call_operand.vmem [shape: f32[16,784], index: 0, kind: input, shape index: {}]   ;;  %s11335_s1 = inlined_call_operand.hbm [shape: bf16[14,140,168], index: 1, kind: input, shape index: {}]   ;;  %s11336_s2 = inlined_call_operand.vmem [shape: f32[1,168], index: 2, kind: input, shape index: {}]   ;;  %s11337_s3 = inlined_call_operand.hbm [shape: bf16[5,168,84], index: 3, kind: input, shape index: {}]   ;;  %s11338_s4 = inlined_call_operand.vmem [shape: f32[1,84], index: 4, kind: input, shape index: {}]   ;;  %s11339_s5 = inlined_call_operand.vmem [shape: bf16[7,84,128], index: 5, kind: input, shape index: {}]   ;;  %s11340_s6 = inlined_call_operand.vmem [shape: f32[1,128], index: 6, kind: input, shape index: {}]   ;;  %s11341_s7 = inlined_call_operand.vmem [shape: f32[16,128], index: 7, kind: output, shape index: {}]  }
   0x1   :  { %13 = vsyncpa [#allocation6], 0  ;;  %s10177_s24 = smov [#allocation3]   ;;  %s10129_s28 = scalar_lea.hbm %s11335_s1, 32256 }
   0x2   :  { %s21_s25 = sshll.u32 %s10177_s24, 4  ;;  %p10130_p0 = scmp.ne.s32.totalorder %s11335_s1, %s10129_s28  ;;  %s22_s25 = int_to_ptr.vmem [resolvable:$true] %s21_s25 }
   0x3   :  { %p10133_p1 = scmp.lt.u32.totalorder %s10129_s28, %s11335_s1 }
   0x5   :  { %p10135_p2 = pnand %p10133_p1, %p10130_p0 }
   0x7   :  { %10138 = shalt.err (!%p10135_p2)
}
   0x8   :  { %s10139_s10 = scalar_lea.vmem %s22_s25, 32256  ;;  %p10144_p4 = scmp.lt.s32.totalorder %s22_s25, %s22_s25 }
   0x9   :  { %p10140_p3 = scmp.ne.s32.totalorder %s22_s25, %s10139_s10  ;;  %p10145_p5 = scmp.lt.s32.totalorder %s10139_s10, %s10139_s10 }
   0xb   :  { %p10146_p6 = por %p10145_p5, %p10144_p4 }
   0xd   :  { %p10147_p7 = pnand %p10146_p6, %p10140_p3 }
   0xf   :  { %10150 = shalt.err (!%p10147_p7)
}
  0x10   :  { %s10178_s11 = smov 128   ;;  %s10179_s12 = smov 8  }
  0x11   :  { %27 = dma.hbm_to_vmem [thread:$0]  %s11335_s1, 32256, %s22_s25, [#allocation4], %s10178_s11, %s10178_s11, %s10179_s12  }
  0x12   :  { %s10180_s15 = smov [#allocation5]   ;;  %s10151_s19 = scalar_lea.hbm %s11337_s3, 6720 }
  0x13   :  { %s35_s16 = sshll.u32 %s10180_s15, 4  ;;  %p10152_p8 = scmp.ne.s32.totalorder %s11337_s3, %s10151_s19  ;;  %s36_s16 = int_to_ptr.vmem [resolvable:$true] %s35_s16 }
  0x14   :  { %p10155_p9 = scmp.lt.u32.totalorder %s10151_s19, %s11337_s3 }
  0x16   :  { %p10157_p10 = pnand %p10155_p9, %p10152_p8 }
  0x18   :  { %10160 = shalt.err (!%p10157_p10)
}
  0x19   :  { %s10161_s24 = scalar_lea.vmem %s36_s16, 6720  ;;  %p10166_p12 = scmp.lt.s32.totalorder %s36_s16, %s36_s16 }
  0x1a   :  { %p10162_p11 = scmp.ne.s32.totalorder %s36_s16, %s10161_s24  ;;  %p10167_p13 = scmp.lt.s32.totalorder %s10161_s24, %s10161_s24 }
  0x1c   :  { %p10168_p0 = por %p10167_p13, %p10166_p12 }
  0x1e   :  { %p10169_p1 = pnand %p10168_p0, %p10162_p11 }
  0x20   :  { %10172 = shalt.err (!%p10169_p1)
}
  0x21   :  { %s10181_s1 = smov 64   ;;  %s10182_s25 = smov 4  }
  0x22   :  { %41 = dma.hbm_to_vmem [thread:$0]  %s11337_s3, 6720, %s36_s16, [#allocation6], %s10181_s1, %s10181_s1, %s10182_s25  }
  0x23   :  { %10173 = dma.done.wait [#allocation4], 32256  }
  0x24   :  { %10174 = vsyncadd [#allocation4], 4294935040 }
  0x25   :  { %10175 = dma.done.wait [#allocation6], 6720  }
  0x26   :  { %10176 = vsyncadd [#allocation6], 4294960576  ;;  %v863_v0 = vld [vmem:[%s11334_s0 + $0x8] sm:$0xff]  ;;  %v865_v1 = vld [vmem:[%s11334_s0 + $0x40] sm:$0xff]  ;;  %vm180_vm0 = vcmask 97280   ;;  %s10183_s17 = smov 88  }
  0x27   :  { %v457_v2 = vld [vmem:[%s11334_s0] sm:$0xff]  ;;  %v867_v3 = vpack.c.bf16 %v865_v1, %v863_v0  ;;  %v459_v4 = vld [vmem:[%s11334_s0 + $0x38] sm:$0xff]  ;;  %v864_v5 = vld [vmem:[%s11334_s0 + $0x10] sm:$0xff]  ;;  %s10184_s18 = smov 72   ;;  %s10185_s23 = smov 16   ;;  %vm184_vm1 = vcmask 1045504  }
  0x28   :  { %v866_v6 = vld [vmem:[%s11334_s0 + $0x48] sm:$0xff]  ;;  %v10281_v7 = vpack.c.bf16 %v459_v4, %v457_v2  ;;  %v9074_v11 = vld [vmem:[#allocation3 + $0x14] ss:$8 sps:$4 sm:$0xff]   ;;  %v9076_v12 = vld [vmem:[#allocation3 + $0x10] ss:$8 sps:$4 sm:$0xff]   ;;  %s10186_s24 = smov 104  }
  0x29   :  { %890 = vrot.lane.b32.xlu1 %v867_v3, %s10183_s17  ;;  %v10283_v8 = vpack.c.bf16 %v866_v6, %v864_v5  ;;  %v9071_v9 = vld [vmem:[#allocation3 + $0x4] ss:$8 sps:$4 sm:$0xff]   ;;  %v9073_v10 = vld [vmem:[#allocation3] ss:$8 sps:$4 sm:$0xff]   ;;  %8029 = vmatprep.mubr.msk.bf16.mxu0 %vm180_vm0, %v867_v3  ;;  %v1270_v13 = vld [vmem:[%s11334_s0 + $0x18] sm:$0xff]  ;;  %s10187_s25 = smov 32  }
  0x2a   :  { %484 = vrot.lane.b32.xlu0 %v10281_v7, %s10184_s18  ;;  %8053 = vmatprep.mubr.msk.bf16.mxu1 %vm180_vm0, %v867_v3  ;;  %v9077_v14 = vld [vmem:[#allocation3 + $0x94] ss:$8 sps:$4 sm:$0xff]   ;;  %v9079_v15 = vld [vmem:[#allocation3 + $0x90] ss:$8 sps:$4 sm:$0xff]   ;;  %v9080_v17 = vld [vmem:[#allocation3 + $0x24] ss:$8 sps:$4 sm:$0xff]  }
  0x2b   :  { %191 = vmatprep.subr.bf16.mxu0 %v9071_v9  ;;  %v1272_v16 = vld [vmem:[%s11334_s0 + $0x50] sm:$0xff]  ;;  %385 = vmatprep.subr.bf16.mxu1 %v9077_v14  ;;  %v9083_v18 = vld [vmem:[#allocation3 + $0xa4] ss:$8 sps:$4 sm:$0xff]   ;;  %v9085_v19 = vld [vmem:[#allocation3 + $0xa0] ss:$8 sps:$4 sm:$0xff]   ;;  %s10188_s30 = smov 120  }
  0x2c   :  { %192 = vmatpush1.bf16.msra.mxu0 %v9073_v10  ;;  %386 = vmatpush1.bf16.msra.mxu1 %v9079_v15  ;;  %v9082_v20 = vld [vmem:[#allocation3 + $0x20] ss:$8 sps:$4 sm:$0xff]   ;;  %v10295_v21 = vpack.c.bf16 %v1272_v16, %v1270_v13  ;;  %v9086_v22 = vld [vmem:[#allocation3 + $0x34] ss:$8 sps:$4 sm:$0xff]   ;;  %v9091_v24 = vld [vmem:[#allocation3 + $0xb0] ss:$8 sps:$4 sm:$0xff]  }
  0x2d   :  { %892 = vrot.lane.b32.xlu1 %v10283_v8, %s10183_s17  ;;  %193 = vmatprep.subr.bf16.mxu0 %v9074_v11  ;;  %v9089_v23 = vld [vmem:[#allocation3 + $0xb4] ss:$8 sps:$4 sm:$0xff]   ;;  %v9088_v25 = vld [vmem:[#allocation3 + $0x30] ss:$8 sps:$4 sm:$0xff]   ;;  %v9095_v26 = vld [vmem:[#allocation3 + $0xc4] ss:$8 sps:$4 sm:$0xff]  }
  0x2e   :  { %486 = vrot.lane.b32.xlu0 %v867_v3, %s10184_s18  ;;  %387 = vmatprep.subr.bf16.mxu1 %v9083_v18  ;;  %v9092_v27 = vld [vmem:[#allocation3 + $0x44] ss:$8 sps:$4 sm:$0xff]   ;;  %v9097_v28 = vld [vmem:[#allocation3 + $0xc0] ss:$8 sps:$4 sm:$0xff]   ;;  %v9101_v30 = vld [vmem:[#allocation3 + $0xd4] ss:$8 sps:$4 sm:$0xff]  }
  0x2f   :  { %v9094_v29 = vld [vmem:[#allocation3 + $0x40] ss:$8 sps:$4 sm:$0xff]   ;;  %v9098_v31 = vld [vmem:[#allocation3 + $0x54] ss:$8 sps:$4 sm:$0xff]   ;;  %v9100_v32 = vld [vmem:[#allocation3 + $0x50] ss:$8 sps:$4 sm:$0xff]  }
  0x30   :  { %194 = vmatpush1.bf16.msra.mxu0 %v9076_v12  ;;  %388 = vmatpush1.bf16.msra.mxu1 %v9085_v19  ;;  %v9103_v33 = vld [vmem:[#allocation3 + $0xd0] ss:$8 sps:$4 sm:$0xff]   ;;  %v9107_v34 = vld [vmem:[#allocation3 + $0xe4] ss:$8 sps:$4 sm:$0xff]   ;;  %v9106_v39 = vld [vmem:[#allocation3 + $0x60] ss:$8 sps:$4 sm:$0xff]  }
  0x31   :  { %689 = vrot.lane.b32.xlu1 %v867_v3, %s10185_s23  ;;  %195 = vmatprep.subr.bf16.mxu0 %v9080_v17  ;;  %v1676_v35 = vld [vmem:[%s11334_s0 + $0x20] sm:$0xff]  ;;  %v1678_v36 = vld [vmem:[%s11334_s0 + $0x58] sm:$0xff]  ;;  %s10189_s8 = smov 48   ;;  %v2083_v1 = vld [vmem:[%s11334_s0 + $0x28] sm:$0xff]  ;;  %s10190_s13 = smov 24   ;;  %vm488_vm2 = vcmask 588800  }
  0x32   :  { %687 = vrot.lane.b32.xlu0 %v10281_v7, %s10185_s23  ;;  %389 = vmatprep.subr.bf16.mxu1 %v9089_v23  ;;  %v9104_v37 = vld [vmem:[#allocation3 + $0x64] ss:$8 sps:$4 sm:$0xff]   ;;  %v10307_v38 = vpack.c.bf16 %v1678_v36, %v1676_v35  ;;  %v9109_v40 = vld [vmem:[#allocation3 + $0xe0] ss:$8 sps:$4 sm:$0xff]   ;;  %v9113_v41 = vld [vmem:[#allocation3 + $0xf4] ss:$8 sps:$4 sm:$0xff]  }
  0x33   :  { %v9110_v42 = vld [vmem:[#allocation3 + $0x74] ss:$8 sps:$4 sm:$0xff]   ;;  %v9112_v43 = vld [vmem:[#allocation3 + $0x70] ss:$8 sps:$4 sm:$0xff]   ;;  %v9119_v46 = vld [vmem:[#allocation3 + $0x104] ss:$8 sps:$4 sm:$0xff]  }
  0x34   :  { %196 = vmatpush1.bf16.msra.mxu0 %v9082_v20  ;;  %390 = vmatpush1.bf16.msra.mxu1 %v9091_v24  ;;  %v9115_v44 = vld [vmem:[#allocation3 + $0xf0] ss:$8 sps:$4 sm:$0xff]   ;;  %v9116_v45 = vld [vmem:[#allocation3 + $0x84] ss:$8 sps:$4 sm:$0x3f]   ;;  %s10191_s14 = smov 80  }
  0x35   :  { %1298 = vrot.lane.b32.xlu1 %v10295_v21, %s10186_s24  ;;  %197 = vmatprep.subr.bf16.mxu0 %v9086_v22  ;;  %v9118_v47 = vld [vmem:[#allocation3 + $0x80] ss:$8 sps:$4 sm:$0x3f]   ;;  %v9122_v49 = vld [vmem:[#allocation3 + $0x114] ss:$8 sps:$4 sm:$0x3f]  }
  0x36   :  { %1296 = vrot.lane.b32.xlu0 %v10283_v8, %s10186_s24  ;;  %391 = vmatprep.subr.bf16.mxu1 %v9095_v26  ;;  %v9121_v48 = vld [vmem:[#allocation3 + $0x100] ss:$8 sps:$4 sm:$0xff]   ;;  %v9127_v50 = vld [vmem:[#allocation3 + $0x110] ss:$8 sps:$4 sm:$0x3f]   ;;  %v186_v51 = vsel %vm184_vm1, %v9118_v47, 0 }
  0x37   :  { %v9126_v52 = vld [vmem:[#allocation3 + $0x124] ss:$8 sps:$4 sm:$0xff]   ;;  %v9124_v53 = vld [vmem:[#allocation3 + $0x120] ss:$8 sps:$4 sm:$0xff]   ;;  %v380_v54 = vsel %vm184_vm1, %v9127_v50, 0  ;;  %vm691_vm3 = vcmask 130048  }
  0x38   :  { %198 = vmatpush1.bf16.msra.mxu0 %v9088_v25  ;;  %392 = vmatpush1.bf16.msra.mxu1 %v9097_v28  ;;  %v9133_v55 = vld [vmem:[#allocation3 + $0x1b4] ss:$8 sps:$4 sm:$0xff]   ;;  %v9128_v57 = vld [vmem:[#allocation3 + $0x130] ss:$8 sps:$4 sm:$0xff]   ;;  %v9139_v59 = vld [vmem:[#allocation3 + $0x1c4] ss:$8 sps:$4 sm:$0xff]  }
  0x39   :  { %1095 = vrot.lane.b32.xlu1 %v10283_v8, %s10187_s25  ;;  %199 = vmatprep.subr.bf16.mxu0 %v9092_v27  ;;  %v9130_v56 = vld [vmem:[#allocation3 + $0x134] ss:$8 sps:$4 sm:$0xff]   ;;  %v9131_v58 = vld [vmem:[#allocation3 + $0x1b0] ss:$8 sps:$4 sm:$0xff]   ;;  %v9136_v60 = vld [vmem:[#allocation3 + $0x144] ss:$8 sps:$4 sm:$0xff]  }
  0x3a   :  { %1093 = vrot.lane.b32.xlu0 %v867_v3, %s10187_s25  ;;  %393 = vmatprep.subr.bf16.mxu1 %v9101_v30  ;;  %v9134_v61 = vld [vmem:[#allocation3 + $0x140] ss:$8 sps:$4 sm:$0xff]   ;;  %v9145_v63 = vld [vmem:[#allocation3 + $0x1d4] ss:$8 sps:$4 sm:$0xff]   ;;  %v9143_v3 = vld [vmem:[#allocation3 + $0x1d0] ss:$8 sps:$4 sm:$0xff]  }
  0x3b   :  { %v9137_v62 = vld [vmem:[#allocation3 + $0x1c0] ss:$8 sps:$4 sm:$0xff]   ;;  %v9142_v0 = vld [vmem:[#allocation3 + $0x154] ss:$8 sps:$4 sm:$0xff]   ;;  %v9140_v5 = vld [vmem:[#allocation3 + $0x150] ss:$8 sps:$4 sm:$0xff]  }
  0x3c   :  { %200 = vmatpush1.bf16.msra.mxu0 %v9094_v29  ;;  %394 = vmatpush1.bf16.msra.mxu1 %v9103_v33  ;;  %v2086_v2 = vld [vmem:[%s11334_s0 + $0x60] sm:$0xff]  ;;  %v9157_v10 = vld [vmem:[#allocation3 + $0x1f4] ss:$8 sps:$4 sm:$0xff]   ;;  %v9152_v12 = vld [vmem:[#allocation3 + $0x170] ss:$8 sps:$4 sm:$0xff]   ;;  %vm2118_vm4 = vcmask 64512  }
  0x3d   :  { %201 = vmatprep.subr.bf16.mxu0 %v9098_v31  ;;  %1704 = vrot.lane.b32.xlu1 %v10307_v38, %s10188_s30  ;;  %v2089_v4 = vpack.c.bf16 %v2086_v2, %v2083_v1  ;;  %v9151_v6 = vld [vmem:[#allocation3 + $0x1e4] ss:$8 sps:$4 sm:$0xff]   ;;  %v9149_v9 = vld [vmem:[#allocation3 + $0x1e0] ss:$8 sps:$4 sm:$0xff]   ;;  %v9154_v11 = vld [vmem:[#allocation3 + $0x174] ss:$8 sps:$4 sm:$0xff]  }
  0x3e   :  { %1702 = vrot.lane.b32.xlu0 %v10295_v21, %s10188_s30  ;;  %395 = vmatprep.subr.bf16.mxu1 %v9107_v34  ;;  %v9155_v13 = vld [vmem:[#allocation3 + $0x1f0] ss:$8 sps:$4 sm:$0xff]   ;;  %v9163_v14 = vld [vmem:[#allocation3 + $0x204] ss:$8 sps:$4 sm:$0xff]   ;;  %v9158_v16 = vld [vmem:[#allocation3 + $0x180] ss:$8 sps:$4 sm:$0xff]  }
  0x3f   :  { %v9160_v15 = vld [vmem:[#allocation3 + $0x184] ss:$8 sps:$4 sm:$0xff]   ;;  %v9161_v17 = vld [vmem:[#allocation3 + $0x200] ss:$8 sps:$4 sm:$0xff]   ;;  %v9169_v18 = vld [vmem:[#allocation3 + $0x214] ss:$8 sps:$4 sm:$0xff]  }
  0x40   :  { %202 = vmatpush1.bf16.msra.mxu0 %v9100_v32  ;;  %396 = vmatpush1.bf16.msra.mxu1 %v9109_v40  ;;  %v9166_v19 = vld [vmem:[#allocation3 + $0x194] ss:$8 sps:$4 sm:$0xff]   ;;  %v9164_v20 = vld [vmem:[#allocation3 + $0x190] ss:$8 sps:$4 sm:$0xff]   ;;  %v9174_v23 = vld [vmem:[#allocation3 + $0x224] ss:$8 sps:$4 sm:$0xff]  }
  0x41   :  { %203 = vmatprep.subr.bf16.mxu0 %v9104_v37  ;;  %1501 = vrot.lane.b32.xlu1 %v10295_v21, %s10189_s8  ;;  %v9170_v22 = vld [vmem:[#allocation3 + $0x1a4] ss:$8 sps:$4 sm:$0x3f]   ;;  %v9175_v24 = vld [vmem:[#allocation3 + $0x1a0] ss:$8 sps:$4 sm:$0x3f]  }
  0x42   :  { %1499 = vrot.lane.b32.xlu0 %v10283_v8, %s10189_s8  ;;  %397 = vmatprep.subr.bf16.mxu1 %v9113_v41  ;;  %v9146_v8 = vld [vmem:[#allocation3 + $0x160] ss:$8 sps:$4 sm:$0xff]   ;;  %v9176_v26 = vld [vmem:[#allocation3 + $0x234] ss:$8 sps:$4 sm:$0x3f]   ;;  %v583_v28 = vsel %vm184_vm1, %v9175_v24, 0 }
  0x43   :  { %v9172_v25 = vld [vmem:[#allocation3 + $0x220] ss:$8 sps:$4 sm:$0xff]   ;;  %v9181_v27 = vld [vmem:[#allocation3 + $0x230] ss:$8 sps:$4 sm:$0x3f]   ;;  %vm894_vm5 = vcmask 719872  }
  0x44   :  { %204 = vmatpush1.bf16.msra.mxu0 %v9106_v39  ;;  %398 = vmatpush1.bf16.msra.mxu1 %v9115_v44  ;;  %v9180_v29 = vld [vmem:[#allocation3 + $0x244] ss:$8 sps:$4 sm:$0xff]   ;;  %v786_v30 = vsel %vm184_vm1, %v9181_v27, 0  ;;  %v9187_v31 = vld [vmem:[#allocation3 + $0x2d4] ss:$8 sps:$4 sm:$0xff]   ;;  %vm1097_vm6 = vcmask 261120  }
  0x45   :  { %205 = vmatprep.subr.bf16.mxu0 %v9110_v42  ;;  %399 = vmatprep.subr.bf16.mxu1 %v9119_v46  ;;  %v2698_v32 = vld [vmem:[%s11334_s0 + $0x30] sm:$0xff]  ;;  %v2700_v33 = vld [vmem:[%s11334_s0 + $0x68] sm:$0xff]  ;;  %vm1300_vm7 = vcmask 850944   ;;  %vm1503_vm8 = vcmask 392192   ;;  %vm1706_vm9 = vcmask 982016   ;;  %vm1909_vm10 = vcmask 523264  }
  0x46   :  { %2114 = vrot.lane.b32.xlu0 %v10307_v38, %s10179_s12  ;;  %2116 = vrot.lane.b32.xlu1 %v2089_v4, %s10179_s12  ;;  %v2702_v34 = vpack.c.bf16 %v2700_v33, %v2698_v32  ;;  %v9184_v40 = vld [vmem:[#allocation3 + $0x254] ss:$8 sps:$4 sm:$0xff]   ;;  %v9185_v44 = vld [vmem:[#allocation3 + $0x2d0] ss:$8 sps:$4 sm:$0xff]   ;;  %v9190_v46 = vld [vmem:[#allocation3 + $0x264] ss:$8 sps:$4 sm:$0xff]  }
  0x47   :  { %v9193_v47 = vld [vmem:[#allocation3 + $0x2e4] ss:$8 sps:$4 sm:$0xff]   ;;  %v9191_v50 = vld [vmem:[#allocation3 + $0x2e0] ss:$8 sps:$4 sm:$0xff]   ;;  %v9206_v2 = vld [vmem:[#allocation3 + $0x290] ss:$8 sps:$4 sm:$0xff]  }
  0x48   :  { %206 = vmatpush1.bf16.msra.mxu0 %v9112_v43  ;;  %400 = vmatpush1.bf16.msra.mxu1 %v9121_v48  ;;  %v9182_v43 = vld [vmem:[#allocation3 + $0x250] ss:$8 sps:$4 sm:$0xff]   ;;  %v9232_v24 = vld [vmem:[#allocation3 + $0x360] ss:$8 sps:$4 sm:$0xff]   ;;  %v9241_v27 = vld [vmem:[#allocation3 + $0x3f4] ss:$8 sps:$4 sm:$0xff]  }
  0x49   :  { %8028 = vmatprep.subr.msk.bf16.mxu0 %vm184_vm1, %v9116_v45  ;;  %8052 = vmatprep.subr.msk.bf16.mxu1 %vm184_vm1, %v9122_v49  ;;  %v9188_v49 = vld [vmem:[#allocation3 + $0x260] ss:$8 sps:$4 sm:$0xff]   ;;  %v9239_v32 = vld [vmem:[#allocation3 + $0x3f0] ss:$8 sps:$4 sm:$0xff]   ;;  %v9244_v33 = vld [vmem:[#allocation3 + $0x384] ss:$8 sps:$4 sm:$0xff]  }
  0x4a   :  { %2112 = vrot.lane.b32.xlu0 %v10295_v21, %s10179_s12  ;;  %1905 = vrot.lane.b32.xlu1 %v10295_v21, %s10181_s1  ;;  %v9167_v21 = vld [vmem:[#allocation3 + $0x210] ss:$8 sps:$4 sm:$0xff]   ;;  %s10192_s12 = smov 124   ;;  %vm2322_vm11 = vcmask 654336   ;;  %vm261_vm12 = vcmask 326656   ;;  %vm2525_vm13 = vcmask 195584  }
  0x4b   :  { %vm2728_vm14 = vcmask 1014784   ;;  %vm3023_vm15 = vcmask 1043456  }
  0x4c   :  { %208 = vmatpush1.bf16.msra.mxu0 %v186_v51  ;;  %402 = vmatpush1.bf16.msra.mxu1 %v380_v54 }
  0x4d   :  { %588 = vmatprep.subr.bf16.mxu0 %v9126_v52  ;;  %791 = vmatprep.subr.bf16.mxu1 %v9133_v55  ;;  %v9196_v52 = vld [vmem:[#allocation3 + $0x274] ss:$8 sps:$4 sm:$0xff]   ;;  %v9194_v55 = vld [vmem:[#allocation3 + $0x270] ss:$8 sps:$4 sm:$0xff]  }
  0x4e   :  { %1907 = vrot.lane.b32.xlu0 %v10307_v38, %s10181_s1  ;;  %2521 = vrot.lane.b32.xlu1 %v10307_v38, %s10190_s13 }
  0x4f   :  { %224 = vmatmul.mubr.bf16.vlgmr.msra.gmra.mrb[0].mxu0 %v10281_v7  ;;  %418 = vmatmul.mubr.bf16.vlgmr.msra.gmra.mrb[0].mxu1 %v10281_v7  ;;  %v9148_v7 = vld [vmem:[#allocation3 + $0x164] ss:$8 sps:$4 sm:$0xff]  }
  0x50   :  { %589 = vmatpush1.bf16.msra.mxu0 %v9124_v53  ;;  %792 = vmatpush1.bf16.msra.mxu1 %v9131_v58  ;;  %v9199_v53 = vld [vmem:[#allocation3 + $0x2f4] ss:$8 sps:$4 sm:$0xff]   ;;  %v9202_v58 = vld [vmem:[#allocation3 + $0x284] ss:$8 sps:$4 sm:$0xff]  }
  0x51   :  { %590 = vmatprep.subr.bf16.mxu0 %v9130_v56  ;;  %793 = vmatprep.subr.bf16.mxu1 %v9139_v59  ;;  %v9197_v56 = vld [vmem:[#allocation3 + $0x2f0] ss:$8 sps:$4 sm:$0xff]   ;;  %v9205_v59 = vld [vmem:[#allocation3 + $0x304] ss:$8 sps:$4 sm:$0xff]  }
  0x52   :  { %2523 = vrot.lane.b32.xlu0 %v2089_v4, %s10190_s13  ;;  %2318 = vrot.lane.b32.xlu1 %v10307_v38, %s10191_s14  ;;  %v9178_v38 = vld [vmem:[#allocation3 + $0x240] ss:$8 sps:$4 sm:$0xff]  }
  0x54   :  { %591 = vmatpush1.bf16.msra.mxu0 %v9128_v57  ;;  %794 = vmatpush1.bf16.msra.mxu1 %v9137_v62  ;;  %v9203_v62 = vld [vmem:[#allocation3 + $0x300] ss:$8 sps:$4 sm:$0xff]  }
  0x55   :  { %592 = vmatprep.subr.bf16.mxu0 %v9136_v60  ;;  %795 = vmatprep.subr.bf16.mxu1 %v9145_v63  ;;  %v9208_v63 = vld [vmem:[#allocation3 + $0x294] ss:$8 sps:$4 sm:$0xff]  }
  0x56   :  { %2320 = vrot.lane.b32.xlu0 %v2089_v4, %s10191_s14  ;;  %2724 = vrot.lane.b32.xlu1 %v2089_v4, %s10192_s12  ;;  %v9214_v4 = vld [vmem:[#allocation3 + $0x2a4] ss:$8 sps:$4 sm:$0xff]  }
  0x58   :  { %593 = vmatpush1.bf16.msra.mxu0 %v9134_v61  ;;  %796 = vmatpush1.bf16.msra.mxu1 %v9143_v3  ;;  %v9200_v61 = vld [vmem:[#allocation3 + $0x280] ss:$8 sps:$4 sm:$0xff]   ;;  %v9209_v3 = vld [vmem:[#allocation3 + $0x310] ss:$8 sps:$4 sm:$0xff]  }
  0x59   :  { %594 = vmatprep.subr.bf16.mxu0 %v9142_v0  ;;  %797 = vmatprep.subr.bf16.mxu1 %v9151_v6  ;;  %v9211_v0 = vld [vmem:[#allocation3 + $0x314] ss:$8 sps:$4 sm:$0xff]  }
  0x5a   :  { %2726 = vrot.lane.b32.xlu0 %v2702_v34, %s10192_s12  ;;  %v9247_v34 = vld [vmem:[#allocation3 + $0x404] ss:$8 sps:$4 sm:$0xff]  }
  0x5c   :  { %595 = vmatpush1.bf16.msra.mxu0 %v9140_v5  ;;  %798 = vmatpush1.bf16.msra.mxu1 %v9149_v9  ;;  %v9217_v5 = vld [vmem:[#allocation3 + $0x324] ss:$8 sps:$4 sm:$0xff]   ;;  %v9220_v9 = vld [vmem:[#allocation3 + $0x2b4] ss:$8 sps:$4 sm:$0xff]  }
  0x5d   :  { %596 = vmatprep.subr.bf16.mxu0 %v9148_v7  ;;  %799 = vmatprep.subr.bf16.mxu1 %v9157_v10  ;;  %v9212_v7 = vld [vmem:[#allocation3 + $0x2a0] ss:$8 sps:$4 sm:$0xff]   ;;  %v9223_v10 = vld [vmem:[#allocation3 + $0x334] ss:$8 sps:$4 sm:$0xff]  }
  0x60   :  { %597 = vmatpush1.bf16.msra.mxu0 %v9146_v8  ;;  %800 = vmatpush1.bf16.msra.mxu1 %v9155_v13  ;;  %v9215_v8 = vld [vmem:[#allocation3 + $0x320] ss:$8 sps:$4 sm:$0xff]   ;;  %v9221_v13 = vld [vmem:[#allocation3 + $0x330] ss:$8 sps:$4 sm:$0xff]  }
  0x61   :  { %598 = vmatprep.subr.bf16.mxu0 %v9154_v11  ;;  %801 = vmatprep.subr.bf16.mxu1 %v9163_v14  ;;  %v9229_v14 = vld [vmem:[#allocation3 + $0x2c0] ss:$8 sps:$4 sm:$0x3f]  }
  0x64   :  { %599 = vmatpush1.bf16.msra.mxu0 %v9152_v12  ;;  %802 = vmatpush1.bf16.msra.mxu1 %v9161_v17  ;;  %v9218_v12 = vld [vmem:[#allocation3 + $0x2b0] ss:$8 sps:$4 sm:$0xff]  }
  0x65   :  { %600 = vmatprep.subr.bf16.mxu0 %v9160_v15  ;;  %803 = vmatprep.subr.bf16.mxu1 %v9169_v18  ;;  %v9224_v15 = vld [vmem:[#allocation3 + $0x2c4] ss:$8 sps:$4 sm:$0x3f]  }
  0x68   :  { %601 = vmatpush1.bf16.msra.mxu0 %v9158_v16  ;;  %804 = vmatpush1.bf16.msra.mxu1 %v9167_v21  ;;  %v9228_v16 = vld [vmem:[#allocation3 + $0x344] ss:$8 sps:$4 sm:$0xff]   ;;  %v9230_v21 = vld [vmem:[#allocation3 + $0x354] ss:$8 sps:$4 sm:$0x3f]  }
  0x69   :  { %602 = vmatprep.subr.bf16.mxu0 %v9166_v19  ;;  %805 = vmatprep.subr.bf16.mxu1 %v9174_v23  ;;  %v9226_v19 = vld [vmem:[#allocation3 + $0x340] ss:$8 sps:$4 sm:$0xff]   ;;  %v9235_v23 = vld [vmem:[#allocation3 + $0x350] ss:$8 sps:$4 sm:$0x3f]  }
  0x6c   :  { %603 = vmatpush1.bf16.msra.mxu0 %v9164_v20  ;;  %806 = vmatpush1.bf16.msra.mxu1 %v9172_v25  ;;  %v989_v20 = vsel %vm184_vm1, %v9229_v14, 0  ;;  %v1192_v25 = vsel %vm184_vm1, %v9235_v23, 0  ;;  %v9298_v14 = vld [vmem:[#allocation3 + $0x4a4] ss:$8 sps:$4 sm:$0xff]  }
  0x6d   :  { %8076 = vmatprep.subr.msk.bf16.mxu0 %vm184_vm1, %v9170_v22  ;;  %8100 = vmatprep.subr.msk.bf16.mxu1 %vm184_vm1, %v9176_v26  ;;  %v9234_v22 = vld [vmem:[#allocation3 + $0x364] ss:$8 sps:$4 sm:$0xff]   ;;  %v9238_v26 = vld [vmem:[#allocation3 + $0x374] ss:$8 sps:$4 sm:$0xff]  }
  0x6e   :  { %v9313_v23 = vld [vmem:[#allocation3 + $0x544] ss:$8 sps:$4 sm:$0xff]  }
  0x70   :  { %605 = vmatpush1.bf16.msra.mxu0 %v583_v28  ;;  %808 = vmatpush1.bf16.msra.mxu1 %v786_v30 }
  0x71   :  { %994 = vmatprep.subr.bf16.mxu0 %v9180_v29  ;;  %1197 = vmatprep.subr.bf16.mxu1 %v9187_v31  ;;  %v9236_v31 = vld [vmem:[#allocation3 + $0x370] ss:$8 sps:$4 sm:$0xff]  }
  0x9b   :  { %v10346_v35 = vpop.permute.xlu1 %890 }
  0x9c   :  { %v485_v36 = vpop.permute.xlu0 %484 }
  0x9f   :  { %v10348_v37 = vpop.permute.xlu1 %892 }
  0xa0   :  { %v487_v39 = vpop.permute.xlu0 %486  ;;  %v895_v29 = vsel %vm894_vm5, %v10346_v35, %v10348_v37  ;;  %v9242_v35 = vld [vmem:[#allocation3 + $0x380] ss:$8 sps:$4 sm:$0xff]  }
  0xa1   :  { %v489_v41 = vsel %vm488_vm2, %v485_v36, %v487_v39  ;;  %8077 = vmatprep.mubr.msk.bf16.mxu0 %vm180_vm0, %v487_v39  ;;  %v9253_v39 = vld [vmem:[#allocation3 + $0x414] ss:$8 sps:$4 sm:$0xff]   ;;  %vm3381_vm2 = vcmask 687104  }
  0xa2   :  { %621 = vmatmul.mubr.bf16.vlgmr.msra.gmra.mrb[4].mxu0 %v489_v41  ;;  %v9251_v41 = vld [vmem:[#allocation3 + $0x410] ss:$8 sps:$4 sm:$0xff]  }
  0xa3   :  { %995 = vmatpush1.bf16.msra.mxu0 %v9178_v38  ;;  %v690_v42 = vpop.permute.xlu1 %689  ;;  %8125 = vmatprep.mubr.msk.bf16.mxu0 %vm180_vm0, %v10348_v37  ;;  %v9245_v37 = vld [vmem:[#allocation3 + $0x400] ss:$8 sps:$4 sm:$0xff]   ;;  %v9250_v38 = vld [vmem:[#allocation3 + $0x394] ss:$8 sps:$4 sm:$0xff]  }
  0xa4   :  { %v688_v45 = vpop.permute.xlu0 %687  ;;  %8101 = vmatprep.mubr.msk.bf16.mxu1 %vm180_vm0, %v690_v42  ;;  %996 = vmatprep.subr.bf16.mxu0 %v9184_v40  ;;  %v9248_v40 = vld [vmem:[#allocation3 + $0x390] ss:$8 sps:$4 sm:$0xff]  }
  0xa5   :  { %v692_v48 = vsel %vm691_vm3, %v688_v45, %v690_v42  ;;  %v9256_v42 = vld [vmem:[#allocation3 + $0x3a4] ss:$8 sps:$4 sm:$0xff]   ;;  %v9257_v45 = vld [vmem:[#allocation3 + $0x420] ss:$8 sps:$4 sm:$0xff]  }
  0xa6   :  { %824 = vmatmul.mubr.bf16.vlgmr.msra.gmra.mrb[4].mxu1 %v692_v48  ;;  %v9260_v48 = vld [vmem:[#allocation3 + $0x3b0] ss:$8 sps:$4 sm:$0xff]  }
  0xa7   :  { %997 = vmatpush1.bf16.msra.mxu0 %v9182_v43  ;;  %1198 = vmatpush1.bf16.msra.mxu1 %v9185_v44  ;;  %v10354_v51 = vpop.permute.xlu1 %1298  ;;  %v9259_v43 = vld [vmem:[#allocation3 + $0x424] ss:$8 sps:$4 sm:$0xff]   ;;  %v9254_v44 = vld [vmem:[#allocation3 + $0x3a0] ss:$8 sps:$4 sm:$0xff]  }
  0xa8   :  { %998 = vmatprep.subr.bf16.mxu0 %v9190_v46  ;;  %1199 = vmatprep.subr.bf16.mxu1 %v9193_v47  ;;  %v10356_v54 = vpop.permute.xlu0 %1296  ;;  %v9262_v46 = vld [vmem:[#allocation3 + $0x3b4] ss:$8 sps:$4 sm:$0xff]  }
  0xa9   :  { %v9265_v47 = vld [vmem:[#allocation3 + $0x434] ss:$8 sps:$4 sm:$0xff]  }
  0xab   :  { %999 = vmatpush1.bf16.msra.mxu0 %v9188_v49  ;;  %1200 = vmatpush1.bf16.msra.mxu1 %v9191_v50  ;;  %v10358_v57 = vpop.permute.xlu1 %1095  ;;  %v9263_v49 = vld [vmem:[#allocation3 + $0x430] ss:$8 sps:$4 sm:$0xff]   ;;  %v9268_v50 = vld [vmem:[#allocation3 + $0x3c4] ss:$8 sps:$4 sm:$0xff]  }
  0xac   :  { %1000 = vmatprep.subr.bf16.mxu0 %v9196_v52  ;;  %1201 = vmatprep.subr.bf16.mxu1 %v9199_v53  ;;  %v10360_v60 = vpop.permute.xlu0 %1093  ;;  %v9271_v52 = vld [vmem:[#allocation3 + $0x444] ss:$8 sps:$4 sm:$0xff]   ;;  %v9266_v53 = vld [vmem:[#allocation3 + $0x3c0] ss:$8 sps:$4 sm:$0xff]  }
  0xad   :  { %8149 = vmatprep.mubr.msk.bf16.mxu1 %vm180_vm0, %v10358_v57  ;;  %v1098_v30 = vsel %vm1097_vm6, %v10360_v60, %v10358_v57  ;;  %v9283_v57 = vld [vmem:[#allocation3 + $0x3e0] ss:$8 sps:$4 sm:$0x3f]   ;;  %v9275_v60 = vld [vmem:[#allocation3 + $0x450] ss:$8 sps:$4 sm:$0xff]  }
  0xaf   :  { %1001 = vmatpush1.bf16.msra.mxu0 %v9194_v55  ;;  %1202 = vmatpush1.bf16.msra.mxu1 %v9197_v56  ;;  %v10378_v28 = vpop.permute.xlu1 %1704  ;;  %v9269_v55 = vld [vmem:[#allocation3 + $0x440] ss:$8 sps:$4 sm:$0xff]   ;;  %v9274_v56 = vld [vmem:[#allocation3 + $0x3d4] ss:$8 sps:$4 sm:$0xff]  }
  0xb0   :  { %1002 = vmatprep.subr.bf16.mxu0 %v9202_v58  ;;  %1203 = vmatprep.subr.bf16.mxu1 %v9205_v59  ;;  %v10364_v1 = vpop.permute.xlu0 %1702  ;;  %v9277_v58 = vld [vmem:[#allocation3 + $0x454] ss:$8 sps:$4 sm:$0xff]   ;;  %v9272_v59 = vld [vmem:[#allocation3 + $0x3d0] ss:$8 sps:$4 sm:$0xff]  }
  0xb3   :  { %1003 = vmatpush1.bf16.msra.mxu0 %v9200_v61  ;;  %1204 = vmatpush1.bf16.msra.mxu1 %v9203_v62  ;;  %v10386_v36 = vpop.permute.xlu1 %1501  ;;  %v9278_v61 = vld [vmem:[#allocation3 + $0x3e4] ss:$8 sps:$4 sm:$0x3f]   ;;  %v9289_v62 = vld [vmem:[#allocation3 + $0x470] ss:$8 sps:$4 sm:$0x3f]  }
  0xb4   :  { %1004 = vmatprep.subr.bf16.mxu0 %v9208_v63  ;;  %1205 = vmatprep.subr.bf16.mxu1 %v9211_v0  ;;  %v10366_v6 = vpop.permute.xlu0 %1499  ;;  %v9282_v63 = vld [vmem:[#allocation3 + $0x464] ss:$8 sps:$4 sm:$0xff]   ;;  %v9280_v0 = vld [vmem:[#allocation3 + $0x460] ss:$8 sps:$4 sm:$0xff]  }
  0xb7   :  { %1005 = vmatpush1.bf16.msra.mxu0 %v9206_v2  ;;  %1206 = vmatpush1.bf16.msra.mxu1 %v9209_v3  ;;  %v1395_v2 = vsel %vm184_vm1, %v9283_v57, 0  ;;  %v9284_v3 = vld [vmem:[#allocation3 + $0x474] ss:$8 sps:$4 sm:$0x3f]   ;;  %v9344_v57 = vld [vmem:[#allocation3 + $0x5b0] ss:$8 sps:$4 sm:$0xff]  }
  0xb8   :  { %1006 = vmatprep.subr.bf16.mxu0 %v9214_v4  ;;  %1207 = vmatprep.subr.bf16.mxu1 %v9217_v5  ;;  %v10368_v11 = vpop.permute.xlu0 %2114  ;;  %v9288_v4 = vld [vmem:[#allocation3 + $0x484] ss:$8 sps:$4 sm:$0xff]   ;;  %v9286_v5 = vld [vmem:[#allocation3 + $0x480] ss:$8 sps:$4 sm:$0xff]  }
  0xbb   :  { %1007 = vmatpush1.bf16.msra.mxu0 %v9212_v7  ;;  %1208 = vmatpush1.bf16.msra.mxu1 %v9215_v8  ;;  %v1598_v7 = vsel %vm184_vm1, %v9289_v62, 0  ;;  %v9292_v8 = vld [vmem:[#allocation3 + $0x494] ss:$8 sps:$4 sm:$0xff]   ;;  %v9353_v62 = vld [vmem:[#allocation3 + $0x640] ss:$8 sps:$4 sm:$0xff]  }
  0xbc   :  { %1008 = vmatprep.subr.bf16.mxu0 %v9220_v9  ;;  %1209 = vmatprep.subr.bf16.mxu1 %v9223_v10  ;;  %v2113_v17 = vpop.permute.xlu0 %2112  ;;  %v1301_v9 = vsel %vm1300_vm7, %v10356_v54, %v10354_v51  ;;  %v9295_v10 = vld [vmem:[#allocation3 + $0x514] ss:$8 sps:$4 sm:$0xff]  }
  0xbd   :  { %v10372_v18 = vsel %vm2118_vm4, %v2113_v17, %v10368_v11  ;;  %v9296_v17 = vld [vmem:[#allocation3 + $0x4a0] ss:$8 sps:$4 sm:$0xff]   ;;  %v9304_v54 = vld [vmem:[#allocation3 + $0x4b4] ss:$8 sps:$4 sm:$0xff]  }
  0xbf   :  { %1009 = vmatpush1.bf16.msra.mxu0 %v9218_v12  ;;  %1210 = vmatpush1.bf16.msra.mxu1 %v9221_v13  ;;  %v9290_v12 = vld [vmem:[#allocation3 + $0x490] ss:$8 sps:$4 sm:$0xff]  }
  0xc0   :  { %8124 = vmatprep.subr.msk.bf16.mxu0 %vm184_vm1, %v9224_v15  ;;  %1211 = vmatprep.subr.bf16.mxu1 %v9228_v16  ;;  %v9293_v13 = vld [vmem:[#allocation3 + $0x510] ss:$8 sps:$4 sm:$0xff]   ;;  %v1504_v15 = vsel %vm1503_vm8, %v10366_v6, %v10386_v36  ;;  %v9301_v16 = vld [vmem:[#allocation3 + $0x524] ss:$8 sps:$4 sm:$0xff]  }
  0xc1   :  { %v9310_v6 = vld [vmem:[#allocation3 + $0x4c4] ss:$8 sps:$4 sm:$0xff]  }
  0xc3   :  { %1011 = vmatpush1.bf16.msra.mxu0 %v989_v20  ;;  %1212 = vmatpush1.bf16.msra.mxu1 %v9226_v19  ;;  %v10400_v19 = vpop.permute.xlu0 %1907  ;;  %v9307_v20 = vld [vmem:[#allocation3 + $0x534] ss:$8 sps:$4 sm:$0xff]  }
  0xc4   :  { %8148 = vmatprep.subr.msk.bf16.mxu1 %vm184_vm1, %v9230_v21  ;;  %1400 = vmatprep.subr.bf16.mxu0 %v9234_v22  ;;  %v9302_v21 = vld [vmem:[#allocation3 + $0x4b0] ss:$8 sps:$4 sm:$0xff]  }
  0xc5   :  { %v9305_v22 = vld [vmem:[#allocation3 + $0x530] ss:$8 sps:$4 sm:$0xff]  }
  0xc6   :  { %1027 = vmatmul.mubr.bf16.vlgmr.msra.gmra.mrb[8].mxu0 %v895_v29  ;;  %v9314_v29 = vld [vmem:[#allocation3 + $0x4d0] ss:$8 sps:$4 sm:$0xff]  }
  0xc7   :  { %1214 = vmatpush1.bf16.msra.mxu1 %v1192_v25  ;;  %1401 = vmatpush1.bf16.msra.mxu0 %v9232_v24  ;;  %v9308_v24 = vld [vmem:[#allocation3 + $0x4c0] ss:$8 sps:$4 sm:$0xff]  }
  0xc8   :  { %1402 = vmatprep.subr.bf16.mxu0 %v9238_v26  ;;  %1603 = vmatprep.subr.bf16.mxu1 %v9241_v27  ;;  %v9311_v25 = vld [vmem:[#allocation3 + $0x540] ss:$8 sps:$4 sm:$0xff]   ;;  %v9316_v26 = vld [vmem:[#allocation3 + $0x4d4] ss:$8 sps:$4 sm:$0xff]  }
  0xc9   :  { %8173 = vmatprep.mubr.msk.bf16.mxu0 %vm180_vm0, %v10354_v51  ;;  %v9299_v51 = vld [vmem:[#allocation3 + $0x520] ss:$8 sps:$4 sm:$0xff]   ;;  %v9319_v27 = vld [vmem:[#allocation3 + $0x554] ss:$8 sps:$4 sm:$0xff]  }
  0xca   :  { %1230 = vmatmul.mubr.bf16.vlgmr.msra.gmra.mrb[8].mxu1 %v1098_v30  ;;  %v9317_v30 = vld [vmem:[#allocation3 + $0x550] ss:$8 sps:$4 sm:$0xff]  }
  0xcb   :  { %1403 = vmatpush1.bf16.msra.mxu0 %v9236_v31  ;;  %1604 = vmatpush1.bf16.msra.mxu1 %v9239_v32  ;;  %v9322_v31 = vld [vmem:[#allocation3 + $0x4e4] ss:$8 sps:$4 sm:$0xff]  }
  0xcc   :  { %1404 = vmatprep.subr.bf16.mxu0 %v9244_v33  ;;  %1605 = vmatprep.subr.bf16.mxu1 %v9247_v34  ;;  %v9325_v32 = vld [vmem:[#allocation3 + $0x564] ss:$8 sps:$4 sm:$0xff]   ;;  %v9320_v33 = vld [vmem:[#allocation3 + $0x4e0] ss:$8 sps:$4 sm:$0xff]  }
  0xcd   :  { %8197 = vmatprep.mubr.msk.bf16.mxu1 %vm180_vm0, %v10386_v36  ;;  %v9323_v34 = vld [vmem:[#allocation3 + $0x560] ss:$8 sps:$4 sm:$0xff]   ;;  %v9328_v36 = vld [vmem:[#allocation3 + $0x4f4] ss:$8 sps:$4 sm:$0xff]  }
  0xcf   :  { %1405 = vmatpush1.bf16.msra.mxu0 %v9242_v35  ;;  %1606 = vmatpush1.bf16.msra.mxu1 %v9245_v37  ;;  %v9337_v35 = vld [vmem:[#allocation3 + $0x500] ss:$8 sps:$4 sm:$0x3f]   ;;  %v9331_v37 = vld [vmem:[#allocation3 + $0x574] ss:$8 sps:$4 sm:$0xff]  }
  0xd0   :  { %1406 = vmatprep.subr.bf16.mxu0 %v9250_v38  ;;  %1607 = vmatprep.subr.bf16.mxu1 %v9253_v39  ;;  %v9326_v38 = vld [vmem:[#allocation3 + $0x4f0] ss:$8 sps:$4 sm:$0xff]  }
  0xd1   :  { %v9329_v39 = vld [vmem:[#allocation3 + $0x570] ss:$8 sps:$4 sm:$0xff]  }
  0xd3   :  { %1407 = vmatpush1.bf16.msra.mxu0 %v9248_v40  ;;  %1608 = vmatpush1.bf16.msra.mxu1 %v9251_v41  ;;  %v9332_v40 = vld [vmem:[#allocation3 + $0x504] ss:$8 sps:$4 sm:$0x3f]  }
  0xd4   :  { %1408 = vmatprep.subr.bf16.mxu0 %v9256_v42  ;;  %1609 = vmatprep.subr.bf16.mxu1 %v9259_v43  ;;  %v9336_v41 = vld [vmem:[#allocation3 + $0x584] ss:$8 sps:$4 sm:$0xff]   ;;  %v9343_v42 = vld [vmem:[#allocation3 + $0x590] ss:$8 sps:$4 sm:$0x3f]  }
  0xd5   :  { %v9334_v43 = vld [vmem:[#allocation3 + $0x580] ss:$8 sps:$4 sm:$0xff]  }
  0xd7   :  { %1409 = vmatpush1.bf16.msra.mxu0 %v9254_v44  ;;  %1610 = vmatpush1.bf16.msra.mxu1 %v9257_v45  ;;  %v1801_v44 = vsel %vm184_vm1, %v9337_v35, 0  ;;  %v2117_v45 = vpop.permute.xlu1 %2116 }
  0xd8   :  { %1410 = vmatprep.subr.bf16.mxu0 %v9262_v46  ;;  %1611 = vmatprep.subr.bf16.mxu1 %v9265_v47  ;;  %v9338_v46 = vld [vmem:[#allocation3 + $0x594] ss:$8 sps:$4 sm:$0x3f]   ;;  %v9342_v47 = vld [vmem:[#allocation3 + $0x5a4] ss:$8 sps:$4 sm:$0xff]  }
  0xdb   :  { %1411 = vmatpush1.bf16.msra.mxu0 %v9260_v48  ;;  %1612 = vmatpush1.bf16.msra.mxu1 %v9263_v49  ;;  %v9340_v48 = vld [vmem:[#allocation3 + $0x5a0] ss:$8 sps:$4 sm:$0xff]   ;;  %v2004_v49 = vsel %vm184_vm1, %v9343_v42, 0 }
  0xdc   :  { %1412 = vmatprep.subr.bf16.mxu0 %v9268_v50  ;;  %1613 = vmatprep.subr.bf16.mxu1 %v9271_v52  ;;  %v9346_v50 = vld [vmem:[#allocation3 + $0x5b4] ss:$8 sps:$4 sm:$0xff]  }
  0xdd   :  { %v9349_v52 = vld [vmem:[#allocation3 + $0x634] ss:$8 sps:$4 sm:$0xff]  }
  0xdf   :  { %1413 = vmatpush1.bf16.msra.mxu0 %v9266_v53  ;;  %1614 = vmatpush1.bf16.msra.mxu1 %v9269_v55  ;;  %v1707_v53 = vsel %vm1706_vm9, %v10364_v1, %v10378_v28  ;;  %v1906_v55 = vpop.permute.xlu1 %1905 }
  0xe0   :  { %1414 = vmatprep.subr.bf16.mxu0 %v9274_v56  ;;  %1615 = vmatprep.subr.bf16.mxu1 %v9277_v58  ;;  %v10410_v56 = vpop.permute.xlu0 %2523  ;;  %v9347_v58 = vld [vmem:[#allocation3 + $0x630] ss:$8 sps:$4 sm:$0xff]   ;;  %v1910_v1 = vsel %vm1909_vm10, %v1906_v55, %v10400_v19 }
  0xe3   :  { %1415 = vmatpush1.bf16.msra.mxu0 %v9272_v59  ;;  %1616 = vmatpush1.bf16.msra.mxu1 %v9275_v60  ;;  %v2120_v59 = vsel %vm2118_vm4, %v10368_v11, %v2117_v45  ;;  %v9352_v60 = vld [vmem:[#allocation3 + $0x5c4] ss:$8 sps:$4 sm:$0xff]   ;;  %v9356_v11 = vld [vmem:[#allocation3 + $0x5d0] ss:$8 sps:$4 sm:$0xff]  }
  0xe4   :  { %8172 = vmatprep.subr.msk.bf16.mxu0 %vm184_vm1, %v9278_v61  ;;  %1617 = vmatprep.subr.bf16.mxu1 %v9282_v63  ;;  %v9355_v61 = vld [vmem:[#allocation3 + $0x644] ss:$8 sps:$4 sm:$0xff]   ;;  %v82_v63 = vlaneseq }
  0xe7   :  { %1417 = vmatpush1.bf16.msra.mxu0 %v1395_v2  ;;  %1618 = vmatpush1.bf16.msra.mxu1 %v9280_v0  ;;  %v9358_v0 = vld [vmem:[#allocation3 + $0x5d4] ss:$8 sps:$4 sm:$0xff]  }
  0xe8   :  { %8196 = vmatprep.subr.msk.bf16.mxu1 %vm184_vm1, %v9284_v3  ;;  %1806 = vmatprep.subr.bf16.mxu0 %v9288_v4  ;;  %v9361_v2 = vld [vmem:[#allocation3 + $0x654] ss:$8 sps:$4 sm:$0xff]   ;;  %v10417_v3 = vpop.permute.xlu0 %2320  ;;  %v9359_v4 = vld [vmem:[#allocation3 + $0x650] ss:$8 sps:$4 sm:$0xff]  }
  0xea   :  { %1433 = vmatmul.mubr.bf16.vlgmr.msra.gmra.mrb[12].mxu0 %v1301_v9  ;;  %v9362_v9 = vld [vmem:[#allocation3 + $0x5e0] ss:$8 sps:$4 sm:$0xff]  }
  0xeb   :  { %1620 = vmatpush1.bf16.msra.mxu1 %v1598_v7  ;;  %1807 = vmatpush1.bf16.msra.mxu0 %v9286_v5  ;;  %v83_v5 = vshrl.u32 %v82_v63, 7  ;;  %v9364_v7 = vld [vmem:[#allocation3 + $0x5e4] ss:$8 sps:$4 sm:$0xff]  }
  0xec   :  { %1808 = vmatprep.subr.bf16.mxu0 %v9292_v8  ;;  %2009 = vmatprep.subr.bf16.mxu1 %v9295_v10  ;;  %v9367_v8 = vld [vmem:[#allocation3 + $0x664] ss:$8 sps:$4 sm:$0xff]   ;;  %v9365_v10 = vld [vmem:[#allocation3 + $0x660] ss:$8 sps:$4 sm:$0xff]  }
  0xed   :  { %8221 = vmatprep.mubr.msk.bf16.mxu0 %vm180_vm0, %v10378_v28  ;;  %v9350_v28 = vld [vmem:[#allocation3 + $0x5c0] ss:$8 sps:$4 sm:$0xff]  }
  0xee   :  { %1636 = vmatmul.mubr.bf16.vlgmr.msra.gmra.mrb[12].mxu1 %v1504_v15  ;;  %v9373_v15 = vld [vmem:[#allocation3 + $0x674] ss:$8 sps:$4 sm:$0xff]  }
  0xef   :  { %1809 = vmatpush1.bf16.msra.mxu0 %v9290_v12  ;;  %2010 = vmatpush1.bf16.msra.mxu1 %v9293_v13  ;;  %v84_v12 = vsub.s32 0, %v83_v5  ;;  %v88_v13 = vsub.s32 1, %v83_v5  ;;  %v9398_v5 = vld [vmem:[#allocation3 + $0x6d0] ss:$8 sps:$4 sm:$0xff]  }
  0xf0   :  { %1810 = vmatprep.subr.bf16.mxu0 %v9298_v14  ;;  %2011 = vmatprep.subr.bf16.mxu1 %v9301_v16  ;;  %v9370_v14 = vld [vmem:[#allocation3 + $0x5f4] ss:$8 sps:$4 sm:$0xff]   ;;  %v55_v16 = vld [vmem:[%s11336_s2] sm:$0x3] }
  0xf1   :  { %8245 = vmatprep.mubr.msk.bf16.mxu1 %vm180_vm0, %v10400_v19  ;;  %v9379_v19 = vld [vmem:[#allocation3 + $0x684] ss:$8 sps:$4 sm:$0xff]  }
  0xf3   :  { %1811 = vmatpush1.bf16.msra.mxu0 %v9296_v17  ;;  %2012 = vmatpush1.bf16.msra.mxu1 %v9299_v51  ;;  %v9368_v17 = vld [vmem:[#allocation3 + $0x5f0] ss:$8 sps:$4 sm:$0xff]  }
  0xf4   :  { %1812 = vmatprep.subr.bf16.mxu0 %v9304_v54  ;;  %2013 = vmatprep.subr.bf16.mxu1 %v9307_v20  ;;  %v9371_v51 = vld [vmem:[#allocation3 + $0x670] ss:$8 sps:$4 sm:$0xff]   ;;  %v9376_v54 = vld [vmem:[#allocation3 + $0x604] ss:$8 sps:$4 sm:$0xff]   ;;  %v10424_v20 = vrot.slane %v55_v16, %v84_v12 }
  0xf7   :  { %1813 = vmatpush1.bf16.msra.mxu0 %v9302_v21  ;;  %2014 = vmatpush1.bf16.msra.mxu1 %v9305_v22  ;;  %v10426_v21 = vrot.slane %v55_v16, %v88_v13  ;;  %v9374_v22 = vld [vmem:[#allocation3 + $0x600] ss:$8 sps:$4 sm:$0xff]  }
  0xf8   :  { %1814 = vmatprep.subr.bf16.mxu0 %v9310_v6  ;;  %2015 = vmatprep.subr.bf16.mxu1 %v9313_v23  ;;  %v9377_v6 = vld [vmem:[#allocation3 + $0x680] ss:$8 sps:$4 sm:$0xff]   ;;  %v9382_v23 = vld [vmem:[#allocation3 + $0x614] ss:$8 sps:$4 sm:$0xff]  }
  0xfb   :  { %1815 = vmatpush1.bf16.msra.mxu0 %v9308_v24  ;;  %2016 = vmatpush1.bf16.msra.mxu1 %v9311_v25  ;;  %v9385_v24 = vld [vmem:[#allocation3 + $0x694] ss:$8 sps:$4 sm:$0xff]  }
  0xfc   :  { %1816 = vmatprep.subr.bf16.mxu0 %v9316_v26  ;;  %2017 = vmatprep.subr.bf16.mxu1 %v9319_v27  ;;  %v9391_v26 = vld [vmem:[#allocation3 + $0x620] ss:$8 sps:$4 sm:$0x3f]  }
  0xfd   :  { %v2214_v55 = vsel %vm184_vm1, %v9391_v26, 0 }
  0xff   :  { %1817 = vmatpush1.bf16.msra.mxu0 %v9314_v29  ;;  %2018 = vmatpush1.bf16.msra.mxu1 %v9317_v30 }
 0x100   :  { %1818 = vmatprep.subr.bf16.mxu0 %v9322_v31  ;;  %2019 = vmatprep.subr.bf16.mxu1 %v9325_v32  ;;  %v9380_v32 = vld [vmem:[#allocation3 + $0x610] ss:$8 sps:$4 sm:$0xff]  }
 0x103   :  { %1819 = vmatpush1.bf16.msra.mxu0 %v9320_v33  ;;  %2020 = vmatpush1.bf16.msra.mxu1 %v9323_v34  ;;  %v9383_v33 = vld [vmem:[#allocation3 + $0x690] ss:$8 sps:$4 sm:$0xff]  }
 0x104   :  { %1820 = vmatprep.subr.bf16.mxu0 %v9328_v36  ;;  %2021 = vmatprep.subr.bf16.mxu1 %v9331_v37 }
 0x107   :  { %1821 = vmatpush1.bf16.msra.mxu0 %v9326_v38  ;;  %2022 = vmatpush1.bf16.msra.mxu1 %v9329_v39  ;;  %v9386_v38 = vld [vmem:[#allocation3 + $0x624] ss:$8 sps:$4 sm:$0x3f]  }
 0x108   :  { %8220 = vmatprep.subr.msk.bf16.mxu0 %vm184_vm1, %v9332_v40  ;;  %2023 = vmatprep.subr.bf16.mxu1 %v9336_v41  ;;  %v9390_v39 = vld [vmem:[#allocation3 + $0x6a4] ss:$8 sps:$4 sm:$0xff]  }
 0x10b   :  { %1823 = vmatpush1.bf16.msra.mxu0 %v1801_v44  ;;  %2024 = vmatpush1.bf16.msra.mxu1 %v9334_v43  ;;  %v9397_v44 = vld [vmem:[#allocation3 + $0x6b0] ss:$8 sps:$4 sm:$0x3f]  }
 0x10c   :  { %8244 = vmatprep.subr.msk.bf16.mxu1 %vm184_vm1, %v9338_v46  ;;  %2219 = vmatprep.subr.bf16.mxu0 %v9342_v47  ;;  %v2417_v63 = vsel %vm184_vm1, %v9397_v44, 0  ;;  %v9425_v44 = vld [vmem:[#allocation3 + $0x790] ss:$8 sps:$4 sm:$0xff]  }
 0x10e   :  { %1839 = vmatmul.mubr.bf16.vlgmr.msra.gmra.mrb[16].mxu0 %v1707_v53  ;;  %v9388_v53 = vld [vmem:[#allocation3 + $0x6a0] ss:$8 sps:$4 sm:$0xff]  }
 0x10f   :  { %2026 = vmatpush1.bf16.msra.mxu1 %v2004_v49  ;;  %2220 = vmatpush1.bf16.msra.mxu0 %v9340_v48 }
 0x110   :  { %2221 = vmatprep.subr.bf16.mxu0 %v9346_v50  ;;  %2422 = vmatprep.subr.bf16.mxu1 %v9349_v52 }
 0x111   :  { %8269 = vmatprep.mubr.msk.bf16.mxu0 %vm180_vm0, %v2120_v59  ;;  %v10437_v59 = vpop.permute.xlu1 %2521 }
 0x112   :  { %2042 = vmatmul.mubr.bf16.vlgmr.msra.gmra.mrb[16].mxu1 %v1910_v1  ;;  %v9396_v1 = vld [vmem:[#allocation3 + $0x6c4] ss:$8 sps:$4 sm:$0xff]  }
 0x113   :  { %2222 = vmatpush1.bf16.msra.mxu0 %v9344_v57  ;;  %2423 = vmatpush1.bf16.msra.mxu1 %v9347_v58 }
 0x114   :  { %2223 = vmatprep.subr.bf16.mxu0 %v9352_v60  ;;  %2424 = vmatprep.subr.bf16.mxu1 %v9355_v61  ;;  %v9392_v60 = vld [vmem:[#allocation3 + $0x6b4] ss:$8 sps:$4 sm:$0x3f]  }
 0x115   :  { %8293 = vmatprep.mubr.msk.bf16.mxu1 %vm180_vm0, %v10417_v3 }
 0x117   :  { %2224 = vmatpush1.bf16.msra.mxu0 %v9350_v28  ;;  %2425 = vmatpush1.bf16.msra.mxu1 %v9353_v62  ;;  %v9394_v62 = vld [vmem:[#allocation3 + $0x6c0] ss:$8 sps:$4 sm:$0xff]  }
 0x118   :  { %2225 = vmatprep.subr.bf16.mxu0 %v9358_v0  ;;  %2426 = vmatprep.subr.bf16.mxu1 %v9361_v2  ;;  %v9400_v0 = vld [vmem:[#allocation3 + $0x6d4] ss:$8 sps:$4 sm:$0xff]  }
 0x119   :  { %v9403_v2 = vld [vmem:[#allocation3 + $0x754] ss:$8 sps:$4 sm:$0xff]  }
 0x11b   :  { %2226 = vmatpush1.bf16.msra.mxu0 %v9356_v11  ;;  %2427 = vmatpush1.bf16.msra.mxu1 %v9359_v4  ;;  %v2319_v11 = vpop.permute.xlu1 %2318 }
 0x11c   :  { %2227 = vmatprep.subr.bf16.mxu0 %v9364_v7  ;;  %2428 = vmatprep.subr.bf16.mxu1 %v9367_v8  ;;  %v9401_v7 = vld [vmem:[#allocation3 + $0x750] ss:$8 sps:$4 sm:$0xff]  }
 0x11f   :  { %2228 = vmatpush1.bf16.msra.mxu0 %v9362_v9  ;;  %2429 = vmatpush1.bf16.msra.mxu1 %v9365_v10  ;;  %v9406_v9 = vld [vmem:[#allocation3 + $0x6e4] ss:$8 sps:$4 sm:$0xff]  }
 0x120   :  { %2229 = vmatprep.subr.bf16.mxu0 %v9370_v14  ;;  %2430 = vmatprep.subr.bf16.mxu1 %v9373_v15  ;;  %v9409_v10 = vld [vmem:[#allocation3 + $0x764] ss:$8 sps:$4 sm:$0xff]   ;;  %v2323_v14 = vsel %vm2322_vm11, %v2319_v11, %v10417_v3  ;;  %v9442_v11 = vld [vmem:[#allocation3 + $0x7c0] ss:$8 sps:$4 sm:$0xff]  }
 0x122   :  { %v225_v25 = vpop.f32.mrb[0].mxu0  ;;  %v419_v37 = vpop.f32.mrb[0].mxu1 }
 0x123   :  { %2230 = vmatpush1.bf16.msra.mxu0 %v9368_v17  ;;  %2431 = vmatpush1.bf16.msra.mxu1 %v9371_v51  ;;  %v226_v27 = vadd.f32 %v225_v25, %v10424_v20  ;;  %v227_v29 = vpop.f32.mrb[1].mxu0  ;;  %v420_v42 = vadd.f32 %v419_v37, %v10424_v20  ;;  %v421_v43 = vpop.f32.mrb[1].mxu1 }
 0x124   :  { %2231 = vmatprep.subr.bf16.mxu0 %v9376_v54  ;;  %2432 = vmatprep.subr.bf16.mxu1 %v9379_v19  ;;  %v228_v30 = vadd.f32 %v227_v29, %v10426_v21  ;;  %v229_v31 = vpop.f32.mrb[2].mxu0  ;;  %v422_v46 = vadd.f32 %v421_v43, %v10426_v21  ;;  %v423_v47 = vpop.f32.mrb[2].mxu1  ;;  %v9404_v54 = vld [vmem:[#allocation3 + $0x6e0] ss:$8 sps:$4 sm:$0xff]   ;;  %v9422_v43 = vld [vmem:[#allocation3 + $0x710] ss:$8 sps:$4 sm:$0xff]  }
 0x125   :  { %v8030_v34 = vmul.f32 -1.442695, %v226_v27  ;;  %v230_v36 = vadd.f32 %v229_v31, %v10424_v20  ;;  %v231_v35 = vpop.f32.mrb[3].mxu0  ;;  %v8054_v49 = vmul.f32 -1.442695, %v420_v42  ;;  %v424_v50 = vadd.f32 %v423_v47, %v10424_v20  ;;  %v425_v52 = vpop.f32.mrb[3].mxu1 }
 0x126   :  { %v8031_v40 = vmul.f32 -1.442695, %v228_v30  ;;  %v232_v41 = vadd.f32 %v231_v35, %v10426_v21  ;;  %v8055_v57 = vmul.f32 -1.442695, %v422_v46  ;;  %v426_v58 = vadd.f32 %v425_v52, %v10426_v21  ;;  %v9407_v19 = vld [vmem:[#allocation3 + $0x760] ss:$8 sps:$4 sm:$0xff]  }
 0x127   :  { %2232 = vmatpush1.bf16.msra.mxu0 %v9374_v22  ;;  %2433 = vmatpush1.bf16.msra.mxu1 %v9377_v6  ;;  %9843 = vpow2.f32 %v8030_v34  ;;  %v8032_v45 = vmul.f32 -1.442695, %v230_v36  ;;  %v8056_v61 = vmul.f32 -1.442695, %v424_v50  ;;  %v9412_v6 = vld [vmem:[#allocation3 + $0x6f4] ss:$8 sps:$4 sm:$0xff]  }
 0x128   :  { %2233 = vmatprep.subr.bf16.mxu0 %v9382_v23  ;;  %2434 = vmatprep.subr.bf16.mxu1 %v9385_v24  ;;  %9845 = vpow2.f32 %v8031_v40  ;;  %v8033_v48 = vmul.f32 -1.442695, %v232_v41  ;;  %v8057_v28 = vmul.f32 -1.442695, %v426_v58  ;;  %v9415_v23 = vld [vmem:[#allocation3 + $0x774] ss:$8 sps:$4 sm:$0xff]   ;;  %v10447_v24 = vpop.permute.xlu0 %2726 }
 0x129   :  { %9847 = vpow2.f32 %v8032_v45  ;;  %v9410_v30 = vld [vmem:[#allocation3 + $0x6f0] ss:$8 sps:$4 sm:$0xff]   ;;  %v9421_v34 = vld [vmem:[#allocation3 + $0x784] ss:$8 sps:$4 sm:$0xff]   ;;  %v9416_v36 = vld [vmem:[#allocation3 + $0x700] ss:$8 sps:$4 sm:$0xff]  }
 0x12a   :  { %9849 = vpow2.f32 %v8033_v48  ;;  %v9413_v31 = vld [vmem:[#allocation3 + $0x770] ss:$8 sps:$4 sm:$0xff]   ;;  %v9419_v35 = vld [vmem:[#allocation3 + $0x780] ss:$8 sps:$4 sm:$0xff]   ;;  %v9430_v47 = vld [vmem:[#allocation3 + $0x724] ss:$8 sps:$4 sm:$0xff]  }
 0x12b   :  { %2234 = vmatpush1.bf16.msra.mxu0 %v9380_v32  ;;  %2435 = vmatpush1.bf16.msra.mxu1 %v9383_v33  ;;  %9851 = vpow2.f32 %v8054_v49  ;;  %v9418_v33 = vld [vmem:[#allocation3 + $0x704] ss:$8 sps:$4 sm:$0xff]  }
 0x12c   :  { %8268 = vmatprep.subr.msk.bf16.mxu0 %vm184_vm1, %v9386_v38  ;;  %2436 = vmatprep.subr.bf16.mxu1 %v9390_v39  ;;  %9853 = vpow2.f32 %v8055_v57  ;;  %v9424_v38 = vld [vmem:[#allocation3 + $0x714] ss:$8 sps:$4 sm:$0xff]   ;;  %v9433_v48 = vld [vmem:[#allocation3 + $0x7a4] ss:$8 sps:$4 sm:$0xff]   ;;  %v9431_v57 = vld [vmem:[#allocation3 + $0x7a0] ss:$8 sps:$4 sm:$0xff]  }
 0x12d   :  { %9855 = vpow2.f32 %v8056_v61  ;;  %v9427_v39 = vld [vmem:[#allocation3 + $0x794] ss:$8 sps:$4 sm:$0xff]  }
 0x12e   :  { %9857 = vpow2.f32 %v8057_v28  ;;  %v9439_v61 = vld [vmem:[#allocation3 + $0x7b4] ss:$8 sps:$4 sm:$0xff]   ;;  %v9434_v28 = vld [vmem:[#allocation3 + $0x730] ss:$8 sps:$4 sm:$0xff]  }
 0x12f   :  { %2236 = vmatpush1.bf16.msra.mxu0 %v2214_v55  ;;  %2437 = vmatpush1.bf16.msra.mxu1 %v9388_v53  ;;  %v9428_v55 = vld [vmem:[#allocation3 + $0x720] ss:$8 sps:$4 sm:$0xff]  }
 0x130   :  { %8292 = vmatprep.subr.msk.bf16.mxu1 %vm184_vm1, %v9392_v60  ;;  %2625 = vmatprep.subr.bf16.mxu0 %v9396_v1  ;;  %v9436_v60 = vld [vmem:[#allocation3 + $0x734] ss:$8 sps:$4 sm:$0xff]  }
 0x131   :  { %v9844_v4 = vpop.eup %9843 }
 0x132   :  { %v9846_v8 = vpop.eup %9845  ;;  %2252 = vmatmul.mubr.bf16.vlgmr.msra.gmra.mrb[20].mxu0 %v10372_v18  ;;  %v246_v12 = vadd.f32 1.0, %v9844_v4  ;;  %v9446_v4 = vld [vmem:[#allocation3 + $0x7d4] ss:$8 sps:$4 sm:$0x3f]  }
 0x133   :  { %v9848_v13 = vpop.eup %9847  ;;  %2439 = vmatpush1.bf16.msra.mxu1 %v2417_v63  ;;  %2626 = vmatpush1.bf16.msra.mxu0 %v9394_v62  ;;  %v247_v15 = vadd.f32 1.0, %v9846_v8  ;;  %v9437_v62 = vld [vmem:[#allocation3 + $0x7b0] ss:$8 sps:$4 sm:$0xff]   ;;  %v9445_v63 = vld [vmem:[#allocation3 + $0x740] ss:$8 sps:$4 sm:$0x3f]  }
 0x134   :  { %v9850_v16 = vpop.eup %9849  ;;  %2627 = vmatprep.subr.bf16.mxu0 %v9400_v0  ;;  %2828 = vmatprep.subr.bf16.mxu1 %v9403_v2  ;;  %9859 = vrcp.f32 %v246_v12  ;;  %v248_v17 = vadd.f32 1.0, %v9848_v13  ;;  %v9440_v0 = vld [vmem:[#allocation3 + $0x744] ss:$8 sps:$4 sm:$0x3f]   ;;  %v9449_v8 = vld [vmem:[#allocation5 + $0xfc] sm:$0xff]   ;;  %v2725_v13 = vpop.permute.xlu1 %2724 }
 0x135   :  { %v9852_v51 = vpop.eup %9851  ;;  %9861 = vrcp.f32 %v247_v15  ;;  %v249_v18 = vadd.f32 1.0, %v9850_v16  ;;  %8317 = vmatprep.mubr.msk.bf16.mxu0 %vm180_vm0, %v10410_v56  ;;  %v9444_v2 = vld [vmem:[#allocation3 + $0x7c4] ss:$8 sps:$4 sm:$0xff]  }
 0x136   :  { %v9854_v22 = vpop.eup %9853  ;;  %2455 = vmatmul.mubr.bf16.vlgmr.msra.gmra.mrb[20].mxu1 %v2323_v14  ;;  %9863 = vrcp.f32 %v248_v17  ;;  %v440_v3 = vadd.f32 1.0, %v9852_v51  ;;  %v9450_v14 = vld [vmem:[#allocation5 + $0x104] sm:$0xff]   ;;  %v2729_v17 = vsel %vm2728_vm14, %v2725_v13, %v10447_v24 }
 0x137   :  { %v9856_v25 = vpop.eup %9855  ;;  %2628 = vmatpush1.bf16.msra.mxu0 %v9398_v5  ;;  %2829 = vmatpush1.bf16.msra.mxu1 %v9401_v7  ;;  %9865 = vrcp.f32 %v249_v18  ;;  %v441_v26 = vadd.f32 1.0, %v9854_v22  ;;  %v2620_v5 = vsel %vm184_vm1, %v9445_v63, 0  ;;  %v9448_v7 = vld [vmem:[#allocation3 + $0x7d0] ss:$8 sps:$4 sm:$0x3f]   ;;  %v9451_v15 = vld [vmem:[#allocation5 + $0xa8] sm:$0xff]  }
 0x138   :  { %v9858_v27 = vpop.eup %9857  ;;  %2629 = vmatprep.subr.bf16.mxu0 %v9406_v9  ;;  %2830 = vmatprep.subr.bf16.mxu1 %v9409_v10  ;;  %9867 = vrcp.f32 %v440_v3  ;;  %v442_v29 = vadd.f32 1.0, %v9856_v25  ;;  %v2526_v9 = vsel %vm2525_vm13, %v10437_v59, %v10410_v56  ;;  %v10193_v10 = vmov 0   ;;  %v9452_v56 = vld [vmem:[#allocation5 + $0x10c] sm:$0xff]   ;;  %v9456_v18 = vld [vmem:[#allocation5 + $0x11c] sm:$0xff]   ;;  %v9462_v25 = vld [vmem:[#allocation5 + $0x134] sm:$0xff]  }
 0x139   :  { %9869 = vrcp.f32 %v441_v26  ;;  %v443_v32 = vadd.f32 1.0, %v9858_v27  ;;  %8341 = vmatprep.mubr.msk.bf16.mxu1 %vm180_vm0, %v10447_v24  ;;  %v2823_v12 = vsel %vm184_vm1, %v9448_v7, 0  ;;  %v9453_v59 = vld [vmem:[#allocation5 + $0xb0] sm:$0xff]   ;;  %v9457_v22 = vld [vmem:[#allocation5 + $0xc0] sm:$0xff]   ;;  %v9463_v26 = vld [vmem:[#allocation5 + $0xd8] sm:$0xff]   ;;  %vm3385_vm0 = vcmask 1041408  }
 0x13a   :  { %9871 = vrcp.f32 %v442_v29  ;;  %v9460_v3 = vld [vmem:[#allocation5 + $0x12c] sm:$0xff]   ;;  %v9464_v27 = vld [vmem:[#allocation5 + $0x13c] sm:$0xff]  }
 0x13b   :  { %2630 = vmatpush1.bf16.msra.mxu0 %v9404_v54  ;;  %2831 = vmatpush1.bf16.msra.mxu1 %v9407_v19  ;;  %9873 = vrcp.f32 %v443_v32  ;;  %v9454_v54 = vld [vmem:[#allocation5 + $0x114] sm:$0xff]   ;;  %v9465_v29 = vld [vmem:[#allocation5 + $0xe0] sm:$0xff]  }
 0x13c   :  { %2631 = vmatprep.subr.bf16.mxu0 %v9412_v6  ;;  %2832 = vmatprep.subr.bf16.mxu1 %v9415_v23  ;;  %v9455_v19 = vld [vmem:[#allocation5 + $0xb8] sm:$0xff]   ;;  %v9458_v6 = vld [vmem:[#allocation5 + $0x124] sm:$0xff]   ;;  %v9461_v24 = vld [vmem:[#allocation5 + $0xd0] sm:$0xff]  }
 0x13d   :  { %v9459_v23 = vld [vmem:[#allocation5 + $0xc8] sm:$0xff]  }
 0x13e   :  { %v9860_v37 = vpop.eup %9859 }
 0x13f   :  { %v9862_v40 = vpop.eup %9861  ;;  %2632 = vmatpush1.bf16.msra.mxu0 %v9410_v30  ;;  %2833 = vmatpush1.bf16.msra.mxu1 %v9413_v31 }
 0x140   :  { %v9864_v41 = vpop.eup %9863  ;;  %2633 = vmatprep.subr.bf16.mxu0 %v9418_v33  ;;  %2834 = vmatprep.subr.bf16.mxu1 %v9421_v34  ;;  %v9466_v33 = vld [vmem:[#allocation5 + $0x144] sm:$0xff]   ;;  %v9468_v34 = vld [vmem:[#allocation5 + $0x14c] ss:$0 sps:$4 sm:$0xff]  }
 0x141   :  { %v9866_v42 = vpop.eup %9865  ;;  %v10451_v45 = vpack.c.bf16 %v9864_v41, %v9860_v37  ;;  %v9467_v37 = vld [vmem:[#allocation5 + $0xe8] sm:$0xff]  }
 0x142   :  { %v9868_v46 = vpop.eup %9867  ;;  %v259_v49 = vpack.c.bf16 %v9866_v42, %v9862_v40 }
 0x143   :  { %v9870_v50 = vpop.eup %9869  ;;  %2634 = vmatpush1.bf16.msra.mxu0 %v9416_v36  ;;  %2835 = vmatpush1.bf16.msra.mxu1 %v9419_v35  ;;  %260 = vst [vmem:[#allocation2] sm:$0xff] %v10451_v45 }
 0x144   :  { %v9872_v52 = vpop.eup %9871  ;;  %2635 = vmatprep.subr.bf16.mxu0 %v9424_v38  ;;  %2836 = vmatprep.subr.bf16.mxu1 %v9427_v39  ;;  %262 = vst.msk [vmem:[#allocation2 + $0x8] sm:$0xff] %vm261_vm12, %v259_v49 }
 0x145   :  { %v9874_v53 = vpop.eup %9873  ;;  %v10455_v58 = vpack.c.bf16 %v9872_v52, %v9868_v46  ;;  %v9470_v46 = vld [vmem:[#allocation5 + $0xf8] ss:$0 sps:$4 sm:$0xff]  }
 0x146   :  { %v453_v1 = vpack.c.bf16 %v9874_v53, %v9870_v50  ;;  %v9469_v50 = vld [vmem:[#allocation5 + $0xf0] sm:$0xff]  }
 0x147   :  { %2636 = vmatpush1.bf16.msra.mxu0 %v9422_v43  ;;  %2837 = vmatpush1.bf16.msra.mxu1 %v9425_v44  ;;  %455 = vst [vmem:[#allocation2 + $0x10] sm:$0xff] %v10455_v58 }
 0x148   :  { %2637 = vmatprep.subr.bf16.mxu0 %v9430_v47  ;;  %2838 = vmatprep.subr.bf16.mxu1 %v9433_v48  ;;  %456 = vst.msk [vmem:[#allocation2 + $0x18] sm:$0xff] %vm261_vm12, %v453_v1  ;;  %v9471_v1 = vld [vmem:[#allocation5 + $0x150] sm:$0xff]  }
 0x14b   :  { %2638 = vmatpush1.bf16.msra.mxu0 %v9428_v55  ;;  %2839 = vmatpush1.bf16.msra.mxu1 %v9431_v57  ;;  %v10469_v51 = vld [vmem:[#allocation2 + $0x8] sm:$0xff]  ;;  %v3025_v55 = vsel %vm3023_vm15, %v9468_v34, 0 }
 0x14c   :  { %2639 = vmatprep.subr.bf16.mxu0 %v9436_v60  ;;  %2840 = vmatprep.subr.bf16.mxu1 %v9439_v61 }
 0x14f   :  { %2640 = vmatpush1.bf16.msra.mxu0 %v9434_v28  ;;  %2841 = vmatpush1.bf16.msra.mxu1 %v9437_v62  ;;  %v2934_v16 = vld [vmem:[#allocation2 + $0x18] sm:$0xff] }
 0x150   :  { %8316 = vmatprep.subr.msk.bf16.mxu0 %vm184_vm1, %v9440_v0  ;;  %2842 = vmatprep.subr.bf16.mxu1 %v9444_v2  ;;  %v3135_v2 = vsel %vm3023_vm15, %v9470_v46, 0 }
 0x153   :  { %2642 = vmatpush1.bf16.msra.mxu0 %v2620_v5  ;;  %2843 = vmatpush1.bf16.msra.mxu1 %v9442_v11  ;;  %v9472_v11 = vld [vmem:[#allocation5 + $0x158] sm:$0xff]  }
 0x154   :  { %8340 = vmatprep.subr.msk.bf16.mxu1 %vm184_vm1, %v9446_v4  ;;  %3027 = vmatprep.subr.bf16.mxu0 %v10193_v10  ;;  %vm10195_vm1 = vmmov 0  }
 0x156   :  { %2658 = vmatmul.mubr.bf16.vlgmr.msra.gmra.mrb[24].mxu0 %v2526_v9 }
 0x157   :  { %2845 = vmatpush1.bf16.msra.mxu1 %v2823_v12  ;;  %3028 = vmatpush1.bf16.msra.mxu0 %v9449_v8 }
 0x158   :  { %3029 = vmatprep.subr.bf16.mxu0 %v10193_v10  ;;  %3137 = vmatprep.subr.bf16.mxu1 %v10193_v10 }
 0x159   :  { %8358 = vmatprep.mubr.msk.bf16.mxu0 %vm261_vm12, %v2934_v16 }
 0x15a   :  { %2861 = vmatmul.mubr.bf16.vlgmr.msra.gmra.mrb[24].mxu1 %v2729_v17 }
 0x15b   :  { %3030 = vmatpush1.bf16.msra.mxu0 %v9450_v14  ;;  %3138 = vmatpush1.bf16.msra.mxu1 %v9451_v15  ;;  %v9473_v14 = vld [vmem:[#allocation5 + $0x160] sm:$0xff]  }
 0x15c   :  { %3031 = vmatprep.subr.bf16.mxu0 %v10193_v10  ;;  %3139 = vmatprep.subr.bf16.mxu1 %v10193_v10 }
 0x15d   :  { %8370 = vmatprep.mubr.msk.bf16.mxu1 %vm261_vm12, %v10469_v51 }
 0x15f   :  { %3032 = vmatpush1.bf16.msra.mxu0 %v9452_v56  ;;  %3140 = vmatpush1.bf16.msra.mxu1 %v9453_v59 }
 0x160   :  { %3033 = vmatprep.subr.bf16.mxu0 %v10193_v10  ;;  %3141 = vmatprep.subr.bf16.mxu1 %v10193_v10 }
 0x163   :  { %3034 = vmatpush1.bf16.msra.mxu0 %v9454_v54  ;;  %3142 = vmatpush1.bf16.msra.mxu1 %v9455_v19  ;;  %v9474_v19 = vld [vmem:[#allocation5 + $0x168] sm:$0xff]  }
 0x164   :  { %3035 = vmatprep.subr.bf16.mxu0 %v10193_v10  ;;  %3143 = vmatprep.subr.bf16.mxu1 %v10193_v10 }
 0x167   :  { %3036 = vmatpush1.bf16.msra.mxu0 %v9456_v18  ;;  %3144 = vmatpush1.bf16.msra.mxu1 %v9457_v22  ;;  %v9475_v22 = vld [vmem:[#allocation5 + $0x170] sm:$0xff]  }
 0x168   :  { %3037 = vmatprep.subr.bf16.mxu0 %v10193_v10  ;;  %3145 = vmatprep.subr.bf16.mxu1 %v10193_v10 }
 0x16b   :  { %3038 = vmatpush1.bf16.msra.mxu0 %v9458_v6  ;;  %3146 = vmatpush1.bf16.msra.mxu1 %v9459_v23  ;;  %v9476_v23 = vld [vmem:[#allocation5 + $0x178] sm:$0xff]  }
 0x16c   :  { %3039 = vmatprep.subr.bf16.mxu0 %v10193_v10  ;;  %3147 = vmatprep.subr.bf16.mxu1 %v10193_v10 }
 0x16f   :  { %3040 = vmatpush1.bf16.msra.mxu0 %v9460_v3  ;;  %3148 = vmatpush1.bf16.msra.mxu1 %v9461_v24 }
 0x170   :  { %3041 = vmatprep.subr.bf16.mxu0 %v10193_v10  ;;  %3149 = vmatprep.subr.bf16.mxu1 %v10193_v10 }
 0x173   :  { %3042 = vmatpush1.bf16.msra.mxu0 %v9462_v25  ;;  %3150 = vmatpush1.bf16.msra.mxu1 %v9463_v26 }
 0x174   :  { %3043 = vmatprep.subr.bf16.mxu0 %v10193_v10  ;;  %3151 = vmatprep.subr.bf16.mxu1 %v10193_v10 }
 0x175   :  { %v622_v30 = vpop.f32.mrb[4].mxu0 }
 0x176   :  { %v623_v31 = vadd.f32 %v622_v30, %v10424_v20  ;;  %v624_v32 = vpop.f32.mrb[5].mxu0  ;;  %v9477_v30 = vld [vmem:[#allocation5 + $0x180] sm:$0xff]  }
 0x177   :  { %v625_v36 = vadd.f32 %v624_v32, %v10426_v21  ;;  %3044 = vmatpush1.bf16.msra.mxu0 %v9464_v27  ;;  %3152 = vmatpush1.bf16.msra.mxu1 %v9465_v29  ;;  %v626_v35 = vpop.f32.mrb[6].mxu0 }
 0x178   :  { %v8078_v38 = vmul.f32 -1.442695, %v623_v31  ;;  %v627_v39 = vadd.f32 %v626_v35, %v10424_v20  ;;  %v628_v40 = vpop.f32.mrb[7].mxu0  ;;  %3045 = vmatprep.subr.bf16.mxu0 %v10193_v10  ;;  %3153 = vmatprep.subr.bf16.mxu1 %v10193_v10 }
 0x179   :  { %v8079_v41 = vmul.f32 -1.442695, %v625_v36  ;;  %v629_v42 = vadd.f32 %v628_v40, %v10426_v21  ;;  %v825_v43 = vpop.f32.mrb[4].mxu1 }
 0x17a   :  { %9875 = vpow2.f32 %v8078_v38  ;;  %v8080_v44 = vmul.f32 -1.442695, %v627_v39  ;;  %v826_v47 = vadd.f32 %v825_v43, %v10424_v20  ;;  %v827_v48 = vpop.f32.mrb[5].mxu1 }
 0x17b   :  { %9877 = vpow2.f32 %v8079_v41  ;;  %v8081_v49 = vmul.f32 -1.442695, %v629_v42  ;;  %3046 = vmatpush1.bf16.msra.mxu0 %v9466_v33  ;;  %3154 = vmatpush1.bf16.msra.mxu1 %v9467_v37  ;;  %v828_v52 = vadd.f32 %v827_v48, %v10426_v21  ;;  %v829_v53 = vpop.f32.mrb[6].mxu1  ;;  %v9478_v41 = vld [vmem:[#allocation5 + $0x188] sm:$0xff]  }
 0x17c   :  { %9879 = vpow2.f32 %v8080_v44  ;;  %3047 = vmatprep.subr.bf16.mxu0 %v10193_v10  ;;  %3155 = vmatprep.subr.bf16.mxu1 %v10193_v10  ;;  %v8102_v57 = vmul.f32 -1.442695, %v826_v47  ;;  %v830_v60 = vadd.f32 %v829_v53, %v10424_v20  ;;  %v831_v61 = vpop.f32.mrb[7].mxu1 }
 0x17d   :  { %9881 = vpow2.f32 %v8081_v49  ;;  %v8103_v28 = vmul.f32 -1.442695, %v828_v52  ;;  %v832_v62 = vadd.f32 %v831_v61, %v10426_v21 }
 0x17e   :  { %9883 = vpow2.f32 %v8102_v57  ;;  %v8104_v63 = vmul.f32 -1.442695, %v830_v60  ;;  %v9479_v57 = vld [vmem:[#allocation5 + $0x190] sm:$0xff]  }
 0x17f   :  { %3048 = vmatpush1.bf16.msra.mxu0 %v3025_v55  ;;  %3156 = vmatpush1.bf16.msra.mxu1 %v9469_v50  ;;  %9885 = vpow2.f32 %v8103_v28  ;;  %v8105_v0 = vmul.f32 -1.442695, %v832_v62 }
 0x180   :  { %3157 = vmatprep.subr.bf16.mxu1 %v10193_v10  ;;  %3271 = vmatprep.subr.bf16.mxu0 %v10193_v10  ;;  %9887 = vpow2.f32 %v8104_v63  ;;  %v9481_v63 = vld [vmem:[#allocation5 + $0x1a0] ss:$0 sps:$4 sm:$0xff]  }
 0x181   :  { %9889 = vpow2.f32 %v8105_v0 }
 0x182   :  { %3060 = vmatmul.mubr.bf16.vlgmr.msra.gmra.mrb[28].mxu0 %v10455_v58 }
 0x183   :  { %3158 = vmatpush1.bf16.msra.mxu1 %v3135_v2  ;;  %3272 = vmatpush1.bf16.msra.mxu0 %v9471_v1 }
 0x184   :  { %v9876_v4 = vpop.eup %9875  ;;  %3273 = vmatprep.subr.bf16.mxu0 %v10193_v10 }
 0x185   :  { %v9878_v5 = vpop.eup %9877  ;;  %v643_v7 = vadd.f32 1.0, %v9876_v4 }
 0x186   :  { %v9880_v8 = vpop.eup %9879  ;;  %v644_v9 = vadd.f32 1.0, %v9878_v5  ;;  %3170 = vmatmul.mubr.bf16.vlgmr.msra.gmra.mrb[28].mxu1 %v10451_v45 }
 0x187   :  { %v9882_v12 = vpop.eup %9881  ;;  %9891 = vrcp.f32 %v643_v7  ;;  %v645_v13 = vadd.f32 1.0, %v9880_v8  ;;  %3274 = vmatpush1.bf16.msra.mxu0 %v9472_v11  ;;  %v9480_v11 = vld [vmem:[#allocation5 + $0x198] sm:$0xff]   ;;  %v3269_v7 = vsel %vm3023_vm15, %v9481_v63, 0 }
 0x188   :  { %v9884_v15 = vpop.eup %9883  ;;  %9893 = vrcp.f32 %v644_v9  ;;  %v646_v58 = vadd.f32 1.0, %v9882_v12  ;;  %3275 = vmatprep.subr.bf16.mxu0 %v10193_v10 }
 0x189   :  { %v9886_v16 = vpop.eup %9885  ;;  %9895 = vrcp.f32 %v645_v13  ;;  %v846_v17 = vadd.f32 1.0, %v9884_v15 }
 0x18a   :  { %v9888_v56 = vpop.eup %9887  ;;  %9897 = vrcp.f32 %v646_v58  ;;  %v847_v59 = vadd.f32 1.0, %v9886_v16  ;;  %v9482_v16 = vld [vmem:[#allocation5] sm:$0xff]  }
 0x18b   :  { %v9890_v54 = vpop.eup %9889  ;;  %3276 = vmatpush1.bf16.msra.mxu0 %v9473_v14  ;;  %9899 = vrcp.f32 %v846_v17  ;;  %v848_v45 = vadd.f32 1.0, %v9888_v56 }
 0x18c   :  { %3277 = vmatprep.subr.bf16.mxu0 %v10193_v10  ;;  %9901 = vrcp.f32 %v847_v59  ;;  %v849_v18 = vadd.f32 1.0, %v9890_v54 }
 0x18d   :  { %9903 = vrcp.f32 %v848_v45 }
 0x18e   :  { %9905 = vrcp.f32 %v849_v18 }
 0x18f   :  { %3278 = vmatpush1.bf16.msra.mxu0 %v9474_v19 }
 0x190   :  { %3279 = vmatprep.subr.bf16.mxu0 %v10193_v10 }
 0x191   :  { %v9892_v6 = vpop.eup %9891 }
 0x192   :  { %v9894_v3 = vpop.eup %9893 }
 0x193   :  { %v9896_v24 = vpop.eup %9895  ;;  %3280 = vmatpush1.bf16.msra.mxu0 %v9475_v22  ;;  %v9483_v22 = vld [vmem:[#allocation5 + $0x8] sm:$0xff]  }
 0x194   :  { %v9898_v25 = vpop.eup %9897  ;;  %v10510_v26 = vpack.c.bf16 %v9896_v24, %v9892_v6  ;;  %3281 = vmatprep.subr.bf16.mxu0 %v10193_v10 }
 0x195   :  { %v9900_v27 = vpop.eup %9899  ;;  %v656_v29 = vpack.c.bf16 %v9898_v25, %v9894_v3  ;;  %v9484_v3 = vld [vmem:[#allocation5 + $0x10] sm:$0xff]   ;;  %v9485_v25 = vld [vmem:[#allocation5 + $0x18] sm:$0xff]  }
 0x196   :  { %v9902_v31 = vpop.eup %9901  ;;  %658 = vst [vmem:[#allocation2 + $0x20] sm:$0xff] %v10510_v26 }
 0x197   :  { %v9904_v32 = vpop.eup %9903  ;;  %659 = vst.msk [vmem:[#allocation2 + $0x28] sm:$0xff] %vm261_vm12, %v656_v29  ;;  %3282 = vmatpush1.bf16.msra.mxu0 %v9476_v23 }
 0x198   :  { %v9906_v33 = vpop.eup %9905  ;;  %3283 = vmatprep.subr.bf16.mxu0 %v10193_v10  ;;  %v858_v34 = vpack.c.bf16 %v9904_v32, %v9900_v27  ;;  %v9486_v32 = vld [vmem:[#allocation5 + $0x20] sm:$0xff]  }
 0x199   :  { %v1028_v36 = vpop.f32.mrb[8].mxu0  ;;  %v859_v35 = vpack.c.bf16 %v9906_v33, %v9902_v31 }
 0x19a   :  { %v1029_v37 = vadd.f32 %v1028_v36, %v10424_v20  ;;  %v1030_v38 = vpop.f32.mrb[9].mxu0  ;;  %861 = vst [vmem:[#allocation2 + $0x30] sm:$0xff] %v858_v34 }
 0x19b   :  { %v1031_v39 = vadd.f32 %v1030_v38, %v10426_v21  ;;  %v1032_v40 = vpop.f32.mrb[10].mxu0  ;;  %3284 = vmatpush1.bf16.msra.mxu0 %v9477_v30  ;;  %862 = vst.msk [vmem:[#allocation2 + $0x38] sm:$0xff] %vm261_vm12, %v859_v35 }
 0x19c   :  { %v8126_v42 = vmul.f32 -1.442695, %v1029_v37  ;;  %v1033_v43 = vadd.f32 %v1032_v40, %v10424_v20  ;;  %v1034_v44 = vpop.f32.mrb[11].mxu0  ;;  %3285 = vmatprep.subr.bf16.mxu0 %v10193_v10 }
 0x19d   :  { %v8127_v46 = vmul.f32 -1.442695, %v1031_v39  ;;  %v1035_v47 = vadd.f32 %v1034_v44, %v10426_v21  ;;  %v1231_v48 = vpop.f32.mrb[8].mxu1 }
 0x19e   :  { %9907 = vpow2.f32 %v8126_v42  ;;  %v8128_v49 = vmul.f32 -1.442695, %v1033_v43  ;;  %v3179_v50 = vld [vmem:[#allocation2 + $0x28] sm:$0xff]  ;;  %v1232_v52 = vadd.f32 %v1231_v48, %v10424_v20  ;;  %v1233_v53 = vpop.f32.mrb[9].mxu1 }
 0x19f   :  { %9909 = vpow2.f32 %v8127_v46  ;;  %v8129_v55 = vmul.f32 -1.442695, %v1035_v47  ;;  %3286 = vmatpush1.bf16.msra.mxu0 %v9478_v41  ;;  %8382 = vmatprep.mubr.msk.bf16.mxu0 %vm261_vm12, %v3179_v50  ;;  %v1234_v60 = vadd.f32 %v1233_v53, %v10426_v21  ;;  %v1235_v61 = vpop.f32.mrb[10].mxu1  ;;  %v9487_v43 = vld [vmem:[#allocation5 + $0x28] sm:$0xff]  }
 0x1a0   :  { %9911 = vpow2.f32 %v8128_v49  ;;  %3287 = vmatprep.subr.bf16.mxu0 %v10193_v10  ;;  %v8150_v1 = vmul.f32 -1.442695, %v1232_v52  ;;  %v1236_v28 = vadd.f32 %v1235_v61, %v10424_v20  ;;  %v1237_v62 = vpop.f32.mrb[11].mxu1 }
 0x1a1   :  { %9913 = vpow2.f32 %v8129_v55  ;;  %v8151_v0 = vmul.f32 -1.442695, %v1234_v60  ;;  %v1238_v2 = vadd.f32 %v1237_v62, %v10426_v21  ;;  %v9488_v60 = vld [vmem:[#allocation5 + $0x30] sm:$0xff]  }
 0x1a2   :  { %9915 = vpow2.f32 %v8150_v1  ;;  %v8152_v4 = vmul.f32 -1.442695, %v1236_v28 }
 0x1a3   :  { %3288 = vmatpush1.bf16.msra.mxu0 %v9479_v57  ;;  %9917 = vpow2.f32 %v8151_v0  ;;  %v8153_v5 = vmul.f32 -1.442695, %v1238_v2 }
 0x1a4   :  { %3289 = vmatprep.subr.bf16.mxu0 %v10193_v10  ;;  %9919 = vpow2.f32 %v8152_v4 }
 0x1a5   :  { %9921 = vpow2.f32 %v8153_v5 }
 0x1a7   :  { %3290 = vmatpush1.bf16.msra.mxu0 %v9480_v11  ;;  %v9489_v11 = vld [vmem:[#allocation5 + $0x38] sm:$0xff]  }
 0x1a8   :  { %v9908_v8 = vpop.eup %9907  ;;  %3291 = vmatprep.subr.bf16.mxu0 %v10193_v10 }
 0x1a9   :  { %v9910_v9 = vpop.eup %9909  ;;  %v1049_v12 = vadd.f32 1.0, %v9908_v8 }
 0x1aa   :  { %v9912_v13 = vpop.eup %9911  ;;  %v1050_v14 = vadd.f32 1.0, %v9910_v9 }
 0x1ab   :  { %v9914_v15 = vpop.eup %9913  ;;  %9923 = vrcp.f32 %v1049_v12  ;;  %v1051_v58 = vadd.f32 1.0, %v9912_v13  ;;  %3292 = vmatpush1.bf16.msra.mxu0 %v3269_v7  ;;  %v9490_v7 = vld [vmem:[#allocation5 + $0x40] sm:$0xff]  }
 0x1ac   :  { %v9916_v17 = vpop.eup %9915  ;;  %9925 = vrcp.f32 %v1050_v14  ;;  %v1052_v56 = vadd.f32 1.0, %v9914_v15  ;;  %3660 = vmatprep.subr.bf16.mxu0 %v10193_v10  ;;  %v9492_v15 = vld [vmem:[#allocation5 + $0x50] ss:$0 sps:$4 sm:$0xff]  }
 0x1ad   :  { %v9918_v59 = vpop.eup %9917  ;;  %9927 = vrcp.f32 %v1051_v58  ;;  %v1252_v54 = vadd.f32 1.0, %v9916_v17  ;;  %v9491_v17 = vld [vmem:[#allocation5 + $0x48] sm:$0xff]  }
 0x1ae   :  { %v9920_v19 = vpop.eup %9919  ;;  %9929 = vrcp.f32 %v1052_v56  ;;  %3304 = vmatmul.mubr.bf16.vlgmr.msra.gmra.mrb[32].mxu0 %v10510_v26  ;;  %v1253_v45 = vadd.f32 1.0, %v9918_v59 }
 0x1af   :  { %v9922_v18 = vpop.eup %9921  ;;  %3661 = vmatpush1.bf16.msra.mxu0 %v9482_v16  ;;  %8416 = vmatprep.mubr.msk.bf16.mxu0 %vm261_vm12, %v10469_v51  ;;  %9931 = vrcp.f32 %v1252_v54  ;;  %v1254_v6 = vadd.f32 1.0, %v9920_v19 }
 0x1b0   :  { %3662 = vmatprep.subr.bf16.mxu0 %v10193_v10  ;;  %9933 = vrcp.f32 %v1253_v45  ;;  %v1255_v23 = vadd.f32 1.0, %v9922_v18 }
 0x1b1   :  { %9935 = vrcp.f32 %v1254_v6 }
 0x1b2   :  { %9937 = vrcp.f32 %v1255_v23  ;;  %v3658_v23 = vsel %vm3023_vm15, %v9492_v15, 0 }
 0x1b3   :  { %3663 = vmatpush1.bf16.msra.mxu0 %v9483_v22 }
 0x1b4   :  { %3664 = vmatprep.subr.bf16.mxu0 %v10193_v10 }
 0x1b5   :  { %v9924_v24 = vpop.eup %9923 }
 0x1b6   :  { %v9926_v26 = vpop.eup %9925 }
 0x1b7   :  { %v9928_v27 = vpop.eup %9927  ;;  %3665 = vmatpush1.bf16.msra.mxu0 %v9484_v3 }
 0x1b8   :  { %v9930_v29 = vpop.eup %9929  ;;  %v1061_v51 = vpack.c.bf16 %v9928_v27, %v9924_v24  ;;  %3666 = vmatprep.subr.bf16.mxu0 %v10193_v10  ;;  %v9493_v24 = vld [vmem:[#allocation5 + $0xfc] sm:$0xff]  }
 0x1b9   :  { %v9932_v30 = vpop.eup %9931  ;;  %v1062_v31 = vpack.c.bf16 %v9930_v29, %v9926_v26  ;;  %v9494_v26 = vld [vmem:[#allocation5 + $0x104] sm:$0xff]  }
 0x1ba   :  { %v9934_v33 = vpop.eup %9933  ;;  %1064 = vst [vmem:[#allocation2 + $0x40] sm:$0xff] %v1061_v51  ;;  %v10123_v29 = vld [vmem:[#allocation2] sm:$0xff]  ;;  %v10557_v51 = vld [vmem:[#allocation2 + $0x38] sm:$0xff] }
 0x1bb   :  { %v9936_v34 = vpop.eup %9935  ;;  %1065 = vst.msk [vmem:[#allocation2 + $0x48] sm:$0xff] %vm261_vm12, %v1062_v31  ;;  %3667 = vmatpush1.bf16.msra.mxu0 %v9485_v25 }
 0x1bc   :  { %v9938_v36 = vpop.eup %9937  ;;  %3668 = vmatprep.subr.bf16.mxu0 %v10193_v10  ;;  %v1264_v35 = vpack.c.bf16 %v9936_v34, %v9932_v30 }
 0x1bd   :  { %v1434_v37 = vpop.f32.mrb[12].mxu0  ;;  %v1265_v38 = vpack.c.bf16 %v9938_v36, %v9934_v33  ;;  %v9495_v36 = vld [vmem:[#allocation5 + $0x10c] sm:$0xff]  }
 0x1be   :  { %v1435_v39 = vadd.f32 %v1434_v37, %v10424_v20  ;;  %v1436_v40 = vpop.f32.mrb[13].mxu0  ;;  %1267 = vst [vmem:[#allocation2 + $0x50] sm:$0xff] %v1264_v35 }
 0x1bf   :  { %v1437_v41 = vadd.f32 %v1436_v40, %v10426_v21  ;;  %v1438_v42 = vpop.f32.mrb[14].mxu0  ;;  %3669 = vmatpush1.bf16.msra.mxu0 %v9486_v32  ;;  %1268 = vst.msk [vmem:[#allocation2 + $0x58] sm:$0xff] %vm261_vm12, %v1265_v38 }
 0x1c0   :  { %v8174_v44 = vmul.f32 -1.442695, %v1435_v39  ;;  %v1439_v46 = vadd.f32 %v1438_v42, %v10424_v20  ;;  %v1440_v47 = vpop.f32.mrb[15].mxu0  ;;  %3670 = vmatprep.subr.bf16.mxu0 %v10193_v10 }
 0x1c1   :  { %v8175_v48 = vmul.f32 -1.442695, %v1437_v41  ;;  %v1441_v49 = vadd.f32 %v1440_v47, %v10426_v21  ;;  %v1637_v50 = vpop.f32.mrb[12].mxu1  ;;  %v9496_v47 = vld [vmem:[#allocation5 + $0x114] sm:$0xff]  }
 0x1c2   :  { %9939 = vpow2.f32 %v8174_v44  ;;  %v8176_v52 = vmul.f32 -1.442695, %v1439_v46  ;;  %v1638_v53 = vadd.f32 %v1637_v50, %v10424_v20  ;;  %v1639_v55 = vpop.f32.mrb[13].mxu1 }
 0x1c3   :  { %9941 = vpow2.f32 %v8175_v48  ;;  %v8177_v57 = vmul.f32 -1.442695, %v1441_v49  ;;  %3671 = vmatpush1.bf16.msra.mxu0 %v9487_v43  ;;  %v1640_v61 = vadd.f32 %v1639_v55, %v10426_v21  ;;  %v1641_v1 = vpop.f32.mrb[14].mxu1 }
 0x1c4   :  { %9943 = vpow2.f32 %v8176_v52  ;;  %3672 = vmatprep.subr.bf16.mxu0 %v10193_v10  ;;  %v8198_v28 = vmul.f32 -1.442695, %v1638_v53  ;;  %v1642_v62 = vadd.f32 %v1641_v1, %v10424_v20  ;;  %v1643_v63 = vpop.f32.mrb[15].mxu1 }
 0x1c5   :  { %9945 = vpow2.f32 %v8177_v57  ;;  %v8199_v0 = vmul.f32 -1.442695, %v1640_v61  ;;  %v1644_v2 = vadd.f32 %v1643_v63, %v10426_v21 }
 0x1c6   :  { %9947 = vpow2.f32 %v8198_v28  ;;  %v8200_v4 = vmul.f32 -1.442695, %v1642_v62  ;;  %v9497_v28 = vld [vmem:[#allocation5 + $0x11c] sm:$0xff]  }
 0x1c7   :  { %3673 = vmatpush1.bf16.msra.mxu0 %v9488_v60  ;;  %9949 = vpow2.f32 %v8199_v0  ;;  %v8201_v5 = vmul.f32 -1.442695, %v1644_v2 }
 0x1c8   :  { %3674 = vmatprep.subr.bf16.mxu0 %v10193_v10  ;;  %9951 = vpow2.f32 %v8200_v4 }
 0x1c9   :  { %9953 = vpow2.f32 %v8201_v5 }
 0x1cb   :  { %3675 = vmatpush1.bf16.msra.mxu0 %v9489_v11 }
 0x1cc   :  { %v9940_v8 = vpop.eup %9939  ;;  %3676 = vmatprep.subr.bf16.mxu0 %v10193_v10 }
 0x1cd   :  { %v9942_v9 = vpop.eup %9941  ;;  %v1455_v12 = vadd.f32 1.0, %v9940_v8 }
 0x1ce   :  { %v9944_v13 = vpop.eup %9943  ;;  %v1456_v14 = vadd.f32 1.0, %v9942_v9 }
 0x1cf   :  { %v9946_v58 = vpop.eup %9945  ;;  %9955 = vrcp.f32 %v1455_v12  ;;  %v1457_v16 = vadd.f32 1.0, %v9944_v13  ;;  %3677 = vmatpush1.bf16.msra.mxu0 %v9490_v7  ;;  %v9498_v7 = vld [vmem:[#allocation5 + $0x124] sm:$0xff]   ;;  %v9499_v12 = vld [vmem:[#allocation5 + $0x12c] sm:$0xff]  }
 0x1d0   :  { %v9948_v56 = vpop.eup %9947  ;;  %9957 = vrcp.f32 %v1456_v14  ;;  %v1458_v59 = vadd.f32 1.0, %v9946_v58  ;;  %3678 = vmatprep.subr.bf16.mxu0 %v10193_v10 }
 0x1d1   :  { %v9950_v54 = vpop.eup %9949  ;;  %9959 = vrcp.f32 %v1457_v16  ;;  %v1658_v19 = vadd.f32 1.0, %v9948_v56 }
 0x1d2   :  { %v9952_v45 = vpop.eup %9951  ;;  %9961 = vrcp.f32 %v1458_v59  ;;  %v1659_v18 = vadd.f32 1.0, %v9950_v54  ;;  %v9500_v59 = vld [vmem:[#allocation5 + $0x134] sm:$0xff]  }
 0x1d3   :  { %v9954_v22 = vpop.eup %9953  ;;  %3679 = vmatpush1.bf16.msra.mxu0 %v9491_v17  ;;  %9963 = vrcp.f32 %v1658_v19  ;;  %v1660_v6 = vadd.f32 1.0, %v9952_v45 }
 0x1d4   :  { %3680 = vmatprep.subr.bf16.mxu0 %v10193_v10  ;;  %9965 = vrcp.f32 %v1659_v18  ;;  %v1661_v3 = vadd.f32 1.0, %v9954_v22 }
 0x1d5   :  { %9967 = vrcp.f32 %v1660_v6 }
 0x1d6   :  { %9969 = vrcp.f32 %v1661_v3  ;;  %v9501_v3 = vld [vmem:[#allocation5 + $0x13c] sm:$0xff]  }
 0x1d7   :  { %3681 = vmatpush1.bf16.msra.mxu0 %v3658_v23 }
 0x1d8   :  { %3928 = vmatprep.subr.bf16.mxu0 %v10193_v10 }
 0x1d9   :  { %v9956_v25 = vpop.eup %9955 }
 0x1da   :  { %v9958_v27 = vpop.eup %9957  ;;  %3693 = vmatmul.mubr.bf16.vlgmr.msra.gmra.mrb[36].mxu0 %v10123_v29 }
 0x1db   :  { %v9960_v30 = vpop.eup %9959  ;;  %3929 = vmatpush1.bf16.msra.mxu0 %v9493_v24  ;;  %8440 = vmatprep.mubr.msk.bf16.mxu0 %vm261_vm12, %v10557_v51 }
 0x1dc   :  { %v9962_v31 = vpop.eup %9961  ;;  %v1467_v32 = vpack.c.bf16 %v9960_v30, %v9956_v25  ;;  %3930 = vmatprep.subr.bf16.mxu0 %v10193_v10 }
 0x1dd   :  { %v9964_v33 = vpop.eup %9963  ;;  %v1468_v34 = vpack.c.bf16 %v9962_v31, %v9958_v27  ;;  %v9503_v27 = vld [vmem:[#allocation5 + $0x14c] ss:$0 sps:$4 sm:$0xff]  }
 0x1de   :  { %v9966_v35 = vpop.eup %9965  ;;  %1470 = vst [vmem:[#allocation2 + $0x60] sm:$0xff] %v1467_v32  ;;  %v3926_v32 = vsel %vm3023_vm15, %v9503_v27, 0 }
 0x1df   :  { %v9968_v37 = vpop.eup %9967  ;;  %1471 = vst.msk [vmem:[#allocation2 + $0x68] sm:$0xff] %vm261_vm12, %v1468_v34  ;;  %3931 = vmatpush1.bf16.msra.mxu0 %v9494_v26  ;;  %v9502_v26 = vld [vmem:[#allocation5 + $0x144] sm:$0xff]  }
 0x1e0   :  { %v9970_v38 = vpop.eup %9969  ;;  %3932 = vmatprep.subr.bf16.mxu0 %v10193_v10  ;;  %v1670_v39 = vpack.c.bf16 %v9968_v37, %v9964_v33  ;;  %v9504_v37 = vld [vmem:[#allocation5 + $0x54] sm:$0xff]  }
 0x1e1   :  { %v1840_v40 = vpop.f32.mrb[16].mxu0  ;;  %v1671_v41 = vpack.c.bf16 %v9970_v38, %v9966_v35 }
 0x1e2   :  { %v1841_v42 = vadd.f32 %v1840_v40, %v10424_v20  ;;  %v1842_v43 = vpop.f32.mrb[17].mxu0  ;;  %1673 = vst [vmem:[#allocation2 + $0x70] sm:$0xff] %v1670_v39 }
 0x1e3   :  { %v1843_v44 = vadd.f32 %v1842_v43, %v10426_v21  ;;  %v1844_v46 = vpop.f32.mrb[18].mxu0  ;;  %3933 = vmatpush1.bf16.msra.mxu0 %v9495_v36  ;;  %1674 = vst.msk [vmem:[#allocation2 + $0x78] sm:$0xff] %vm261_vm12, %v1671_v41 }
 0x1e4   :  { %v8222_v48 = vmul.f32 -1.442695, %v1841_v42  ;;  %v1845_v49 = vadd.f32 %v1844_v46, %v10424_v20  ;;  %v1846_v50 = vpop.f32.mrb[19].mxu0  ;;  %3934 = vmatprep.subr.bf16.mxu0 %v10193_v10 }
 0x1e5   :  { %v8223_v52 = vmul.f32 -1.442695, %v1843_v44  ;;  %v1847_v53 = vadd.f32 %v1846_v50, %v10426_v21  ;;  %v2043_v55 = vpop.f32.mrb[16].mxu1  ;;  %v9505_v50 = vld [vmem:[#allocation5 + $0x5c] sm:$0xff]  }
 0x1e6   :  { %9971 = vpow2.f32 %v8222_v48  ;;  %v8224_v57 = vmul.f32 -1.442695, %v1845_v49  ;;  %v2044_v60 = vadd.f32 %v2043_v55, %v10424_v20  ;;  %v2045_v61 = vpop.f32.mrb[17].mxu1 }
 0x1e7   :  { %9973 = vpow2.f32 %v8223_v52  ;;  %v8225_v1 = vmul.f32 -1.442695, %v1847_v53  ;;  %3935 = vmatpush1.bf16.msra.mxu0 %v9496_v47  ;;  %v2046_v62 = vadd.f32 %v2045_v61, %v10426_v21  ;;  %v2047_v63 = vpop.f32.mrb[18].mxu1  ;;  %v10585_v47 = vld [vmem:[#allocation2 + $0x30] sm:$0xff] }
 0x1e8   :  { %9975 = vpow2.f32 %v8224_v57  ;;  %3936 = vmatprep.subr.bf16.mxu0 %v10193_v10  ;;  %v8246_v0 = vmul.f32 -1.442695, %v2044_v60  ;;  %v2048_v2 = vadd.f32 %v2047_v63, %v10424_v20  ;;  %v2049_v11 = vpop.f32.mrb[19].mxu1 }
 0x1e9   :  { %9977 = vpow2.f32 %v8225_v1  ;;  %v8247_v4 = vmul.f32 -1.442695, %v2046_v62  ;;  %v2050_v5 = vadd.f32 %v2049_v11, %v10426_v21 }
 0x1ea   :  { %9979 = vpow2.f32 %v8246_v0  ;;  %v8248_v8 = vmul.f32 -1.442695, %v2048_v2  ;;  %v9506_v0 = vld [vmem:[#allocation5 + $0x64] sm:$0xff]  }
 0x1eb   :  { %3937 = vmatpush1.bf16.msra.mxu0 %v9497_v28  ;;  %9981 = vpow2.f32 %v8247_v4  ;;  %v8249_v9 = vmul.f32 -1.442695, %v2050_v5  ;;  %v10194_v4 = vmov 0.0  }
 0x1ec   :  { %3938 = vmatprep.subr.bf16.mxu0 %v10193_v10  ;;  %9983 = vpow2.f32 %v8248_v8  ;;  %8910 = vmatprep.subr.bf16.mxu1 %v10194_v4 }
 0x1ed   :  { %9985 = vpow2.f32 %v8249_v9  ;;  %8922 = vmatprep.mubr.msk.bf16.mxu1 %vm10195_vm1, %v10194_v4 }
 0x1ef   :  { %3939 = vmatpush1.bf16.msra.mxu0 %v9498_v7 }
 0x1f0   :  { %v9972_v13 = vpop.eup %9971  ;;  %3940 = vmatprep.subr.bf16.mxu0 %v10193_v10 }
 0x1f1   :  { %v9974_v14 = vpop.eup %9973  ;;  %v1861_v15 = vadd.f32 1.0, %v9972_v13  ;;  %v9507_v13 = vld [vmem:[#allocation5 + $0x6c] sm:$0xff]  }
 0x1f2   :  { %v9976_v58 = vpop.eup %9975  ;;  %v1862_v16 = vadd.f32 1.0, %v9974_v14 }
 0x1f3   :  { %v9978_v17 = vpop.eup %9977  ;;  %9987 = vrcp.f32 %v1861_v15  ;;  %v1863_v56 = vadd.f32 1.0, %v9976_v58  ;;  %3941 = vmatpush1.bf16.msra.mxu0 %v9499_v12  ;;  %v9540_v15 = vld [vmem:[%s11339_s5 + $0x8] sm:$0xff]  }
 0x1f4   :  { %v9980_v54 = vpop.eup %9979  ;;  %9989 = vrcp.f32 %v1862_v16  ;;  %v1864_v19 = vadd.f32 1.0, %v9978_v17  ;;  %3942 = vmatprep.subr.bf16.mxu0 %v10193_v10  ;;  %v9508_v16 = vld [vmem:[#allocation5 + $0x74] sm:$0xff]  }
 0x1f5   :  { %v9982_v45 = vpop.eup %9981  ;;  %9991 = vrcp.f32 %v1863_v56  ;;  %v2064_v18 = vadd.f32 1.0, %v9980_v54  ;;  %v9542_v17 = vld [vmem:[%s11339_s5 + $0x10] sm:$0xff]  }
 0x1f6   :  { %v9984_v22 = vpop.eup %9983  ;;  %9993 = vrcp.f32 %v1864_v19  ;;  %v2065_v6 = vadd.f32 1.0, %v9982_v45 }
 0x1f7   :  { %v9986_v23 = vpop.eup %9985  ;;  %3943 = vmatpush1.bf16.msra.mxu0 %v9500_v59  ;;  %9995 = vrcp.f32 %v2064_v18  ;;  %v2066_v24 = vadd.f32 1.0, %v9984_v22  ;;  %v9544_v18 = vld [vmem:[%s11339_s5 + $0x18] sm:$0xff]  }
 0x1f8   :  { %3944 = vmatprep.subr.bf16.mxu0 %v10193_v10  ;;  %9997 = vrcp.f32 %v2065_v6  ;;  %v2067_v25 = vadd.f32 1.0, %v9986_v23  ;;  %v9509_v23 = vld [vmem:[#allocation5 + $0x7c] sm:$0xff]  }
 0x1f9   :  { %9999 = vrcp.f32 %v2066_v24 }
 0x1fa   :  { %10001 = vrcp.f32 %v2067_v25 }
 0x1fb   :  { %3945 = vmatpush1.bf16.msra.mxu0 %v9501_v3 }
 0x1fc   :  { %3946 = vmatprep.subr.bf16.mxu0 %v10193_v10 }
 0x1fd   :  { %v9988_v29 = vpop.eup %9987 }
 0x1fe   :  { %v9990_v30 = vpop.eup %9989 }
 0x1ff   :  { %v9992_v31 = vpop.eup %9991  ;;  %3947 = vmatpush1.bf16.msra.mxu0 %v9502_v26 }
 0x200   :  { %v9994_v33 = vpop.eup %9993  ;;  %v1873_v34 = vpack.c.bf16 %v9992_v31, %v9988_v29  ;;  %3948 = vmatprep.subr.bf16.mxu0 %v10193_v10 }
 0x201   :  { %v9996_v36 = vpop.eup %9995  ;;  %v1874_v35 = vpack.c.bf16 %v9994_v33, %v9990_v30  ;;  %v9546_v30 = vld [vmem:[%s11339_s5 + $0x20] sm:$0xff]  }
 0x202   :  { %v9998_v38 = vpop.eup %9997  ;;  %1876 = vst [vmem:[#allocation2 + $0x80] sm:$0xff] %v1873_v34 }
 0x203   :  { %v10000_v39 = vpop.eup %9999  ;;  %1877 = vst.msk [vmem:[#allocation2 + $0x88] sm:$0xff] %vm261_vm12, %v1874_v35  ;;  %3949 = vmatpush1.bf16.msra.mxu0 %v3926_v32  ;;  %v9510_v32 = vld [vmem:[#allocation5 + $0x84] sm:$0xff]   ;;  %v9511_v35 = vld [vmem:[#allocation5 + $0x8c] sm:$0xff]  }
 0x204   :  { %v10002_v40 = vpop.eup %10001  ;;  %4334 = vmatprep.subr.bf16.mxu0 %v10193_v10  ;;  %v2076_v41 = vpack.c.bf16 %v10000_v39, %v9996_v36  ;;  %v9548_v36 = vld [vmem:[%s11339_s5 + $0x28] ss:$0 sps:$4 sm:$0x33]  }
 0x205   :  { %v2253_v42 = vpop.f32.mrb[20].mxu0  ;;  %v2077_v43 = vpack.c.bf16 %v10002_v40, %v9998_v38 }
 0x206   :  { %v2254_v44 = vadd.f32 %v2253_v42, %v10424_v20  ;;  %v2255_v46 = vpop.f32.mrb[21].mxu0  ;;  %3961 = vmatmul.mubr.bf16.vlgmr.msra.gmra.mrb[40].mxu0 %v10585_v47  ;;  %2079 = vst [vmem:[#allocation2 + $0x90] sm:$0xff] %v2076_v41  ;;  %v9512_v41 = vld [vmem:[#allocation5 + $0x94] sm:$0xff]  }
 0x207   :  { %v2256_v48 = vadd.f32 %v2255_v46, %v10426_v21  ;;  %v2257_v49 = vpop.f32.mrb[22].mxu0  ;;  %4335 = vmatpush1.bf16.msra.mxu0 %v9504_v37  ;;  %8484 = vmatprep.mubr.msk.bf16.mxu0 %vm261_vm12, %v10557_v51  ;;  %2080 = vst.msk [vmem:[#allocation2 + $0x98] sm:$0xff] %vm261_vm12, %v2077_v43  ;;  %v9538_v51 = vld [vmem:[%s11339_s5] sm:$0xff]   ;;  %v3387_v37 = vsel %vm3385_vm0, %v9548_v36, 0 }
 0x208   :  { %v8270_v52 = vmul.f32 -1.442695, %v2254_v44  ;;  %v2258_v53 = vadd.f32 %v2257_v49, %v10424_v20  ;;  %v2259_v55 = vpop.f32.mrb[23].mxu0  ;;  %4336 = vmatprep.subr.bf16.mxu0 %v10193_v10  ;;  %8911 = vmatpush3.bf16.msra.mxu1 %v9538_v51  ;;  %v9519_v36 = vld [vmem:[#allocation5 + $0x20] sm:$0xff]  }
 0x209   :  { %v8271_v57 = vmul.f32 -1.442695, %v2256_v48  ;;  %v2260_v60 = vadd.f32 %v2259_v55, %v10426_v21  ;;  %v2456_v61 = vpop.f32.mrb[20].mxu1  ;;  %8912 = vmatprep.subr.bf16.mxu1 %v10194_v4  ;;  %v9514_v55 = vld [vmem:[#allocation5 + $0xa4] ss:$0 sps:$4 sm:$0xff]  }
 0x20a   :  { %10003 = vpow2.f32 %v8270_v52  ;;  %v8272_v1 = vmul.f32 -1.442695, %v2258_v53  ;;  %v2457_v28 = vadd.f32 %v2456_v61, %v10424_v20  ;;  %v2458_v62 = vpop.f32.mrb[21].mxu1 }
 0x20b   :  { %10005 = vpow2.f32 %v8271_v57  ;;  %v8273_v63 = vmul.f32 -1.442695, %v2260_v60  ;;  %4337 = vmatpush1.bf16.msra.mxu0 %v9505_v50  ;;  %v2459_v2 = vadd.f32 %v2458_v62, %v10426_v21  ;;  %v2460_v11 = vpop.f32.mrb[22].mxu1  ;;  %v9513_v50 = vld [vmem:[#allocation5 + $0x9c] sm:$0xff]  }
 0x20c   :  { %10007 = vpow2.f32 %v8272_v1  ;;  %4338 = vmatprep.subr.bf16.mxu0 %v10193_v10  ;;  %v8294_v5 = vmul.f32 -1.442695, %v2457_v28  ;;  %v2461_v7 = vadd.f32 %v2460_v11, %v10424_v20  ;;  %v2462_v8 = vpop.f32.mrb[23].mxu1  ;;  %8913 = vmatpush3.bf16.msra.mxu1 %v9540_v15 }
 0x20d   :  { %10009 = vpow2.f32 %v8273_v63  ;;  %v8295_v9 = vmul.f32 -1.442695, %v2459_v2  ;;  %v2463_v12 = vadd.f32 %v2462_v8, %v10426_v21  ;;  %8914 = vmatprep.subr.bf16.mxu1 %v10194_v4  ;;  %v4332_v2 = vsel %vm3023_vm15, %v9514_v55, 0 }
 0x20e   :  { %10011 = vpow2.f32 %v8294_v5  ;;  %v8296_v14 = vmul.f32 -1.442695, %v2461_v7 }
 0x20f   :  { %4339 = vmatpush1.bf16.msra.mxu0 %v9506_v0  ;;  %10013 = vpow2.f32 %v8295_v9  ;;  %v8297_v58 = vmul.f32 -1.442695, %v2463_v12 }
 0x210   :  { %4340 = vmatprep.subr.bf16.mxu0 %v10193_v10  ;;  %10015 = vpow2.f32 %v8296_v14  ;;  %8915 = vmatpush3.bf16.msra.mxu1 %v9542_v17  ;;  %v9515_v14 = vld [vmem:[#allocation5] sm:$0xff]  }
 0x211   :  { %10017 = vpow2.f32 %v8297_v58  ;;  %8916 = vmatprep.subr.bf16.mxu1 %v10194_v4 }
 0x213   :  { %4341 = vmatpush1.bf16.msra.mxu0 %v9507_v13 }
 0x214   :  { %v10004_v56 = vpop.eup %10003  ;;  %4342 = vmatprep.subr.bf16.mxu0 %v10193_v10  ;;  %8917 = vmatpush3.bf16.msra.mxu1 %v9544_v18  ;;  %v9516_v18 = vld [vmem:[#allocation5 + $0x8] sm:$0xff]  }
 0x215   :  { %v10006_v59 = vpop.eup %10005  ;;  %v2274_v54 = vadd.f32 1.0, %v10004_v56  ;;  %8918 = vmatprep.subr.bf16.mxu1 %v10194_v4 }
 0x216   :  { %v10008_v19 = vpop.eup %10007  ;;  %v2275_v45 = vadd.f32 1.0, %v10006_v59 }
 0x217   :  { %v10010_v22 = vpop.eup %10009  ;;  %10019 = vrcp.f32 %v2274_v54  ;;  %v2276_v6 = vadd.f32 1.0, %v10008_v19  ;;  %4343 = vmatpush1.bf16.msra.mxu0 %v9508_v16 }
 0x218   :  { %v10012_v3 = vpop.eup %10011  ;;  %10021 = vrcp.f32 %v2275_v45  ;;  %v2277_v24 = vadd.f32 1.0, %v10010_v22  ;;  %4344 = vmatprep.subr.bf16.mxu0 %v10193_v10  ;;  %8919 = vmatpush3.bf16.msra.mxu1 %v9546_v30  ;;  %v10125_v45 = vld [vmem:[#allocation2 + $0x28] sm:$0xff] }
 0x219   :  { %v10014_v25 = vpop.eup %10013  ;;  %10023 = vrcp.f32 %v2276_v6  ;;  %v2477_v26 = vadd.f32 1.0, %v10012_v3  ;;  %8920 = vmatprep.subr.bf16.mxu1 %v10194_v4 }
 0x21a   :  { %v10016_v27 = vpop.eup %10015  ;;  %10025 = vrcp.f32 %v2277_v24  ;;  %v2478_v29 = vadd.f32 1.0, %v10014_v25 }
 0x21b   :  { %v10018_v31 = vpop.eup %10017  ;;  %4345 = vmatpush1.bf16.msra.mxu0 %v9509_v23  ;;  %10027 = vrcp.f32 %v2477_v26  ;;  %v2479_v33 = vadd.f32 1.0, %v10016_v27  ;;  %v9518_v26 = vld [vmem:[#allocation5 + $0x18] sm:$0xff]  }
 0x21c   :  { %4346 = vmatprep.subr.bf16.mxu0 %v10193_v10  ;;  %10029 = vrcp.f32 %v2478_v29  ;;  %v2480_v34 = vadd.f32 1.0, %v10018_v31  ;;  %8921 = vmatpush3.bf16.msra.mxu1 %v3387_v37 }
 0x21d   :  { %10031 = vrcp.f32 %v2479_v33  ;;  %3550 = vmatprep.subr.bf16.mxu1 %v10193_v10 }
 0x21e   :  { %10033 = vrcp.f32 %v2480_v34 }
 0x21f   :  { %4347 = vmatpush1.bf16.msra.mxu0 %v9510_v32 }
 0x220   :  { %4348 = vmatprep.subr.bf16.mxu0 %v10193_v10 }
 0x221   :  { %v10020_v38 = vpop.eup %10019 }
 0x222   :  { %v10022_v39 = vpop.eup %10021 }
 0x223   :  { %v10024_v40 = vpop.eup %10023  ;;  %4349 = vmatpush1.bf16.msra.mxu0 %v9511_v35 }
 0x224   :  { %v10026_v42 = vpop.eup %10025  ;;  %v2286_v43 = vpack.c.bf16 %v10024_v40, %v10020_v38  ;;  %4350 = vmatprep.subr.bf16.mxu0 %v10193_v10  ;;  %v9520_v38 = vld [vmem:[#allocation5 + $0x28] sm:$0xff]  }
 0x225   :  { %v10028_v44 = vpop.eup %10027  ;;  %v2287_v46 = vpack.c.bf16 %v10026_v42, %v10022_v39  ;;  %v9521_v42 = vld [vmem:[#allocation5 + $0x30] sm:$0xff]  }
 0x226   :  { %v10030_v48 = vpop.eup %10029  ;;  %2289 = vst [vmem:[#allocation2 + $0xa0] sm:$0xff] %v2286_v43 }
 0x227   :  { %v10032_v49 = vpop.eup %10031  ;;  %2290 = vst.msk [vmem:[#allocation2 + $0xa8] sm:$0xff] %vm261_vm12, %v2287_v46  ;;  %4351 = vmatpush1.bf16.msra.mxu0 %v9512_v41 }
 0x228   :  { %v10034_v52 = vpop.eup %10033  ;;  %4352 = vmatprep.subr.bf16.mxu0 %v10193_v10  ;;  %v2489_v53 = vpack.c.bf16 %v10032_v49, %v10028_v44 }
 0x229   :  { %v2659_v57 = vpop.f32.mrb[24].mxu0  ;;  %v2490_v60 = vpack.c.bf16 %v10034_v52, %v10030_v48  ;;  %v9522_v52 = vld [vmem:[#allocation5 + $0x38] sm:$0xff]  }
 0x22a   :  { %v2660_v61 = vadd.f32 %v2659_v57, %v10424_v20  ;;  %v2661_v1 = vpop.f32.mrb[25].mxu0  ;;  %2492 = vst [vmem:[#allocation2 + $0xb0] sm:$0xff] %v2489_v53 }
 0x22b   :  { %v2662_v28 = vadd.f32 %v2661_v1, %v10426_v21  ;;  %v2663_v62 = vpop.f32.mrb[26].mxu0  ;;  %4353 = vmatpush1.bf16.msra.mxu0 %v9513_v50  ;;  %2493 = vst.msk [vmem:[#allocation2 + $0xb8] sm:$0xff] %vm261_vm12, %v2490_v60  ;;  %v9523_v60 = vld [vmem:[#allocation5 + $0x40] sm:$0xff]   ;;  %v9525_v1 = vld [vmem:[#allocation5 + $0x50] ss:$0 sps:$4 sm:$0xff]  }
 0x22c   :  { %v8318_v51 = vmul.f32 -1.442695, %v2660_v61  ;;  %v2664_v63 = vadd.f32 %v2663_v62, %v10424_v20  ;;  %v2665_v0 = vpop.f32.mrb[27].mxu0  ;;  %4354 = vmatprep.subr.bf16.mxu0 %v10193_v10  ;;  %v9524_v61 = vld [vmem:[#allocation5 + $0x48] sm:$0xff]  }
 0x22d   :  { %v8319_v11 = vmul.f32 -1.442695, %v2662_v28  ;;  %v2666_v5 = vadd.f32 %v2665_v0, %v10426_v21  ;;  %v2862_v7 = vpop.f32.mrb[24].mxu1  ;;  %v4442_v0 = vsel %vm3023_vm15, %v9525_v1, 0 }
 0x22e   :  { %10035 = vpow2.f32 %v8318_v51  ;;  %v8320_v8 = vmul.f32 -1.442695, %v2664_v63  ;;  %v2863_v9 = vadd.f32 %v2862_v7, %v10424_v20  ;;  %v2864_v12 = vpop.f32.mrb[25].mxu1 }
 0x22f   :  { %10037 = vpow2.f32 %v8319_v11  ;;  %v8321_v13 = vmul.f32 -1.442695, %v2666_v5  ;;  %4355 = vmatpush1.bf16.msra.mxu0 %v4332_v2  ;;  %v2865_v15 = vadd.f32 %v2864_v12, %v10426_v21  ;;  %v2866_v58 = vpop.f32.mrb[26].mxu1 }
 0x230   :  { %10039 = vpow2.f32 %v8320_v8  ;;  %4444 = vmatprep.subr.bf16.mxu0 %v10193_v10  ;;  %v8342_v16 = vmul.f32 -1.442695, %v2863_v9  ;;  %v2867_v17 = vadd.f32 %v2866_v58, %v10424_v20  ;;  %v2868_v56 = vpop.f32.mrb[27].mxu1  ;;  %v9517_v20 = vld [vmem:[#allocation5 + $0x10] sm:$0xff]   ;;  %v9526_v8 = vld [vmem:[#allocation5 + $0xfc] sm:$0xff]  }
 0x231   :  { %10041 = vpow2.f32 %v8321_v13  ;;  %v8343_v59 = vmul.f32 -1.442695, %v2865_v15  ;;  %v2869_v54 = vadd.f32 %v2868_v56, %v10426_v21  ;;  %v10664_v13 = vld [vmem:[#allocation2 + $0x20] sm:$0xff]  ;;  %v9528_v58 = vld [vmem:[#allocation5 + $0x10c] sm:$0xff]  }
 0x232   :  { %4367 = vmatmul.mubr.bf16.vlgmr.msra.gmra.mrb[44].mxu0 %v10585_v47  ;;  %10043 = vpow2.f32 %v8342_v16  ;;  %v8344_v19 = vmul.f32 -1.442695, %v2867_v17  ;;  %v9527_v15 = vld [vmem:[#allocation5 + $0x104] sm:$0xff]   ;;  %v9529_v16 = vld [vmem:[#allocation5 + $0x114] sm:$0xff]   ;;  %v9530_v17 = vld [vmem:[#allocation5 + $0x11c] sm:$0xff]  }
 0x233   :  { %4445 = vmatpush1.bf16.msra.mxu0 %v9515_v14  ;;  %8496 = vmatprep.mubr.msk.bf16.mxu0 %vm261_vm12, %v10125_v45  ;;  %10045 = vpow2.f32 %v8343_v59  ;;  %v8345_v22 = vmul.f32 -1.442695, %v2869_v54  ;;  %v4621_v14 = vld [vmem:[#allocation2 + $0x58] sm:$0xff]  ;;  %v9531_v56 = vld [vmem:[#allocation5 + $0x124] sm:$0xff]   ;;  %v9532_v59 = vld [vmem:[#allocation5 + $0x12c] sm:$0xff]  }
 0x234   :  { %4446 = vmatprep.subr.bf16.mxu0 %v10193_v10  ;;  %10047 = vpow2.f32 %v8344_v19  ;;  %v9533_v54 = vld [vmem:[#allocation5 + $0x134] sm:$0xff]   ;;  %v9534_v19 = vld [vmem:[#allocation5 + $0x13c] sm:$0xff]   ;;  %v9535_v45 = vld [vmem:[#allocation5 + $0x144] sm:$0xff]  }
 0x235   :  { %10049 = vpow2.f32 %v8345_v22  ;;  %v8383_v22 = vld [vmem:[%s11338_s4] ss:$0 sm:$0xff] }
 0x237   :  { %4447 = vmatpush1.bf16.msra.mxu0 %v9516_v18  ;;  %v9536_v18 = vld [vmem:[#allocation5 + $0x14c] ss:$0 sps:$4 sm:$0xff]  }
 0x238   :  { %v10036_v6 = vpop.eup %10035  ;;  %4448 = vmatprep.subr.bf16.mxu0 %v10193_v10 }
 0x239   :  { %v10038_v21 = vpop.eup %10037  ;;  %v2680_v47 = vadd.f32 1.0, %v10036_v6 }
 0x23a   :  { %v10040_v23 = vpop.eup %10039  ;;  %v2681_v3 = vadd.f32 1.0, %v10038_v21 }
 0x23b   :  { %v10042_v24 = vpop.eup %10041  ;;  %10051 = vrcp.f32 %v2680_v47  ;;  %v2682_v25 = vadd.f32 1.0, %v10040_v23  ;;  %4449 = vmatpush1.bf16.msra.mxu0 %v9517_v20 }
 0x23c   :  { %v10044_v27 = vpop.eup %10043  ;;  %10053 = vrcp.f32 %v2681_v3  ;;  %v2683_v29 = vadd.f32 1.0, %v10042_v24  ;;  %4450 = vmatprep.subr.bf16.mxu0 %v10193_v10 }
 0x23d   :  { %v10046_v30 = vpop.eup %10045  ;;  %10055 = vrcp.f32 %v2682_v25  ;;  %v2883_v31 = vadd.f32 1.0, %v10044_v27  ;;  %v4710_v25 = vsel %vm3023_vm15, %v9536_v18, 0  ;;  %v9573_v18 = vld [vmem:[#allocation5 + $0xe0] sm:$0xff]  }
 0x23e   :  { %v10048_v32 = vpop.eup %10047  ;;  %10057 = vrcp.f32 %v2683_v29  ;;  %v2884_v33 = vadd.f32 1.0, %v10046_v30  ;;  %v9537_v29 = vld [vmem:[#allocation5 + $0x54] sm:$0xff]  }
 0x23f   :  { %v10050_v34 = vpop.eup %10049  ;;  %4451 = vmatpush1.bf16.msra.mxu0 %v9518_v26  ;;  %10059 = vrcp.f32 %v2883_v31  ;;  %v2885_v35 = vadd.f32 1.0, %v10048_v32  ;;  %v10126_v31 = vld [vmem:[#allocation2 + $0x50] sm:$0xff]  ;;  %v9539_v32 = vld [vmem:[#allocation5 + $0x5c] sm:$0xff]  }
 0x240   :  { %4452 = vmatprep.subr.bf16.mxu0 %v10193_v10  ;;  %10061 = vrcp.f32 %v2884_v33  ;;  %v2886_v37 = vadd.f32 1.0, %v10050_v34  ;;  %v9541_v33 = vld [vmem:[#allocation5 + $0x64] sm:$0xff]  }
 0x241   :  { %10063 = vrcp.f32 %v2885_v35  ;;  %v9543_v35 = vld [vmem:[#allocation5 + $0x6c] sm:$0xff]  }
 0x242   :  { %10065 = vrcp.f32 %v2886_v37 }
 0x243   :  { %4453 = vmatpush1.bf16.msra.mxu0 %v9519_v36 }
 0x244   :  { %4454 = vmatprep.subr.bf16.mxu0 %v10193_v10 }
 0x245   :  { %v10052_v39 = vpop.eup %10051 }
 0x246   :  { %v10054_v40 = vpop.eup %10053 }
 0x247   :  { %v10056_v41 = vpop.eup %10055  ;;  %4455 = vmatpush1.bf16.msra.mxu0 %v9520_v38 }
 0x248   :  { %v10058_v43 = vpop.eup %10057  ;;  %v2692_v44 = vpack.c.bf16 %v10056_v41, %v10052_v39  ;;  %4456 = vmatprep.subr.bf16.mxu0 %v10193_v10  ;;  %v9545_v39 = vld [vmem:[#allocation5 + $0x74] sm:$0xff]   ;;  %v9549_v41 = vld [vmem:[#allocation5 + $0x84] sm:$0xff]  }
 0x249   :  { %v10060_v46 = vpop.eup %10059  ;;  %v2693_v48 = vpack.c.bf16 %v10058_v43, %v10054_v40  ;;  %v9547_v40 = vld [vmem:[#allocation5 + $0x7c] sm:$0xff]  }
 0x24a   :  { %v10062_v49 = vpop.eup %10061  ;;  %2695 = vst [vmem:[#allocation2 + $0xc0] sm:$0xff] %v2692_v44  ;;  %v9550_v44 = vld [vmem:[#allocation5 + $0x54] sm:$0xff]  }
 0x24b   :  { %v10064_v50 = vpop.eup %10063  ;;  %2696 = vst.msk [vmem:[#allocation2 + $0xc8] sm:$0xff] %vm261_vm12, %v2693_v48  ;;  %4457 = vmatpush1.bf16.msra.mxu0 %v9521_v42  ;;  %v9551_v48 = vld [vmem:[#allocation5 + $0x8c] sm:$0xff]  }
 0x24c   :  { %v10066_v53 = vpop.eup %10065  ;;  %4458 = vmatprep.subr.bf16.mxu0 %v10193_v10  ;;  %v2895_v55 = vpack.c.bf16 %v10064_v50, %v10060_v46  ;;  %v9552_v50 = vld [vmem:[#allocation5 + $0x5c] sm:$0xff]  }
 0x24d   :  { %v2896_v57 = vpack.c.bf16 %v10066_v53, %v10062_v49  ;;  %v3458_v49 = vld [vmem:[#allocation2 + $0x18] sm:$0xff]  ;;  %v9554_v53 = vld [vmem:[#allocation5 + $0x64] sm:$0xff]  }
 0x24e   :  { %2898 = vst [vmem:[#allocation2 + $0xd0] sm:$0xff] %v2895_v55  ;;  %v9555_v55 = vld [vmem:[#allocation5 + $0x9c] sm:$0xff]  }
 0x24f   :  { %4459 = vmatpush1.bf16.msra.mxu0 %v9522_v52  ;;  %2899 = vst.msk [vmem:[#allocation2 + $0xd8] sm:$0xff] %vm261_vm12, %v2896_v57  ;;  %v9553_v52 = vld [vmem:[#allocation5 + $0x94] sm:$0xff]   ;;  %v9557_v57 = vld [vmem:[#allocation5 + $0xa4] ss:$0 sps:$4 sm:$0xff]  }
 0x250   :  { %4460 = vmatprep.subr.bf16.mxu0 %v10193_v10 }
 0x253   :  { %4461 = vmatpush1.bf16.msra.mxu0 %v9523_v60 }
 0x254   :  { %4462 = vmatprep.subr.bf16.mxu0 %v10193_v10 }
 0x255   :  { %v3061_v28 = vpop.f32.mrb[28].mxu0 }
 0x256   :  { %v3063_v62 = vpop.f32.mrb[29].mxu0 }
 0x257   :  { %v3064_v51 = vpop.f32.mrb[30].mxu0  ;;  %4463 = vmatpush1.bf16.msra.mxu0 %v9524_v61  ;;  %v9556_v61 = vld [vmem:[#allocation5 + $0x6c] sm:$0xff]  }
 0x258   :  { %v3066_v63 = vpop.f32.mrb[31].mxu0  ;;  %4464 = vmatprep.subr.bf16.mxu0 %v10193_v10 }
 0x259   :  { %v3171_v2 = vpop.f32.mrb[28].mxu1  ;;  %v9558_v63 = vld [vmem:[#allocation5 + $0x74] sm:$0xff]  }
 0x25a   :  { %v3172_v11 = vadd.f32 %v3171_v2, %v3061_v28  ;;  %v3173_v5 = vpop.f32.mrb[29].mxu1  ;;  %v5026_v2 = vld [vmem:[#allocation2 + $0x50] sm:$0xff] }
 0x25b   :  { %v3174_v7 = vpop.f32.mrb[30].mxu1  ;;  %4465 = vmatpush1.bf16.msra.mxu0 %v4442_v0  ;;  %v9559_v0 = vld [vmem:[#allocation5 + $0xa8] sm:$0xff]  }
 0x25c   :  { %v3175_v9 = vadd.f32 %v3174_v7, %v3064_v51  ;;  %v3176_v12 = vpop.f32.mrb[31].mxu1  ;;  %4712 = vmatprep.subr.bf16.mxu0 %v10193_v10  ;;  %v5116_v51 = vsel %vm3023_vm15, %v9557_v57, 0  ;;  %v5270_v5 = vld [vmem:[#allocation2 + $0x68] sm:$0xff]  ;;  %v9561_v7 = vld [vmem:[#allocation5 + $0xb0] sm:$0xff]   ;;  %v9598_v57 = vld [vmem:[#allocation5 + $0x160] sm:$0xff]  }
 0x25d   :  { %v9564_v12 = vld [vmem:[#allocation5 + $0x8c] sm:$0xff]  }
 0x25e   :  { %4477 = vmatmul.mubr.bf16.vlgmr.msra.gmra.mrb[48].mxu0 %v10664_v13 }
 0x25f   :  { %4713 = vmatpush1.bf16.msra.mxu0 %v9526_v8  ;;  %8520 = vmatprep.mubr.msk.bf16.mxu0 %vm261_vm12, %v4621_v14  ;;  %v9562_v8 = vld [vmem:[#allocation5 + $0x84] sm:$0xff]  }
 0x260   :  { %4714 = vmatprep.subr.bf16.mxu0 %v10193_v10 }
 0x263   :  { %4715 = vmatpush1.bf16.msra.mxu0 %v9527_v15  ;;  %v9566_v15 = vld [vmem:[#allocation5 + $0x94] sm:$0xff]  }
 0x264   :  { %4716 = vmatprep.subr.bf16.mxu0 %v10193_v10 }
 0x267   :  { %4717 = vmatpush1.bf16.msra.mxu0 %v9528_v58  ;;  %v9567_v58 = vld [vmem:[#allocation5 + $0xc8] sm:$0xff]  }
 0x268   :  { %4718 = vmatprep.subr.bf16.mxu0 %v10193_v10 }
 0x26b   :  { %4719 = vmatpush1.bf16.msra.mxu0 %v9529_v16  ;;  %v9568_v16 = vld [vmem:[#allocation5 + $0x9c] sm:$0xff]  }
 0x26c   :  { %4720 = vmatprep.subr.bf16.mxu0 %v10193_v10 }
 0x26f   :  { %4721 = vmatpush1.bf16.msra.mxu0 %v9530_v17  ;;  %v9570_v17 = vld [vmem:[#allocation5 + $0xa4] ss:$0 sps:$4 sm:$0xff]  }
 0x270   :  { %4722 = vmatprep.subr.bf16.mxu0 %v10193_v10 }
 0x273   :  { %4723 = vmatpush1.bf16.msra.mxu0 %v9531_v56  ;;  %v9569_v56 = vld [vmem:[#allocation5 + $0xd0] sm:$0xff]  }
 0x274   :  { %4724 = vmatprep.subr.bf16.mxu0 %v10193_v10 }
 0x277   :  { %4725 = vmatpush1.bf16.msra.mxu0 %v9532_v59  ;;  %v3548_v59 = vsel %vm3023_vm15, %v9570_v17, 0  ;;  %v9610_v17 = vld [vmem:[#allocation5 + $0x190] sm:$0xff]  }
 0x278   :  { %4726 = vmatprep.subr.bf16.mxu0 %v10193_v10 }
 0x27b   :  { %4727 = vmatpush1.bf16.msra.mxu0 %v9533_v54  ;;  %v9571_v54 = vld [vmem:[#allocation5 + $0xd8] sm:$0xff]  }
 0x27c   :  { %4728 = vmatprep.subr.bf16.mxu0 %v10193_v10 }
 0x27f   :  { %4729 = vmatpush1.bf16.msra.mxu0 %v9534_v19  ;;  %v9572_v19 = vld [vmem:[#allocation5 + $0xa8] sm:$0xff]  }
 0x280   :  { %4730 = vmatprep.subr.bf16.mxu0 %v10193_v10 }
 0x281   :  { %v3305_v20 = vpop.f32.mrb[32].mxu0 }
 0x282   :  { %v3312_v6 = vadd.f32 %v3305_v20, %v3172_v11  ;;  %v3307_v21 = vpop.f32.mrb[33].mxu0  ;;  %v9560_v11 = vld [vmem:[#allocation5 + $0x7c] sm:$0xff]   ;;  %v9574_v20 = vld [vmem:[#allocation5 + $0xb0] sm:$0xff]  }
 0x283   :  { %v3308_v47 = vpop.f32.mrb[34].mxu0  ;;  %4731 = vmatpush1.bf16.msra.mxu0 %v9535_v45  ;;  %v3457_v45 = vld [vmem:[#allocation2 + $0x10] sm:$0xff]  ;;  %v9576_v21 = vld [vmem:[#allocation5 + $0xb8] sm:$0xff]  }
 0x284   :  { %v3320_v23 = vadd.f32 %v8383_v22, %v3312_v6  ;;  %v3313_v3 = vadd.f32 %v3308_v47, %v3175_v9  ;;  %v3310_v24 = vpop.f32.mrb[35].mxu0  ;;  %4732 = vmatprep.subr.bf16.mxu0 %v10193_v10  ;;  %v9563_v9 = vld [vmem:[#allocation5 + $0xb8] sm:$0xff]   ;;  %v9575_v6 = vld [vmem:[#allocation5 + $0xe8] sm:$0xff]   ;;  %v9577_v47 = vld [vmem:[#allocation5 + $0xf0] sm:$0xff]  }
 0x285   :  { %v9578_v24 = vld [vmem:[#allocation5 + $0xc0] sm:$0xff]  }
 0x286   :  { %v8384_v26 = vmul.f32 -1.442695, %v3320_v23  ;;  %v3321_v27 = vadd.f32 %v8383_v22, %v3313_v3  ;;  %v3702_v22 = vld [vmem:[#allocation2 + $0x28] sm:$0xff]  ;;  %v9579_v23 = vld [vmem:[#allocation5 + $0xf8] ss:$0 sps:$4 sm:$0xff]  }
 0x287   :  { %4733 = vmatpush1.bf16.msra.mxu0 %v4710_v25 }
 0x288   :  { %10067 = vpow2.f32 %v8384_v26  ;;  %v8385_v30 = vmul.f32 -1.442695, %v3321_v27  ;;  %5118 = vmatprep.subr.bf16.mxu0 %v10193_v10 }
 0x28a   :  { %10069 = vpow2.f32 %v8385_v30  ;;  %4745 = vmatmul.mubr.bf16.vlgmr.msra.gmra.mrb[52].mxu0 %v10126_v31  ;;  %v9580_v30 = vld [vmem:[#allocation5 + $0xc8] sm:$0xff]   ;;  %v9581_v31 = vld [vmem:[#allocation5 + $0x150] sm:$0xff]  }
 0x28b   :  { %5119 = vmatpush1.bf16.msra.mxu0 %v9537_v29  ;;  %8564 = vmatprep.mubr.msk.bf16.mxu0 %vm261_vm12, %v4621_v14  ;;  %v9565_v14 = vld [vmem:[#allocation5 + $0xc0] sm:$0xff]   ;;  %v5359_v29 = vsel %vm3023_vm15, %v9579_v23, 0 }
 0x28c   :  { %5120 = vmatprep.subr.bf16.mxu0 %v10193_v10 }
 0x28f   :  { %5121 = vmatpush1.bf16.msra.mxu0 %v9539_v32  ;;  %v5269_v32 = vld [vmem:[#allocation2 + $0x60] sm:$0xff] }
 0x290   :  { %5122 = vmatprep.subr.bf16.mxu0 %v10193_v10 }
 0x292   :  { %v10068_v34 = vpop.eup %10067 }
 0x293   :  { %v3328_v36 = vadd.f32 1.0, %v10068_v34  ;;  %5123 = vmatpush1.bf16.msra.mxu0 %v9541_v33  ;;  %v9582_v33 = vld [vmem:[#allocation5 + $0xd0] sm:$0xff]   ;;  %v10737_v34 = vld [vmem:[#allocation2 + $0x88] sm:$0xff] }
 0x294   :  { %v10070_v37 = vpop.eup %10069  ;;  %5124 = vmatprep.subr.bf16.mxu0 %v10193_v10 }
 0x295   :  { %v3329_v38 = vadd.f32 1.0, %v10070_v37  ;;  %10071 = vrcp.f32 %v3328_v36  ;;  %v9583_v36 = vld [vmem:[#allocation5 + $0x158] sm:$0xff]   ;;  %v9585_v37 = vld [vmem:[#allocation5 + $0x160] sm:$0xff]  }
 0x297   :  { %10073 = vrcp.f32 %v3329_v38  ;;  %5125 = vmatpush1.bf16.msra.mxu0 %v9543_v35  ;;  %v9584_v35 = vld [vmem:[#allocation5 + $0xd8] sm:$0xff]   ;;  %v9586_v38 = vld [vmem:[#allocation5 + $0xe0] sm:$0xff]  }
 0x298   :  { %5126 = vmatprep.subr.bf16.mxu0 %v10193_v10 }
 0x29b   :  { %5127 = vmatpush1.bf16.msra.mxu0 %v9545_v39  ;;  %v9587_v39 = vld [vmem:[#allocation5 + $0x168] sm:$0xff]  }
 0x29c   :  { %5128 = vmatprep.subr.bf16.mxu0 %v10193_v10 }
 0x29f   :  { %5129 = vmatpush1.bf16.msra.mxu0 %v9547_v40  ;;  %v10072_v42 = vpop.eup %10071  ;;  %v9588_v40 = vld [vmem:[#allocation5 + $0xe8] sm:$0xff]  }
 0x2a0   :  { %5130 = vmatprep.subr.bf16.mxu0 %v10193_v10 }
 0x2a1   :  { %v10074_v43 = vpop.eup %10073 }
 0x2a2   :  { %v3334_v46 = vpack.c.bf16 %v10074_v43, %v10072_v42  ;;  %v9590_v42 = vld [vmem:[#allocation5 + $0xf0] sm:$0xff]   ;;  %v9592_v43 = vld [vmem:[#allocation5 + $0xf8] ss:$0 sps:$4 sm:$0xff]  }
 0x2a3   :  { %5131 = vmatpush1.bf16.msra.mxu0 %v9549_v41  ;;  %v9589_v41 = vld [vmem:[#allocation5 + $0x170] sm:$0xff]  }
 0x2a4   :  { %8923 = vmatmul.mubr.msk.bf16.vlgmr.msra.gmra.mrb[32].mxu1 %vm3381_vm2, %v3334_v46  ;;  %5132 = vmatprep.subr.bf16.mxu0 %v10193_v10  ;;  %v3791_v46 = vsel %vm3023_vm15, %v9592_v43, 0  ;;  %v9629_v43 = vld [vmem:[#allocation5 + $0xf0] sm:$0xff]  }
 0x2a5   :  { %3551 = vmatpush1.bf16.msra.mxu1 %v9550_v44  ;;  %8404 = vmatprep.mubr.msk.bf16.mxu1 %vm261_vm12, %v3458_v49  ;;  %v9591_v44 = vld [vmem:[#allocation5 + $0x178] sm:$0xff]   ;;  %v9594_v49 = vld [vmem:[#allocation5 + $0x150] sm:$0xff]  }
 0x2a6   :  { %3552 = vmatprep.subr.bf16.mxu1 %v10193_v10 }
 0x2a7   :  { %5133 = vmatpush1.bf16.msra.mxu0 %v9551_v48  ;;  %v9593_v48 = vld [vmem:[#allocation5 + $0x180] sm:$0xff]  }
 0x2a8   :  { %5134 = vmatprep.subr.bf16.mxu0 %v10193_v10 }
 0x2a9   :  { %3553 = vmatpush1.bf16.msra.mxu1 %v9552_v50  ;;  %v9595_v50 = vld [vmem:[#allocation5 + $0x188] sm:$0xff]  }
 0x2aa   :  { %3554 = vmatprep.subr.bf16.mxu1 %v10193_v10 }
 0x2ab   :  { %5135 = vmatpush1.bf16.msra.mxu0 %v9553_v52  ;;  %v3972_v52 = vld [vmem:[#allocation2 + $0x48] sm:$0xff] }
 0x2ac   :  { %5136 = vmatprep.subr.bf16.mxu0 %v10193_v10 }
 0x2ad   :  { %3555 = vmatpush1.bf16.msra.mxu1 %v9554_v53  ;;  %v10697_v60 = vpop.f32.mrb[36].mxu0  ;;  %v9596_v53 = vld [vmem:[#allocation5 + $0x158] sm:$0xff]  }
 0x2ae   :  { %v3696_v1 = vpop.f32.mrb[37].mxu0  ;;  %3556 = vmatprep.subr.bf16.mxu1 %v10193_v10 }
 0x2af   :  { %v10700_v28 = vpop.f32.mrb[38].mxu0  ;;  %5137 = vmatpush1.bf16.msra.mxu0 %v9555_v55  ;;  %v9597_v55 = vld [vmem:[#allocation5 + $0x190] sm:$0xff]  }
 0x2b0   :  { %v3699_v62 = vpop.f32.mrb[39].mxu0  ;;  %5138 = vmatprep.subr.bf16.mxu0 %v10193_v10 }
 0x2b1   :  { %3557 = vmatpush1.bf16.msra.mxu1 %v9556_v61  ;;  %v9599_v61 = vld [vmem:[#allocation5 + $0x198] sm:$0xff]   ;;  %v9600_v62 = vld [vmem:[#allocation5 + $0x168] sm:$0xff]  }
 0x2b2   :  { %3558 = vmatprep.subr.bf16.mxu1 %v10193_v10 }
 0x2b3   :  { %5139 = vmatpush1.bf16.msra.mxu0 %v5116_v51 }
 0x2b4   :  { %5361 = vmatprep.subr.bf16.mxu0 %v10193_v10 }
 0x2b5   :  { %3559 = vmatpush1.bf16.msra.mxu1 %v9558_v63 }
 0x2b6   :  { %5151 = vmatmul.mubr.bf16.vlgmr.msra.gmra.mrb[56].mxu0 %v5026_v2  ;;  %3560 = vmatprep.subr.bf16.mxu1 %v10193_v10 }
 0x2b7   :  { %5362 = vmatpush1.bf16.msra.mxu0 %v9559_v0  ;;  %8588 = vmatprep.mubr.msk.bf16.mxu0 %vm261_vm12, %v5270_v5  ;;  %v9603_v5 = vld [vmem:[#allocation5 + $0x54] sm:$0xff]  }
 0x2b8   :  { %5363 = vmatprep.subr.bf16.mxu0 %v10193_v10 }
 0x2b9   :  { %3561 = vmatpush1.bf16.msra.mxu1 %v9560_v11  ;;  %v9602_v11 = vld [vmem:[#allocation5 + $0x170] sm:$0xff]  }
 0x2ba   :  { %3562 = vmatprep.subr.bf16.mxu1 %v10193_v10 }
 0x2bb   :  { %5364 = vmatpush1.bf16.msra.mxu0 %v9561_v7  ;;  %v10770_v7 = vld [vmem:[#allocation2 + $0x80] sm:$0xff] }
 0x2bc   :  { %5365 = vmatprep.subr.bf16.mxu0 %v10193_v10 }
 0x2bd   :  { %3563 = vmatpush1.bf16.msra.mxu1 %v9562_v8  ;;  %v9604_v8 = vld [vmem:[#allocation5 + $0x178] sm:$0xff]  }
 0x2be   :  { %3564 = vmatprep.subr.bf16.mxu1 %v10193_v10 }
 0x2bf   :  { %5366 = vmatpush1.bf16.msra.mxu0 %v9563_v9  ;;  %v5811_v9 = vld [vmem:[#allocation2 + $0x78] sm:$0xff] }
 0x2c0   :  { %5367 = vmatprep.subr.bf16.mxu0 %v10193_v10 }
 0x2c1   :  { %3565 = vmatpush1.bf16.msra.mxu1 %v9564_v12  ;;  %v9605_v12 = vld [vmem:[#allocation5 + $0x5c] sm:$0xff]  }
 0x2c2   :  { %3566 = vmatprep.subr.bf16.mxu1 %v10193_v10 }
 0x2c3   :  { %5368 = vmatpush1.bf16.msra.mxu0 %v9565_v14  ;;  %v9606_v14 = vld [vmem:[#allocation5 + $0x180] sm:$0xff]  }
 0x2c4   :  { %5369 = vmatprep.subr.bf16.mxu0 %v10193_v10 }
 0x2c5   :  { %3567 = vmatpush1.bf16.msra.mxu1 %v9566_v15  ;;  %v9607_v15 = vld [vmem:[#allocation5 + $0x64] sm:$0xff]  }
 0x2c6   :  { %3568 = vmatprep.subr.bf16.mxu1 %v10193_v10 }
 0x2c7   :  { %5370 = vmatpush1.bf16.msra.mxu0 %v9567_v58  ;;  %v9608_v58 = vld [vmem:[#allocation5 + $0x188] sm:$0xff]  }
 0x2c8   :  { %5371 = vmatprep.subr.bf16.mxu0 %v10193_v10 }
 0x2c9   :  { %3569 = vmatpush1.bf16.msra.mxu1 %v9568_v16  ;;  %v9609_v16 = vld [vmem:[#allocation5 + $0x6c] sm:$0xff]  }
 0x2ca   :  { %3570 = vmatprep.subr.bf16.mxu1 %v10193_v10 }
 0x2cb   :  { %5372 = vmatpush1.bf16.msra.mxu0 %v9569_v56  ;;  %v9611_v56 = vld [vmem:[#allocation5 + $0x74] sm:$0xff]  }
 0x2cc   :  { %5373 = vmatprep.subr.bf16.mxu0 %v10193_v10 }
 0x2cd   :  { %3571 = vmatpush1.bf16.msra.mxu1 %v3548_v59  ;;  %v9612_v59 = vld [vmem:[#allocation5 + $0x198] sm:$0xff]  }
 0x2ce   :  { %3793 = vmatprep.subr.bf16.mxu1 %v10193_v10 }
 0x2cf   :  { %5374 = vmatpush1.bf16.msra.mxu0 %v9571_v54  ;;  %v9614_v54 = vld [vmem:[#allocation5 + $0x1a0] ss:$0 sps:$4 sm:$0xff]  }
 0x2d0   :  { %3583 = vmatmul.mubr.bf16.vlgmr.msra.gmra.mrb[36].mxu1 %v3457_v45  ;;  %5375 = vmatprep.subr.bf16.mxu0 %v10193_v10  ;;  %v4061_v45 = vsel %vm3023_vm15, %v9614_v54, 0  ;;  %v9643_v54 = vld [vmem:[#allocation5 + $0x8] sm:$0xff]  }
 0x2d1   :  { %3794 = vmatpush1.bf16.msra.mxu1 %v9572_v19  ;;  %8428 = vmatprep.mubr.msk.bf16.mxu1 %vm261_vm12, %v3702_v22  ;;  %v9613_v19 = vld [vmem:[#allocation5 + $0x7c] sm:$0xff]  }
 0x2d2   :  { %3795 = vmatprep.subr.bf16.mxu1 %v10193_v10  ;;  %v3971_v22 = vld [vmem:[#allocation2 + $0x40] sm:$0xff] }
 0x2d3   :  { %5376 = vmatpush1.bf16.msra.mxu0 %v9573_v18  ;;  %v9615_v18 = vld [vmem:[#allocation5 + $0x84] sm:$0xff]  }
 0x2d4   :  { %5377 = vmatprep.subr.bf16.mxu0 %v10193_v10 }
 0x2d5   :  { %3796 = vmatpush1.bf16.msra.mxu1 %v9574_v20  ;;  %v9616_v20 = vld [vmem:[#allocation5 + $0x8c] sm:$0xff]  }
 0x2d6   :  { %3797 = vmatprep.subr.bf16.mxu1 %v10193_v10 }
 0x2d7   :  { %5378 = vmatpush1.bf16.msra.mxu0 %v9575_v6  ;;  %v9617_v6 = vld [vmem:[#allocation5 + $0x94] sm:$0xff]  }
 0x2d8   :  { %5379 = vmatprep.subr.bf16.mxu0 %v10193_v10 }
 0x2d9   :  { %3798 = vmatpush1.bf16.msra.mxu1 %v9576_v21  ;;  %v10727_v3 = vpop.f32.mrb[40].mxu0  ;;  %v9618_v21 = vld [vmem:[#allocation5 + $0x9c] sm:$0xff]  }
 0x2da   :  { %v3964_v25 = vpop.f32.mrb[41].mxu0  ;;  %3799 = vmatprep.subr.bf16.mxu1 %v10193_v10 }
 0x2db   :  { %v10730_v26 = vpop.f32.mrb[42].mxu0  ;;  %5380 = vmatpush1.bf16.msra.mxu0 %v9577_v47  ;;  %v9619_v47 = vld [vmem:[#allocation5 + $0xa4] ss:$0 sps:$4 sm:$0xff]  }
 0x2dc   :  { %v3967_v27 = vpop.f32.mrb[43].mxu0  ;;  %5381 = vmatprep.subr.bf16.mxu0 %v10193_v10 }
 0x2dd   :  { %3800 = vmatpush1.bf16.msra.mxu1 %v9578_v24 }
 0x2de   :  { %3801 = vmatprep.subr.bf16.mxu1 %v10193_v10 }
 0x2df   :  { %5382 = vmatpush1.bf16.msra.mxu0 %v5359_v29 }
 0x2e0   :  { %5631 = vmatprep.subr.bf16.mxu0 %v10193_v10 }
 0x2e1   :  { %3802 = vmatpush1.bf16.msra.mxu1 %v9580_v30 }
 0x2e2   :  { %5394 = vmatmul.mubr.bf16.vlgmr.msra.gmra.mrb[60].mxu0 %v5269_v32  ;;  %3803 = vmatprep.subr.bf16.mxu1 %v10193_v10  ;;  %v9620_v32 = vld [vmem:[#allocation5 + $0xa8] sm:$0xff]  }
 0x2e3   :  { %5632 = vmatpush1.bf16.msra.mxu0 %v9581_v31  ;;  %8612 = vmatprep.mubr.msk.bf16.mxu0 %vm261_vm12, %v10737_v34  ;;  %v5900_v31 = vsel %vm3023_vm15, %v9619_v47, 0 }
 0x2e4   :  { %5633 = vmatprep.subr.bf16.mxu0 %v10193_v10 }
 0x2e5   :  { %3804 = vmatpush1.bf16.msra.mxu1 %v9582_v33  ;;  %v5810_v33 = vld [vmem:[#allocation2 + $0x70] sm:$0xff] }
 0x2e6   :  { %3805 = vmatprep.subr.bf16.mxu1 %v10193_v10 }
 0x2e7   :  { %5634 = vmatpush1.bf16.msra.mxu0 %v9583_v36  ;;  %v9621_v36 = vld [vmem:[#allocation5 + $0xb0] sm:$0xff]  }
 0x2e8   :  { %5635 = vmatprep.subr.bf16.mxu0 %v10193_v10 }
 0x2e9   :  { %3806 = vmatpush1.bf16.msra.mxu1 %v9584_v35  ;;  %v9622_v35 = vld [vmem:[#allocation5 + $0xb8] sm:$0xff]  }
 0x2ea   :  { %3807 = vmatprep.subr.bf16.mxu1 %v10193_v10 }
 0x2eb   :  { %5636 = vmatpush1.bf16.msra.mxu0 %v9585_v37  ;;  %v9623_v37 = vld [vmem:[#allocation5 + $0xc0] sm:$0xff]  }
 0x2ec   :  { %5637 = vmatprep.subr.bf16.mxu0 %v10193_v10 }
 0x2ed   :  { %3808 = vmatpush1.bf16.msra.mxu1 %v9586_v38  ;;  %v9624_v38 = vld [vmem:[#allocation5 + $0xc8] sm:$0xff]  }
 0x2ee   :  { %3809 = vmatprep.subr.bf16.mxu1 %v10193_v10 }
 0x2ef   :  { %5638 = vmatpush1.bf16.msra.mxu0 %v9587_v39  ;;  %v9625_v39 = vld [vmem:[#allocation5 + $0xd0] sm:$0xff]  }
 0x2f0   :  { %5639 = vmatprep.subr.bf16.mxu0 %v10193_v10 }
 0x2f1   :  { %3810 = vmatpush1.bf16.msra.mxu1 %v9588_v40  ;;  %v9626_v40 = vld [vmem:[#allocation5 + $0xd8] sm:$0xff]  }
 0x2f2   :  { %3811 = vmatprep.subr.bf16.mxu1 %v10193_v10 }
 0x2f3   :  { %5640 = vmatpush1.bf16.msra.mxu0 %v9589_v41  ;;  %v9627_v41 = vld [vmem:[#allocation5 + $0xe0] sm:$0xff]  }
 0x2f4   :  { %5641 = vmatprep.subr.bf16.mxu0 %v10193_v10 }
 0x2f5   :  { %3812 = vmatpush1.bf16.msra.mxu1 %v9590_v42  ;;  %v9628_v42 = vld [vmem:[#allocation5 + $0xe8] sm:$0xff]  }
 0x2f6   :  { %3813 = vmatprep.subr.bf16.mxu1 %v10193_v10 }
 0x2f7   :  { %5642 = vmatpush1.bf16.msra.mxu0 %v9591_v44  ;;  %v9630_v44 = vld [vmem:[#allocation5 + $0xf8] ss:$0 sps:$4 sm:$0xff]  }
 0x2f8   :  { %5643 = vmatprep.subr.bf16.mxu0 %v10193_v10 }
 0x2f9   :  { %3814 = vmatpush1.bf16.msra.mxu1 %v3791_v46 }
 0x2fa   :  { %4063 = vmatprep.subr.bf16.mxu1 %v10193_v10 }
 0x2fb   :  { %5644 = vmatpush1.bf16.msra.mxu0 %v9593_v48 }
 0x2fc   :  { %3826 = vmatmul.mubr.bf16.vlgmr.msra.gmra.mrb[40].mxu1 %v10664_v13  ;;  %5645 = vmatprep.subr.bf16.mxu0 %v10193_v10  ;;  %v9601_v13 = vld [vmem:[#allocation5 + $0x1a0] ss:$0 sps:$4 sm:$0xff]  }
 0x2fd   :  { %4064 = vmatpush1.bf16.msra.mxu1 %v9594_v49  ;;  %8452 = vmatprep.mubr.msk.bf16.mxu1 %vm261_vm12, %v3972_v52  ;;  %v5629_v2 = vsel %vm3023_vm15, %v9601_v13, 0  ;;  %v6143_v52 = vsel %vm3023_vm15, %v9630_v44, 0  ;;  %v9634_v13 = vld [vmem:[#allocation5 + $0x168] sm:$0xff]   ;;  %v9656_v44 = vld [vmem:[#allocation5 + $0x114] sm:$0xff]  }
 0x2fe   :  { %4065 = vmatprep.subr.bf16.mxu1 %v10193_v10 }
 0x2ff   :  { %5646 = vmatpush1.bf16.msra.mxu0 %v9595_v50 }
 0x300   :  { %5647 = vmatprep.subr.bf16.mxu0 %v10193_v10 }
 0x301   :  { %4066 = vmatpush1.bf16.msra.mxu1 %v9596_v53  ;;  %v9631_v53 = vld [vmem:[#allocation5 + $0x150] sm:$0xff]  }
 0x302   :  { %4067 = vmatprep.subr.bf16.mxu1 %v10193_v10 }
 0x303   :  { %5648 = vmatpush1.bf16.msra.mxu0 %v9597_v55  ;;  %v10821_v55 = vld [vmem:[#allocation2 + $0xa8] sm:$0xff] }
 0x304   :  { %5649 = vmatprep.subr.bf16.mxu0 %v10193_v10 }
 0x305   :  { %4068 = vmatpush1.bf16.msra.mxu1 %v9598_v57  ;;  %v10761_v1 = vpop.f32.mrb[44].mxu0  ;;  %v9632_v57 = vld [vmem:[#allocation5 + $0x158] sm:$0xff]  }
 0x306   :  { %v4370_v51 = vpop.f32.mrb[45].mxu0  ;;  %4069 = vmatprep.subr.bf16.mxu1 %v10193_v10 }
 0x307   :  { %v10764_v63 = vpop.f32.mrb[46].mxu0  ;;  %5650 = vmatpush1.bf16.msra.mxu0 %v9599_v61  ;;  %v9633_v61 = vld [vmem:[#allocation5 + $0x160] sm:$0xff]  }
 0x308   :  { %v4373_v0 = vpop.f32.mrb[47].mxu0  ;;  %5651 = vmatprep.subr.bf16.mxu0 %v10193_v10  ;;  %v9637_v51 = vld [vmem:[#allocation5 + $0x180] sm:$0xff]  }
 0x309   :  { %4070 = vmatpush1.bf16.msra.mxu1 %v9600_v62  ;;  %v9636_v62 = vld [vmem:[#allocation5 + $0x178] sm:$0xff]   ;;  %v9639_v0 = vld [vmem:[#allocation5 + $0x190] sm:$0xff]  }
 0x30a   :  { %4071 = vmatprep.subr.bf16.mxu1 %v10193_v10 }
 0x30b   :  { %5652 = vmatpush1.bf16.msra.mxu0 %v5629_v2  ;;  %v9671_v2 = vld [vmem:[%s11339_s5 + $0x2c] sm:$0xff]  }
 0x30c   :  { %5902 = vmatprep.subr.bf16.mxu0 %v10193_v10 }
 0x30d   :  { %4072 = vmatpush1.bf16.msra.mxu1 %v9602_v11  ;;  %v9640_v11 = vld [vmem:[#allocation5 + $0x198] sm:$0xff]  }
 0x30e   :  { %5664 = vmatmul.mubr.bf16.vlgmr.msra.gmra.mrb[64].mxu0 %v10770_v7  ;;  %4073 = vmatprep.subr.bf16.mxu1 %v10193_v10 }
 0x30f   :  { %5903 = vmatpush1.bf16.msra.mxu0 %v9603_v5  ;;  %8644 = vmatprep.mubr.msk.bf16.mxu0 %vm261_vm12, %v5811_v9  ;;  %v9641_v5 = vld [vmem:[#allocation5 + $0x1a0] ss:$0 sps:$4 sm:$0xff]  }
 0x310   :  { %5904 = vmatprep.subr.bf16.mxu0 %v10193_v10 }
 0x311   :  { %4074 = vmatpush1.bf16.msra.mxu1 %v9604_v8  ;;  %v9673_v8 = vld [vmem:[%s11339_s5 + $0x34] sm:$0xff]  }
 0x312   :  { %4075 = vmatprep.subr.bf16.mxu1 %v10193_v10 }
 0x313   :  { %5905 = vmatpush1.bf16.msra.mxu0 %v9605_v12 }
 0x314   :  { %5906 = vmatprep.subr.bf16.mxu0 %v10193_v10 }
 0x315   :  { %4076 = vmatpush1.bf16.msra.mxu1 %v9606_v14 }
 0x316   :  { %4077 = vmatprep.subr.bf16.mxu1 %v10193_v10 }
 0x317   :  { %5907 = vmatpush1.bf16.msra.mxu0 %v9607_v15 }
 0x318   :  { %5908 = vmatprep.subr.bf16.mxu0 %v10193_v10 }
 0x319   :  { %4078 = vmatpush1.bf16.msra.mxu1 %v9608_v58  ;;  %v6413_v58 = vsel %vm3023_vm15, %v9641_v5, 0 }
 0x31a   :  { %4079 = vmatprep.subr.bf16.mxu1 %v10193_v10 }
 0x31b   :  { %5909 = vmatpush1.bf16.msra.mxu0 %v9609_v16  ;;  %v9675_v16 = vld [vmem:[%s11339_s5 + $0x3c] sm:$0xff]  }
 0x31c   :  { %5910 = vmatprep.subr.bf16.mxu0 %v10193_v10 }
 0x31d   :  { %4080 = vmatpush1.bf16.msra.mxu1 %v9610_v17  ;;  %v9642_v17 = vld [vmem:[#allocation5] sm:$0xff]  }
 0x31e   :  { %4081 = vmatprep.subr.bf16.mxu1 %v10193_v10 }
 0x31f   :  { %5911 = vmatpush1.bf16.msra.mxu0 %v9611_v56  ;;  %v9677_v56 = vld [vmem:[%s11339_s5 + $0x44] sm:$0xff]  }
 0x320   :  { %5912 = vmatprep.subr.bf16.mxu0 %v10193_v10 }
 0x321   :  { %4082 = vmatpush1.bf16.msra.mxu1 %v9612_v59  ;;  %v10856_v59 = vld [vmem:[#allocation2 + $0xa0] sm:$0xff] }
 0x322   :  { %4083 = vmatprep.subr.bf16.mxu1 %v10193_v10 }
 0x323   :  { %5913 = vmatpush1.bf16.msra.mxu0 %v9613_v19  ;;  %v9679_v19 = vld [vmem:[%s11339_s5 + $0x4c] sm:$0xff]  }
 0x324   :  { %5914 = vmatprep.subr.bf16.mxu0 %v10193_v10 }
 0x325   :  { %4084 = vmatpush1.bf16.msra.mxu1 %v4061_v45  ;;  %v9644_v45 = vld [vmem:[#allocation5 + $0x10] sm:$0xff]  }
 0x326   :  { %8926 = vmatprep.subr.bf16.mxu1 %v10194_v4 }
 0x327   :  { %5915 = vmatpush1.bf16.msra.mxu0 %v9615_v18  ;;  %v9681_v18 = vld [vmem:[%s11339_s5 + $0x54] ss:$0 sps:$4 sm:$0x33]  }
 0x328   :  { %4096 = vmatmul.mubr.bf16.vlgmr.msra.gmra.mrb[44].mxu1 %v3971_v22  ;;  %5916 = vmatprep.subr.bf16.mxu0 %v10193_v10  ;;  %v9645_v22 = vld [vmem:[#allocation5 + $0x18] sm:$0xff]  }
 0x329   :  { %8938 = vmatprep.mubr.msk.bf16.mxu1 %vm10195_vm1, %v10194_v4  ;;  %8927 = vmatpush3.bf16.msra.mxu1 %v9671_v2  ;;  %v9662_v2 = vld [vmem:[#allocation5 + $0x144] sm:$0xff]  }
 0x32a   :  { %8928 = vmatprep.subr.bf16.mxu1 %v10194_v4 }
 0x32b   :  { %5917 = vmatpush1.bf16.msra.mxu0 %v9616_v20  ;;  %v9646_v20 = vld [vmem:[#allocation5 + $0x20] sm:$0xff]  }
 0x32c   :  { %5918 = vmatprep.subr.bf16.mxu0 %v10193_v10 }
 0x32d   :  { %8929 = vmatpush3.bf16.msra.mxu1 %v9673_v8 }
 0x32e   :  { %8930 = vmatprep.subr.bf16.mxu1 %v10194_v4 }
 0x32f   :  { %5919 = vmatpush1.bf16.msra.mxu0 %v9617_v6 }
 0x330   :  { %5920 = vmatprep.subr.bf16.mxu0 %v10193_v10 }
 0x331   :  { %v4478_v23 = vpop.f32.mrb[48].mxu0  ;;  %8931 = vmatpush3.bf16.msra.mxu1 %v9675_v16  ;;  %v9665_v16 = vld [vmem:[#allocation5 + $0x5c] sm:$0xff]  }
 0x332   :  { %v10794_v24 = vadd.f32 %v4478_v23, %v10761_v1  ;;  %v4480_v25 = vpop.f32.mrb[49].mxu0  ;;  %v9635_v1 = vld [vmem:[#allocation5 + $0x170] sm:$0xff]   ;;  %8932 = vmatprep.subr.bf16.mxu1 %v10194_v4 }
 0x333   :  { %v4481_v27 = vpop.f32.mrb[50].mxu0  ;;  %5921 = vmatpush1.bf16.msra.mxu0 %v9618_v21  ;;  %v9647_v21 = vld [vmem:[#allocation5 + $0x28] sm:$0xff]  }
 0x334   :  { %v10797_v29 = vadd.f32 %v4481_v27, %v10764_v63  ;;  %v4483_v30 = vpop.f32.mrb[51].mxu0  ;;  %5922 = vmatprep.subr.bf16.mxu0 %v10193_v10  ;;  %v9638_v63 = vld [vmem:[#allocation5 + $0x188] sm:$0xff]  }
 0x335   :  { %8933 = vmatpush3.bf16.msra.mxu1 %v9677_v56  ;;  %v9667_v56 = vld [vmem:[#allocation5 + $0x6c] sm:$0xff]  }
 0x336   :  { %8934 = vmatprep.subr.bf16.mxu1 %v10194_v4 }
 0x337   :  { %5923 = vmatpush1.bf16.msra.mxu0 %v5900_v31  ;;  %v9648_v31 = vld [vmem:[#allocation5 + $0x30] sm:$0xff]  }
 0x338   :  { %6145 = vmatprep.subr.bf16.mxu0 %v10193_v10 }
 0x339   :  { %8935 = vmatpush3.bf16.msra.mxu1 %v9679_v19 }
 0x33a   :  { %5935 = vmatmul.mubr.bf16.vlgmr.msra.gmra.mrb[68].mxu0 %v5810_v33  ;;  %8936 = vmatprep.subr.bf16.mxu1 %v10194_v4  ;;  %v9650_v33 = vld [vmem:[#allocation5 + $0x40] sm:$0xff]  }
 0x33b   :  { %6146 = vmatpush1.bf16.msra.mxu0 %v9620_v32  ;;  %8668 = vmatprep.mubr.msk.bf16.mxu0 %vm261_vm12, %v10737_v34  ;;  %v9649_v32 = vld [vmem:[#allocation5 + $0x38] sm:$0xff]  }
 0x33c   :  { %6147 = vmatprep.subr.bf16.mxu0 %v10193_v10 }
 0x33f   :  { %6148 = vmatpush1.bf16.msra.mxu0 %v9621_v36  ;;  %v9652_v36 = vld [vmem:[#allocation5 + $0x50] ss:$0 sps:$4 sm:$0xff]  }
 0x340   :  { %6149 = vmatprep.subr.bf16.mxu0 %v10193_v10 }
 0x343   :  { %6150 = vmatpush1.bf16.msra.mxu0 %v9622_v35 }
 0x344   :  { %6151 = vmatprep.subr.bf16.mxu0 %v10193_v10 }
 0x347   :  { %6152 = vmatpush1.bf16.msra.mxu0 %v9623_v37 }
 0x348   :  { %6153 = vmatprep.subr.bf16.mxu0 %v10193_v10 }
 0x34b   :  { %6154 = vmatpush1.bf16.msra.mxu0 %v9624_v38 }
 0x34c   :  { %6155 = vmatprep.subr.bf16.mxu0 %v10193_v10 }
 0x34f   :  { %6156 = vmatpush1.bf16.msra.mxu0 %v9625_v39  ;;  %v6794_v39 = vsel %vm3023_vm15, %v9652_v36, 0  ;;  %v9678_v36 = vld [vmem:[#allocation5 + $0xa4] ss:$0 sps:$4 sm:$0xff]  }
 0x350   :  { %6157 = vmatprep.subr.bf16.mxu0 %v10193_v10 }
 0x353   :  { %6158 = vmatpush1.bf16.msra.mxu0 %v9626_v40  ;;  %v9653_v40 = vld [vmem:[#allocation5 + $0xfc] sm:$0xff]  }
 0x354   :  { %6159 = vmatprep.subr.bf16.mxu0 %v10193_v10 }
 0x357   :  { %6160 = vmatpush1.bf16.msra.mxu0 %v9627_v41  ;;  %v6973_v41 = vld [vmem:[#allocation2 + $0xb8] sm:$0xff] }
 0x358   :  { %6161 = vmatprep.subr.bf16.mxu0 %v10193_v10 }
 0x35b   :  { %6162 = vmatpush1.bf16.msra.mxu0 %v9628_v42  ;;  %v9654_v42 = vld [vmem:[#allocation5 + $0x104] sm:$0xff]  }
 0x35c   :  { %6163 = vmatprep.subr.bf16.mxu0 %v10193_v10 }
 0x35d   :  { %v10813_v46 = vpop.f32.mrb[52].mxu0 }
 0x35e   :  { %v4748_v48 = vpop.f32.mrb[53].mxu0 }
 0x35f   :  { %v10815_v49 = vpop.f32.mrb[54].mxu0  ;;  %6164 = vmatpush1.bf16.msra.mxu0 %v9629_v43  ;;  %v9655_v43 = vld [vmem:[#allocation5 + $0x10c] sm:$0xff]   ;;  %v9657_v48 = vld [vmem:[#allocation5 + $0x11c] sm:$0xff]  }
 0x360   :  { %v4751_v50 = vpop.f32.mrb[55].mxu0  ;;  %6165 = vmatprep.subr.bf16.mxu0 %v10193_v10 }
 0x361   :  { %v9658_v50 = vld [vmem:[#allocation5 + $0x124] sm:$0xff]  }
 0x363   :  { %6166 = vmatpush1.bf16.msra.mxu0 %v6143_v52 }
 0x364   :  { %6415 = vmatprep.subr.bf16.mxu0 %v10193_v10 }
 0x366   :  { %6178 = vmatmul.mubr.bf16.vlgmr.msra.gmra.mrb[72].mxu0 %v10770_v7 }
 0x367   :  { %6416 = vmatpush1.bf16.msra.mxu0 %v9631_v53  ;;  %8692 = vmatprep.mubr.msk.bf16.mxu0 %vm261_vm12, %v10821_v55 }
 0x368   :  { %6417 = vmatprep.subr.bf16.mxu0 %v10193_v10 }
 0x36b   :  { %6418 = vmatpush1.bf16.msra.mxu0 %v9632_v57 }
 0x36c   :  { %6419 = vmatprep.subr.bf16.mxu0 %v10193_v10 }
 0x36f   :  { %6420 = vmatpush1.bf16.msra.mxu0 %v9633_v61 }
 0x370   :  { %6421 = vmatprep.subr.bf16.mxu0 %v10193_v10 }
 0x373   :  { %6422 = vmatpush1.bf16.msra.mxu0 %v9634_v13 }
 0x374   :  { %6423 = vmatprep.subr.bf16.mxu0 %v10193_v10 }
 0x377   :  { %6424 = vmatpush1.bf16.msra.mxu0 %v9635_v1 }
 0x378   :  { %6425 = vmatprep.subr.bf16.mxu0 %v10193_v10 }
 0x37b   :  { %6426 = vmatpush1.bf16.msra.mxu0 %v9636_v62  ;;  %v9659_v62 = vld [vmem:[#allocation5 + $0x12c] sm:$0xff]  }
 0x37c   :  { %6427 = vmatprep.subr.bf16.mxu0 %v10193_v10 }
 0x37f   :  { %6428 = vmatpush1.bf16.msra.mxu0 %v9637_v51 }
 0x380   :  { %6429 = vmatprep.subr.bf16.mxu0 %v10193_v10 }
 0x383   :  { %6430 = vmatpush1.bf16.msra.mxu0 %v9638_v63  ;;  %v9660_v63 = vld [vmem:[#allocation5 + $0x134] sm:$0xff]  }
 0x384   :  { %6431 = vmatprep.subr.bf16.mxu0 %v10193_v10 }
 0x387   :  { %6432 = vmatpush1.bf16.msra.mxu0 %v9639_v0  ;;  %v9661_v0 = vld [vmem:[#allocation5 + $0x13c] sm:$0xff]  }
 0x388   :  { %6433 = vmatprep.subr.bf16.mxu0 %v10193_v10 }
 0x389   :  { %v10841_v9 = vpop.f32.mrb[56].mxu0 }
 0x38a   :  { %v5154_v12 = vpop.f32.mrb[57].mxu0 }
 0x38b   :  { %v10843_v14 = vpop.f32.mrb[58].mxu0  ;;  %6434 = vmatpush1.bf16.msra.mxu0 %v9640_v11  ;;  %v9663_v11 = vld [vmem:[#allocation5 + $0x14c] ss:$0 sps:$4 sm:$0xff]  }
 0x38c   :  { %v5157_v15 = vpop.f32.mrb[59].mxu0  ;;  %6435 = vmatprep.subr.bf16.mxu0 %v10193_v10  ;;  %v7062_v12 = vsel %vm3023_vm15, %v9663_v11, 0  ;;  %v9692_v11 = vld [vmem:[#allocation5 + $0x30] sm:$0xff]  }
 0x38d   :  { %v9664_v15 = vld [vmem:[#allocation5 + $0x54] sm:$0xff]  }
 0x38f   :  { %6436 = vmatpush1.bf16.msra.mxu0 %v6413_v58  ;;  %v6972_v58 = vld [vmem:[#allocation2 + $0xb0] sm:$0xff] }
 0x390   :  { %6796 = vmatprep.subr.bf16.mxu0 %v10193_v10 }
 0x392   :  { %6448 = vmatmul.mubr.bf16.vlgmr.msra.gmra.mrb[76].mxu0 %v10856_v59 }
 0x393   :  { %6797 = vmatpush1.bf16.msra.mxu0 %v9642_v17  ;;  %8736 = vmatprep.mubr.msk.bf16.mxu0 %vm261_vm12, %v10737_v34  ;;  %v4172_v34 = vsel %vm3385_vm0, %v9681_v18, 0  ;;  %v9666_v17 = vld [vmem:[#allocation5 + $0x64] sm:$0xff]  }
 0x394   :  { %6798 = vmatprep.subr.bf16.mxu0 %v10193_v10  ;;  %8937 = vmatpush3.bf16.msra.mxu1 %v4172_v34 }
 0x395   :  { %4577 = vmatprep.subr.bf16.mxu1 %v10193_v10 }
 0x397   :  { %6799 = vmatpush1.bf16.msra.mxu0 %v9643_v54  ;;  %v9668_v54 = vld [vmem:[#allocation5 + $0x74] sm:$0xff]  }
 0x398   :  { %6800 = vmatprep.subr.bf16.mxu0 %v10193_v10 }
 0x39b   :  { %6801 = vmatpush1.bf16.msra.mxu0 %v9644_v45  ;;  %v9669_v45 = vld [vmem:[#allocation5 + $0x7c] sm:$0xff]  }
 0x39c   :  { %6802 = vmatprep.subr.bf16.mxu0 %v10193_v10 }
 0x39f   :  { %6803 = vmatpush1.bf16.msra.mxu0 %v9645_v22 }
 0x3a0   :  { %6804 = vmatprep.subr.bf16.mxu0 %v10193_v10 }
 0x3a3   :  { %v3584_v6 = vpop.f32.mrb[36].mxu1  ;;  %6805 = vmatpush1.bf16.msra.mxu0 %v9646_v20  ;;  %v10918_v20 = vld [vmem:[%s11338_s4] ss:$0 sm:$0xff] }
 0x3a4   :  { %v3695_v47 = vadd.f32 %v10697_v60, %v3584_v6  ;;  %v3586_v23 = vpop.f32.mrb[37].mxu1  ;;  %6806 = vmatprep.subr.bf16.mxu0 %v10193_v10  ;;  %v9651_v60 = vld [vmem:[#allocation5 + $0x48] sm:$0xff]  }
 0x3a5   :  { %v3587_v25 = vpop.f32.mrb[38].mxu1  ;;  %v9670_v23 = vld [vmem:[#allocation5 + $0x84] sm:$0xff]  }
 0x3a6   :  { %v3698_v27 = vadd.f32 %v10700_v28, %v3587_v25  ;;  %v3589_v30 = vpop.f32.mrb[39].mxu1 }
 0x3a7   :  { %6807 = vmatpush1.bf16.msra.mxu0 %v9647_v21 }
 0x3a8   :  { %6808 = vmatprep.subr.bf16.mxu0 %v10193_v10 }
 0x3ab   :  { %6809 = vmatpush1.bf16.msra.mxu0 %v9648_v31  ;;  %v9672_v31 = vld [vmem:[#allocation5 + $0x8c] sm:$0xff]  }
 0x3ac   :  { %6810 = vmatprep.subr.bf16.mxu0 %v10193_v10 }
 0x3af   :  { %6811 = vmatpush1.bf16.msra.mxu0 %v9649_v32  ;;  %v9674_v32 = vld [vmem:[#allocation5 + $0x94] sm:$0xff]  }
 0x3b0   :  { %6812 = vmatprep.subr.bf16.mxu0 %v10193_v10 }
 0x3b3   :  { %6813 = vmatpush1.bf16.msra.mxu0 %v9650_v33  ;;  %v9676_v33 = vld [vmem:[#allocation5 + $0x9c] sm:$0xff]  }
 0x3b4   :  { %6814 = vmatprep.subr.bf16.mxu0 %v10193_v10 }
 0x3b5   :  { %v10882_v35 = vpop.f32.mrb[60].mxu0 }
 0x3b6   :  { %v5397_v28 = vpop.f32.mrb[61].mxu0 }
 0x3b7   :  { %v10884_v37 = vpop.f32.mrb[62].mxu0  ;;  %6815 = vmatpush1.bf16.msra.mxu0 %v9651_v60 }
 0x3b8   :  { %v5400_v38 = vpop.f32.mrb[63].mxu0  ;;  %6816 = vmatprep.subr.bf16.mxu0 %v10193_v10 }
 0x3bb   :  { %6817 = vmatpush1.bf16.msra.mxu0 %v6794_v39 }
 0x3bc   :  { %7064 = vmatprep.subr.bf16.mxu0 %v10193_v10 }
 0x3be   :  { %6829 = vmatmul.mubr.bf16.vlgmr.msra.gmra.mrb[80].mxu0 %v10770_v7 }
 0x3bf   :  { %7065 = vmatpush1.bf16.msra.mxu0 %v9653_v40  ;;  %8760 = vmatprep.mubr.msk.bf16.mxu0 %vm261_vm12, %v6973_v41 }
 0x3c0   :  { %7066 = vmatprep.subr.bf16.mxu0 %v10193_v10 }
 0x3c3   :  { %7067 = vmatpush1.bf16.msra.mxu0 %v9654_v42 }
 0x3c4   :  { %7068 = vmatprep.subr.bf16.mxu0 %v10193_v10 }
 0x3c7   :  { %7069 = vmatpush1.bf16.msra.mxu0 %v9655_v43 }
 0x3c8   :  { %7070 = vmatprep.subr.bf16.mxu0 %v10193_v10 }
 0x3cb   :  { %7071 = vmatpush1.bf16.msra.mxu0 %v9656_v44  ;;  %v7468_v44 = vsel %vm3023_vm15, %v9678_v36, 0  ;;  %v9710_v36 = vld [vmem:[#allocation5 + $0x11c] sm:$0xff]  }
 0x3cc   :  { %7072 = vmatprep.subr.bf16.mxu0 %v10193_v10 }
 0x3cf   :  { %v3827_v7 = vpop.f32.mrb[40].mxu1  ;;  %7073 = vmatpush1.bf16.msra.mxu0 %v9657_v48  ;;  %v9680_v48 = vld [vmem:[#allocation5] sm:$0xff]  }
 0x3d0   :  { %v3834_v52 = vadd.f32 %v3827_v7, %v3695_v47  ;;  %v3829_v53 = vpop.f32.mrb[41].mxu1  ;;  %7074 = vmatprep.subr.bf16.mxu0 %v10193_v10  ;;  %v9682_v7 = vld [vmem:[#allocation5 + $0x8] sm:$0xff]  }
 0x3d1   :  { %v3830_v57 = vpop.f32.mrb[42].mxu1  ;;  %v9683_v53 = vld [vmem:[#allocation5 + $0xa8] sm:$0xff]  }
 0x3d2   :  { %v3835_v61 = vadd.f32 %v3830_v57, %v3698_v27  ;;  %v3832_v13 = vpop.f32.mrb[43].mxu1  ;;  %v3969_v1 = vadd.f32 %v10727_v3, %v3834_v52 }
 0x3d3   :  { %7075 = vmatpush1.bf16.msra.mxu0 %v9658_v50  ;;  %v10938_v13 = vld [vmem:[#allocation2 + $0x48] sm:$0xff] }
 0x3d4   :  { %7076 = vmatprep.subr.bf16.mxu0 %v10193_v10  ;;  %v3970_v51 = vadd.f32 %v10730_v26, %v3835_v61  ;;  %v9684_v61 = vld [vmem:[#allocation5 + $0x10] sm:$0xff]  }
 0x3d7   :  { %7077 = vmatpush1.bf16.msra.mxu0 %v9659_v62  ;;  %v9687_v62 = vld [vmem:[#allocation5 + $0xb8] sm:$0xff]  }
 0x3d8   :  { %7078 = vmatprep.subr.bf16.mxu0 %v10193_v10 }
 0x3db   :  { %7079 = vmatpush1.bf16.msra.mxu0 %v9660_v63  ;;  %v9689_v63 = vld [vmem:[#allocation5 + $0xc0] sm:$0xff]  }
 0x3dc   :  { %7080 = vmatprep.subr.bf16.mxu0 %v10193_v10 }
 0x3df   :  { %7081 = vmatpush1.bf16.msra.mxu0 %v9661_v0  ;;  %v9690_v0 = vld [vmem:[#allocation5 + $0x28] sm:$0xff]  }
 0x3e0   :  { %7082 = vmatprep.subr.bf16.mxu0 %v10193_v10 }
 0x3e1   :  { %v10902_v3 = vpop.f32.mrb[64].mxu0 }
 0x3e2   :  { %v5667_v5 = vpop.f32.mrb[65].mxu0 }
 0x3e3   :  { %v10904_v8 = vpop.f32.mrb[66].mxu0  ;;  %7083 = vmatpush1.bf16.msra.mxu0 %v9662_v2  ;;  %v9691_v2 = vld [vmem:[#allocation5 + $0xc8] sm:$0xff]   ;;  %v9693_v5 = vld [vmem:[#allocation5 + $0xd0] sm:$0xff]  }
 0x3e4   :  { %v5670_v26 = vpop.f32.mrb[67].mxu0  ;;  %7084 = vmatprep.subr.bf16.mxu0 %v10193_v10 }
 0x3e5   :  { %v9694_v26 = vld [vmem:[#allocation5 + $0x38] sm:$0xff]  }
 0x3e7   :  { %7085 = vmatpush1.bf16.msra.mxu0 %v7062_v12  ;;  %v9695_v12 = vld [vmem:[#allocation5 + $0xd8] sm:$0xff]  }
 0x3e8   :  { %7470 = vmatprep.subr.bf16.mxu0 %v10193_v10 }
 0x3ea   :  { %7097 = vmatmul.mubr.bf16.vlgmr.msra.gmra.mrb[84].mxu0 %v6972_v58 }
 0x3eb   :  { %7471 = vmatpush1.bf16.msra.mxu0 %v9664_v15  ;;  %8804 = vmatprep.mubr.msk.bf16.mxu0 %vm261_vm12, %v6973_v41  ;;  %v9696_v15 = vld [vmem:[#allocation5 + $0x40] sm:$0xff]  }
 0x3ec   :  { %7472 = vmatprep.subr.bf16.mxu0 %v10193_v10 }
 0x3ef   :  { %7473 = vmatpush1.bf16.msra.mxu0 %v9665_v16  ;;  %v9698_v16 = vld [vmem:[#allocation5 + $0x48] sm:$0xff]  }
 0x3f0   :  { %7474 = vmatprep.subr.bf16.mxu0 %v10193_v10 }
 0x3f3   :  { %7475 = vmatpush1.bf16.msra.mxu0 %v9666_v17 }
 0x3f4   :  { %7476 = vmatprep.subr.bf16.mxu0 %v10193_v10 }
 0x3f7   :  { %7477 = vmatpush1.bf16.msra.mxu0 %v9667_v56  ;;  %v9700_v56 = vld [vmem:[#allocation5 + $0x50] ss:$0 sps:$4 sm:$0xff]  }
 0x3f8   :  { %7478 = vmatprep.subr.bf16.mxu0 %v10193_v10 }
 0x3fb   :  { %v4097_v19 = vpop.f32.mrb[44].mxu1  ;;  %7479 = vmatpush1.bf16.msra.mxu0 %v9668_v54 }
 0x3fc   :  { %v4104_v18 = vadd.f32 %v4097_v19, %v3969_v1  ;;  %v4099_v34 = vpop.f32.mrb[45].mxu1  ;;  %7480 = vmatprep.subr.bf16.mxu0 %v10193_v10  ;;  %v9686_v1 = vld [vmem:[#allocation5 + $0x18] sm:$0xff]  }
 0x3fd   :  { %v4100_v22 = vpop.f32.mrb[46].mxu1  ;;  %v7578_v34 = vsel %vm3023_vm15, %v9700_v56, 0 }
 0x3fe   :  { %v4106_v6 = vadd.f32 %v10918_v20, %v4104_v18  ;;  %v4105_v21 = vadd.f32 %v4100_v22, %v3970_v51  ;;  %v4102_v47 = vpop.f32.mrb[47].mxu1  ;;  %v9688_v51 = vld [vmem:[#allocation5 + $0x20] sm:$0xff]   ;;  %v9701_v22 = vld [vmem:[#allocation5 + $0xf0] sm:$0xff]  }
 0x3ff   :  { %7481 = vmatpush1.bf16.msra.mxu0 %v9669_v45  ;;  %v9699_v45 = vld [vmem:[#allocation5 + $0xe8] sm:$0xff]   ;;  %v7757_v47 = vld [vmem:[#allocation2 + $0xd8] sm:$0xff] }
 0x400   :  { %v8453_v25 = vmul.f32 -1.442695, %v4106_v6  ;;  %v4107_v27 = vadd.f32 %v10918_v20, %v4105_v21  ;;  %7482 = vmatprep.subr.bf16.mxu0 %v10193_v10  ;;  %v9702_v6 = vld [vmem:[#allocation5 + $0xfc] sm:$0xff]   ;;  %v9703_v21 = vld [vmem:[#allocation5 + $0xf8] ss:$0 sps:$4 sm:$0xff]  }
 0x402   :  { %10075 = vpow2.f32 %v8453_v25  ;;  %v8454_v30 = vmul.f32 -1.442695, %v4107_v27  ;;  %v9704_v25 = vld [vmem:[#allocation5 + $0x104] sm:$0xff]   ;;  %v9705_v27 = vld [vmem:[#allocation5 + $0x150] sm:$0xff]  }
 0x403   :  { %7483 = vmatpush1.bf16.msra.mxu0 %v9670_v23  ;;  %v4575_v23 = vsel %vm3023_vm15, %v9703_v21, 0  ;;  %v9729_v21 = vld [vmem:[%s11339_s5 + $0x78] sm:$0xff]  }
 0x404   :  { %10077 = vpow2.f32 %v8454_v30  ;;  %7484 = vmatprep.subr.bf16.mxu0 %v10193_v10  ;;  %v9706_v30 = vld [vmem:[#allocation5 + $0x10c] sm:$0xff]  }
 0x407   :  { %7485 = vmatpush1.bf16.msra.mxu0 %v9672_v31  ;;  %v10971_v31 = vld [vmem:[#allocation2 + $0x40] sm:$0xff] }
 0x408   :  { %7486 = vmatprep.subr.bf16.mxu0 %v10193_v10 }
 0x40b   :  { %7487 = vmatpush1.bf16.msra.mxu0 %v9674_v32  ;;  %v9707_v32 = vld [vmem:[#allocation5 + $0x158] sm:$0xff]  }
 0x40c   :  { %v10076_v60 = vpop.eup %10075  ;;  %7488 = vmatprep.subr.bf16.mxu0 %v10193_v10 }
 0x40d   :  { %v4114_v28 = vadd.f32 1.0, %v10076_v60  ;;  %v10926_v38 = vpop.f32.mrb[68].mxu0  ;;  %v9709_v60 = vld [vmem:[#allocation5 + $0x160] sm:$0xff]  }
 0x40e   :  { %v10078_v39 = vpop.eup %10077  ;;  %v5938_v40 = vpop.f32.mrb[69].mxu0 }
 0x40f   :  { %v4115_v41 = vadd.f32 1.0, %v10078_v39  ;;  %v10928_v42 = vpop.f32.mrb[70].mxu0  ;;  %7489 = vmatpush1.bf16.msra.mxu0 %v9676_v33  ;;  %10079 = vrcp.f32 %v4114_v28  ;;  %v9708_v33 = vld [vmem:[#allocation5 + $0x114] sm:$0xff]   ;;  %v9711_v28 = vld [vmem:[#allocation5 + $0x168] sm:$0xff]  }
 0x410   :  { %v5941_v43 = vpop.f32.mrb[71].mxu0  ;;  %7490 = vmatprep.subr.bf16.mxu0 %v10193_v10  ;;  %v9712_v39 = vld [vmem:[#allocation5 + $0x124] sm:$0xff]   ;;  %v9713_v40 = vld [vmem:[#allocation5 + $0x170] sm:$0xff]  }
 0x411   :  { %10081 = vrcp.f32 %v4115_v41  ;;  %v9714_v41 = vld [vmem:[#allocation5 + $0x12c] sm:$0xff]   ;;  %v9715_v43 = vld [vmem:[#allocation5 + $0x178] sm:$0xff]  }
 0x413   :  { %7491 = vmatpush1.bf16.msra.mxu0 %v7468_v44  ;;  %v9716_v44 = vld [vmem:[#allocation5 + $0x134] sm:$0xff]  }
 0x414   :  { %7580 = vmatprep.subr.bf16.mxu0 %v10193_v10 }
 0x416   :  { %7503 = vmatmul.mubr.bf16.vlgmr.msra.gmra.mrb[88].mxu0 %v6972_v58  ;;  %v9697_v58 = vld [vmem:[#allocation5 + $0xe0] sm:$0xff]  }
 0x417   :  { %7581 = vmatpush1.bf16.msra.mxu0 %v9680_v48  ;;  %8816 = vmatprep.mubr.msk.bf16.mxu0 %vm261_vm12, %v10821_v55  ;;  %v9685_v55 = vld [vmem:[#allocation5 + $0xb0] sm:$0xff]   ;;  %v9717_v48 = vld [vmem:[#allocation5 + $0x180] sm:$0xff]  }
 0x418   :  { %7582 = vmatprep.subr.bf16.mxu0 %v10193_v10 }
 0x419   :  { %v10080_v50 = vpop.eup %10079 }
 0x41b   :  { %v10082_v52 = vpop.eup %10081  ;;  %7583 = vmatpush1.bf16.msra.mxu0 %v9682_v7  ;;  %v9718_v7 = vld [vmem:[#allocation5 + $0x13c] sm:$0xff]  }
 0x41c   :  { %v4120_v57 = vpack.c.bf16 %v10082_v52, %v10080_v50  ;;  %7584 = vmatprep.subr.bf16.mxu0 %v10193_v10  ;;  %v9719_v50 = vld [vmem:[#allocation5 + $0x188] sm:$0xff]  }
 0x41d   :  { %v9720_v52 = vld [vmem:[#allocation5 + $0x144] sm:$0xff]  }
 0x41e   :  { %8939 = vmatmul.mubr.msk.bf16.vlgmr.msra.gmra.mrb[32].mxu1 %vm3381_vm2, %v4120_v57  ;;  %v9722_v57 = vld [vmem:[#allocation5 + $0x14c] ss:$0 sps:$4 sm:$0xff]  }
 0x41f   :  { %4578 = vmatpush1.bf16.msra.mxu1 %v9683_v53  ;;  %8508 = vmatprep.mubr.msk.bf16.mxu1 %vm261_vm12, %v10938_v13 }
 0x420   :  { %7585 = vmatpush1.bf16.msra.mxu0 %v9684_v61  ;;  %4579 = vmatprep.subr.bf16.mxu1 %v10193_v10 }
 0x421   :  { %7586 = vmatprep.subr.bf16.mxu0 %v10193_v10 }
 0x423   :  { %4580 = vmatpush1.bf16.msra.mxu1 %v9685_v55 }
 0x424   :  { %7587 = vmatpush1.bf16.msra.mxu0 %v9686_v1  ;;  %4581 = vmatprep.subr.bf16.mxu1 %v10193_v10  ;;  %v9721_v1 = vld [vmem:[#allocation5 + $0x190] sm:$0xff]  }
 0x425   :  { %7588 = vmatprep.subr.bf16.mxu0 %v10193_v10 }
 0x427   :  { %4582 = vmatpush1.bf16.msra.mxu1 %v9687_v62 }
 0x428   :  { %7589 = vmatpush1.bf16.msra.mxu0 %v9688_v51  ;;  %4583 = vmatprep.subr.bf16.mxu1 %v10193_v10  ;;  %v7846_v51 = vsel %vm3023_vm15, %v9722_v57, 0 }
 0x429   :  { %7590 = vmatprep.subr.bf16.mxu0 %v10193_v10 }
 0x42b   :  { %4584 = vmatpush1.bf16.msra.mxu1 %v9689_v63  ;;  %v9723_v63 = vld [vmem:[#allocation5 + $0x198] sm:$0xff]  }
 0x42c   :  { %7591 = vmatpush1.bf16.msra.mxu0 %v9690_v0  ;;  %4585 = vmatprep.subr.bf16.mxu1 %v10193_v10  ;;  %v9724_v0 = vld [vmem:[#allocation5 + $0x1a0] ss:$0 sps:$4 sm:$0xff]  }
 0x42d   :  { %7592 = vmatprep.subr.bf16.mxu0 %v10193_v10 }
 0x42f   :  { %4586 = vmatpush1.bf16.msra.mxu1 %v9691_v2  ;;  %v7756_v2 = vld [vmem:[#allocation2 + $0xd0] sm:$0xff] }
 0x430   :  { %7593 = vmatpush1.bf16.msra.mxu0 %v9692_v11  ;;  %4587 = vmatprep.subr.bf16.mxu1 %v10193_v10  ;;  %v4845_v11 = vsel %vm3023_vm15, %v9724_v0, 0 }
 0x431   :  { %7594 = vmatprep.subr.bf16.mxu0 %v10193_v10 }
 0x433   :  { %4588 = vmatpush1.bf16.msra.mxu1 %v9693_v5  ;;  %v11004_v5 = vld [vmem:[#allocation2 + $0x60] sm:$0xff] }
 0x434   :  { %7595 = vmatpush1.bf16.msra.mxu0 %v9694_v26  ;;  %4589 = vmatprep.subr.bf16.mxu1 %v10193_v10 }
 0x435   :  { %7596 = vmatprep.subr.bf16.mxu0 %v10193_v10 }
 0x437   :  { %4590 = vmatpush1.bf16.msra.mxu1 %v9695_v12 }
 0x438   :  { %7597 = vmatpush1.bf16.msra.mxu0 %v9696_v15  ;;  %4591 = vmatprep.subr.bf16.mxu1 %v10193_v10 }
 0x439   :  { %v10955_v17 = vpop.f32.mrb[72].mxu0  ;;  %7598 = vmatprep.subr.bf16.mxu0 %v10193_v10 }
 0x43a   :  { %v6181_v54 = vpop.f32.mrb[73].mxu0 }
 0x43b   :  { %4592 = vmatpush1.bf16.msra.mxu1 %v9697_v58  ;;  %v10958_v19 = vpop.f32.mrb[74].mxu0 }
 0x43c   :  { %7599 = vmatpush1.bf16.msra.mxu0 %v9698_v16  ;;  %4593 = vmatprep.subr.bf16.mxu1 %v10193_v10  ;;  %v6184_v18 = vpop.f32.mrb[75].mxu0 }
 0x43d   :  { %7600 = vmatprep.subr.bf16.mxu0 %v10193_v10  ;;  %v9725_v18 = vld [vmem:[%s11339_s5 + $0x58] sm:$0xff]  }
 0x43f   :  { %4594 = vmatpush1.bf16.msra.mxu1 %v9699_v45 }
 0x440   :  { %7601 = vmatpush1.bf16.msra.mxu0 %v7578_v34  ;;  %4595 = vmatprep.subr.bf16.mxu1 %v10193_v10  ;;  %v9726_v34 = vld [vmem:[%s11339_s5 + $0x60] sm:$0xff]  }
 0x441   :  { %7848 = vmatprep.subr.bf16.mxu0 %v10193_v10 }
 0x443   :  { %4596 = vmatpush1.bf16.msra.mxu1 %v9701_v22  ;;  %7613 = vmatmul.mubr.bf16.vlgmr.msra.gmra.mrb[92].mxu0 %v10856_v59  ;;  %v10975_v59 = vld [vmem:[#allocation2 + $0x68] sm:$0xff] }
 0x444   :  { %7849 = vmatpush1.bf16.msra.mxu0 %v9702_v6  ;;  %8840 = vmatprep.mubr.msk.bf16.mxu0 %vm261_vm12, %v7757_v47  ;;  %v9727_v22 = vld [vmem:[%s11339_s5 + $0x68] sm:$0xff]   ;;  %v9728_v6 = vld [vmem:[%s11339_s5 + $0x70] sm:$0xff]   ;;  %v9730_v47 = vld [vmem:[%s11339_s5 + $0x80] ss:$0 sps:$4 sm:$0x33]  }
 0x445   :  { %4597 = vmatprep.subr.bf16.mxu1 %v10193_v10  ;;  %7850 = vmatprep.subr.bf16.mxu0 %v10193_v10 }
 0x447   :  { %4598 = vmatpush1.bf16.msra.mxu1 %v4575_v23  ;;  %v4956_v23 = vsel %vm3385_vm0, %v9730_v47, 0 }
 0x448   :  { %7851 = vmatpush1.bf16.msra.mxu0 %v9704_v25  ;;  %4847 = vmatprep.subr.bf16.mxu1 %v10193_v10 }
 0x449   :  { %7852 = vmatprep.subr.bf16.mxu0 %v10193_v10 }
 0x44a   :  { %4610 = vmatmul.mubr.bf16.vlgmr.msra.gmra.mrb[48].mxu1 %v10971_v31 }
 0x44b   :  { %4848 = vmatpush1.bf16.msra.mxu1 %v9705_v27  ;;  %8532 = vmatprep.mubr.msk.bf16.mxu1 %vm261_vm12, %v10975_v59 }
 0x44c   :  { %7853 = vmatpush1.bf16.msra.mxu0 %v9706_v30  ;;  %4849 = vmatprep.subr.bf16.mxu1 %v10193_v10 }
 0x44d   :  { %7854 = vmatprep.subr.bf16.mxu0 %v10193_v10 }
 0x44f   :  { %4850 = vmatpush1.bf16.msra.mxu1 %v9707_v32 }
 0x450   :  { %7855 = vmatpush1.bf16.msra.mxu0 %v9708_v33  ;;  %4851 = vmatprep.subr.bf16.mxu1 %v10193_v10 }
 0x451   :  { %7856 = vmatprep.subr.bf16.mxu0 %v10193_v10 }
 0x453   :  { %4852 = vmatpush1.bf16.msra.mxu1 %v9709_v60 }
 0x454   :  { %7857 = vmatpush1.bf16.msra.mxu0 %v9710_v36  ;;  %4853 = vmatprep.subr.bf16.mxu1 %v10193_v10 }
 0x455   :  { %7858 = vmatprep.subr.bf16.mxu0 %v10193_v10 }
 0x457   :  { %4854 = vmatpush1.bf16.msra.mxu1 %v9711_v28 }
 0x458   :  { %7859 = vmatpush1.bf16.msra.mxu0 %v9712_v39  ;;  %4855 = vmatprep.subr.bf16.mxu1 %v10193_v10 }
 0x459   :  { %7860 = vmatprep.subr.bf16.mxu0 %v10193_v10 }
 0x45b   :  { %4856 = vmatpush1.bf16.msra.mxu1 %v9713_v40 }
 0x45c   :  { %7861 = vmatpush1.bf16.msra.mxu0 %v9714_v41  ;;  %4857 = vmatprep.subr.bf16.mxu1 %v10193_v10 }
 0x45d   :  { %7862 = vmatprep.subr.bf16.mxu0 %v10193_v10 }
 0x45f   :  { %4858 = vmatpush1.bf16.msra.mxu1 %v9715_v43 }
 0x460   :  { %7863 = vmatpush1.bf16.msra.mxu0 %v9716_v44  ;;  %4859 = vmatprep.subr.bf16.mxu1 %v10193_v10 }
 0x461   :  { %7864 = vmatprep.subr.bf16.mxu0 %v10193_v10 }
 0x463   :  { %4860 = vmatpush1.bf16.msra.mxu1 %v9717_v48 }
 0x464   :  { %7865 = vmatpush1.bf16.msra.mxu0 %v9718_v7  ;;  %4861 = vmatprep.subr.bf16.mxu1 %v10193_v10 }
 0x465   :  { %v10992_v53 = vpop.f32.mrb[76].mxu0  ;;  %7866 = vmatprep.subr.bf16.mxu0 %v10193_v10 }
 0x466   :  { %v6451_v61 = vpop.f32.mrb[77].mxu0 }
 0x467   :  { %4862 = vmatpush1.bf16.msra.mxu1 %v9719_v50  ;;  %v10995_v55 = vpop.f32.mrb[78].mxu0 }
 0x468   :  { %7867 = vmatpush1.bf16.msra.mxu0 %v9720_v52  ;;  %4863 = vmatprep.subr.bf16.mxu1 %v10193_v10  ;;  %v6454_v62 = vpop.f32.mrb[79].mxu0 }
 0x469   :  { %7868 = vmatprep.subr.bf16.mxu0 %v10193_v10 }
 0x46b   :  { %4864 = vmatpush1.bf16.msra.mxu1 %v9721_v1 }
 0x46c   :  { %7869 = vmatpush1.bf16.msra.mxu0 %v7846_v51  ;;  %4865 = vmatprep.subr.bf16.mxu1 %v10193_v10 }
 0x46f   :  { %4866 = vmatpush1.bf16.msra.mxu1 %v9723_v63  ;;  %7881 = vmatmul.mubr.bf16.vlgmr.msra.gmra.mrb[96].mxu0 %v7756_v2 }
 0x470   :  { %4867 = vmatprep.subr.bf16.mxu1 %v10193_v10 }
 0x473   :  { %4868 = vmatpush1.bf16.msra.mxu1 %v4845_v11 }
 0x474   :  { %8942 = vmatprep.subr.bf16.mxu1 %v10194_v4 }
 0x476   :  { %4880 = vmatmul.mubr.bf16.vlgmr.msra.gmra.mrb[52].mxu1 %v11004_v5 }
 0x477   :  { %8954 = vmatprep.mubr.msk.bf16.mxu1 %vm10195_vm1, %v10194_v4  ;;  %8943 = vmatpush3.bf16.msra.mxu1 %v9725_v18 }
 0x478   :  { %8944 = vmatprep.subr.bf16.mxu1 %v10194_v4 }
 0x47b   :  { %8945 = vmatpush3.bf16.msra.mxu1 %v9726_v34 }
 0x47c   :  { %8946 = vmatprep.subr.bf16.mxu1 %v10194_v4 }
 0x47f   :  { %8947 = vmatpush3.bf16.msra.mxu1 %v9727_v22 }
 0x480   :  { %8948 = vmatprep.subr.bf16.mxu1 %v10194_v4 }
 0x483   :  { %8949 = vmatpush3.bf16.msra.mxu1 %v9728_v6 }
 0x484   :  { %8950 = vmatprep.subr.bf16.mxu1 %v10194_v4 }
 0x487   :  { %8951 = vmatpush3.bf16.msra.mxu1 %v9729_v21  ;;  %v9731_v21 = vld [vmem:[#allocation5] sm:$0xff]  }
 0x488   :  { %8952 = vmatprep.subr.bf16.mxu1 %v10194_v4 }
 0x48b   :  { %8953 = vmatpush3.bf16.msra.mxu1 %v4956_v23  ;;  %v9732_v23 = vld [vmem:[#allocation5 + $0x8] sm:$0xff]  }
 0x48c   :  { %5228 = vmatprep.subr.bf16.mxu1 %v10193_v10 }
 0x491   :  { %v11009_v26 = vpop.f32.mrb[80].mxu0 }
 0x492   :  { %v6832_v12 = vpop.f32.mrb[81].mxu0 }
 0x493   :  { %v11011_v15 = vpop.f32.mrb[82].mxu0 }
 0x494   :  { %v6835_v58 = vpop.f32.mrb[83].mxu0 }
 0x4bd   :  { %v11013_v16 = vpop.f32.mrb[84].mxu0 }
 0x4be   :  { %v7100_v56 = vpop.f32.mrb[85].mxu0 }
 0x4bf   :  { %v11015_v54 = vpop.f32.mrb[86].mxu0 }
 0x4c0   :  { %v7103_v45 = vpop.f32.mrb[87].mxu0 }
 0x4e9   :  { %v7504_v25 = vpop.f32.mrb[88].mxu0 }
 0x4ea   :  { %v7506_v27 = vpop.f32.mrb[89].mxu0 }
 0x4eb   :  { %v7507_v30 = vpop.f32.mrb[90].mxu0  ;;  %v9734_v27 = vld [vmem:[#allocation5 + $0x18] sm:$0xff]  }
 0x4ec   :  { %v7509_v32 = vpop.f32.mrb[91].mxu0 }
 0x4ed   :  { %v9736_v32 = vld [vmem:[#allocation5 + $0x28] sm:$0xff]  }
 0x516   :  { %v7614_v33 = vpop.f32.mrb[92].mxu0 }
 0x517   :  { %v11042_v60 = vadd.f32 %v7614_v33, %v7504_v25  ;;  %v7616_v36 = vpop.f32.mrb[93].mxu0  ;;  %v9733_v25 = vld [vmem:[#allocation5 + $0x10] sm:$0xff]   ;;  %v9738_v33 = vld [vmem:[#allocation5 + $0x38] sm:$0xff]  }
 0x518   :  { %v7617_v28 = vpop.f32.mrb[94].mxu0  ;;  %v9739_v36 = vld [vmem:[#allocation5 + $0x40] sm:$0xff]  }
 0x519   :  { %v11044_v39 = vadd.f32 %v7617_v28, %v7507_v30  ;;  %v7619_v40 = vpop.f32.mrb[95].mxu0  ;;  %v9735_v30 = vld [vmem:[#allocation5 + $0x20] sm:$0xff]   ;;  %v9740_v28 = vld [vmem:[#allocation5 + $0x48] sm:$0xff]  }
 0x51a   :  { %v9741_v40 = vld [vmem:[#allocation5 + $0x50] ss:$0 sps:$4 sm:$0xff]  }
 0x51d   :  { %v4611_v41 = vpop.f32.mrb[48].mxu1 }
 0x51e   :  { %v4618_v43 = vadd.f32 %v4611_v41, %v10794_v24  ;;  %v4613_v44 = vpop.f32.mrb[49].mxu1  ;;  %v5226_v41 = vsel %vm3023_vm15, %v9741_v40, 0 }
 0x51f   :  { %v4614_v48 = vpop.f32.mrb[50].mxu1  ;;  %v5405_v44 = vld [vmem:[#allocation2 + $0x78] sm:$0xff] }
 0x520   :  { %v4619_v7 = vadd.f32 %v4614_v48, %v10797_v29  ;;  %v4616_v50 = vpop.f32.mrb[51].mxu1  ;;  %v4753_v52 = vadd.f32 %v10813_v46, %v4618_v43  ;;  %v9742_v43 = vld [vmem:[#allocation5 + $0xfc] sm:$0xff]   ;;  %v9743_v48 = vld [vmem:[#allocation5 + $0x104] sm:$0xff]  }
 0x521   :  { %v9745_v50 = vld [vmem:[#allocation5 + $0x114] sm:$0xff]  }
 0x522   :  { %v4754_v57 = vadd.f32 %v10815_v49, %v4619_v7  ;;  %v9744_v7 = vld [vmem:[#allocation5 + $0x10c] sm:$0xff]  }
 0x542   :  { %v11050_v61 = vpop.f32.mrb[96].mxu0 }
 0x543   :  { %v7884_v1 = vpop.f32.mrb[97].mxu0 }
 0x544   :  { %v11052_v62 = vpop.f32.mrb[98].mxu0  ;;  %v9749_v1 = vld [vmem:[#allocation5 + $0x134] sm:$0xff]  }
 0x545   :  { %v7887_v51 = vpop.f32.mrb[99].mxu0 }
 0x546   :  { %v9750_v51 = vld [vmem:[#allocation5 + $0x13c] sm:$0xff]  }
 0x549   :  { %v4881_v63 = vpop.f32.mrb[52].mxu1 }
 0x54a   :  { %v4888_v0 = vadd.f32 %v4881_v63, %v4753_v52  ;;  %v4883_v2 = vpop.f32.mrb[53].mxu1  ;;  %v9746_v52 = vld [vmem:[#allocation5 + $0x11c] sm:$0xff]   ;;  %v9751_v63 = vld [vmem:[#allocation5 + $0x144] sm:$0xff]  }
 0x54b   :  { %v4884_v11 = vpop.f32.mrb[54].mxu1 }
 0x54c   :  { %v4890_v24 = vadd.f32 %v10918_v20, %v4888_v0  ;;  %v4889_v12 = vadd.f32 %v4884_v11, %v4754_v57  ;;  %v4886_v58 = vpop.f32.mrb[55].mxu1  ;;  %v9748_v57 = vld [vmem:[#allocation5 + $0x12c] sm:$0xff]  }
 0x54d   :  { %v9752_v0 = vld [vmem:[#allocation5 + $0x14c] ss:$0 sps:$4 sm:$0xff]   ;;  %v5404_v11 = vld [vmem:[#allocation2 + $0x70] sm:$0xff] }
 0x54e   :  { %v8533_v29 = vmul.f32 -1.442695, %v4890_v24  ;;  %v4891_v56 = vadd.f32 %v10918_v20, %v4889_v12  ;;  %v5494_v2 = vsel %vm3023_vm15, %v9752_v0, 0  ;;  %v9753_v24 = vld [vmem:[%s11339_s5 + $0x84] sm:$0xff]   ;;  %v9754_v12 = vld [vmem:[%s11339_s5 + $0x8c] sm:$0xff]   ;;  %v9755_v58 = vld [vmem:[%s11339_s5 + $0x94] sm:$0xff]  }
 0x54f   :  { %v9768_v0 = vld [vmem:[#allocation5 + $0x48] sm:$0xff]  }
 0x550   :  { %10083 = vpow2.f32 %v8533_v29  ;;  %v8534_v46 = vmul.f32 -1.442695, %v4891_v56  ;;  %v9756_v29 = vld [vmem:[%s11339_s5 + $0x9c] sm:$0xff]   ;;  %v9757_v56 = vld [vmem:[%s11339_s5 + $0xa4] sm:$0xff]  }
 0x552   :  { %10085 = vpow2.f32 %v8534_v46  ;;  %v9758_v46 = vld [vmem:[%s11339_s5 + $0xac] ss:$0 sps:$4 sm:$0x33]  }
 0x55a   :  { %v10084_v49 = vpop.eup %10083 }
 0x55b   :  { %v4898_v45 = vadd.f32 1.0, %v10084_v49  ;;  %v5740_v49 = vsel %vm3385_vm0, %v9758_v46, 0  ;;  %v9774_v46 = vld [vmem:[#allocation5 + $0x11c] sm:$0xff]  }
 0x55c   :  { %v10086_v18 = vpop.eup %10085 }
 0x55d   :  { %v4899_v34 = vadd.f32 1.0, %v10086_v18  ;;  %10087 = vrcp.f32 %v4898_v45 }
 0x55f   :  { %10089 = vrcp.f32 %v4899_v34 }
 0x567   :  { %v10088_v22 = vpop.eup %10087 }
 0x569   :  { %v10090_v6 = vpop.eup %10089 }
 0x56a   :  { %v4904_v47 = vpack.c.bf16 %v10090_v6, %v10088_v22 }
 0x56c   :  { %8955 = vmatmul.mubr.msk.bf16.vlgmr.msra.gmra.mrb[32].mxu1 %vm3381_vm2, %v4904_v47 }
 0x56d   :  { %5229 = vmatpush1.bf16.msra.mxu1 %v9731_v21  ;;  %8576 = vmatprep.mubr.msk.bf16.mxu1 %vm261_vm12, %v10938_v13  ;;  %v9737_v13 = vld [vmem:[#allocation5 + $0x30] sm:$0xff]  }
 0x56e   :  { %5230 = vmatprep.subr.bf16.mxu1 %v10193_v10 }
 0x571   :  { %5231 = vmatpush1.bf16.msra.mxu1 %v9732_v23 }
 0x572   :  { %5232 = vmatprep.subr.bf16.mxu1 %v10193_v10 }
 0x575   :  { %5233 = vmatpush1.bf16.msra.mxu1 %v9733_v25 }
 0x576   :  { %5234 = vmatprep.subr.bf16.mxu1 %v10193_v10 }
 0x579   :  { %5235 = vmatpush1.bf16.msra.mxu1 %v9734_v27 }
 0x57a   :  { %5236 = vmatprep.subr.bf16.mxu1 %v10193_v10 }
 0x57d   :  { %5237 = vmatpush1.bf16.msra.mxu1 %v9735_v30 }
 0x57e   :  { %5238 = vmatprep.subr.bf16.mxu1 %v10193_v10 }
 0x581   :  { %5239 = vmatpush1.bf16.msra.mxu1 %v9736_v32 }
 0x582   :  { %5240 = vmatprep.subr.bf16.mxu1 %v10193_v10 }
 0x585   :  { %5241 = vmatpush1.bf16.msra.mxu1 %v9737_v13 }
 0x586   :  { %5242 = vmatprep.subr.bf16.mxu1 %v10193_v10 }
 0x589   :  { %5243 = vmatpush1.bf16.msra.mxu1 %v9738_v33 }
 0x58a   :  { %5244 = vmatprep.subr.bf16.mxu1 %v10193_v10 }
 0x58d   :  { %5245 = vmatpush1.bf16.msra.mxu1 %v9739_v36 }
 0x58e   :  { %5246 = vmatprep.subr.bf16.mxu1 %v10193_v10 }
 0x591   :  { %5247 = vmatpush1.bf16.msra.mxu1 %v9740_v28 }
 0x592   :  { %5248 = vmatprep.subr.bf16.mxu1 %v10193_v10 }
 0x595   :  { %5249 = vmatpush1.bf16.msra.mxu1 %v5226_v41 }
 0x596   :  { %5496 = vmatprep.subr.bf16.mxu1 %v10193_v10 }
 0x598   :  { %5261 = vmatmul.mubr.bf16.vlgmr.msra.gmra.mrb[56].mxu1 %v10971_v31  ;;  %v9747_v31 = vld [vmem:[#allocation5 + $0x124] sm:$0xff]  }
 0x599   :  { %5497 = vmatpush1.bf16.msra.mxu1 %v9742_v43  ;;  %8600 = vmatprep.mubr.msk.bf16.mxu1 %vm261_vm12, %v5405_v44 }
 0x59a   :  { %5498 = vmatprep.subr.bf16.mxu1 %v10193_v10 }
 0x59d   :  { %5499 = vmatpush1.bf16.msra.mxu1 %v9743_v48 }
 0x59e   :  { %5500 = vmatprep.subr.bf16.mxu1 %v10193_v10 }
 0x5a1   :  { %5501 = vmatpush1.bf16.msra.mxu1 %v9744_v7  ;;  %v9759_v7 = vld [vmem:[#allocation5] sm:$0xff]  }
 0x5a2   :  { %5502 = vmatprep.subr.bf16.mxu1 %v10193_v10 }
 0x5a5   :  { %5503 = vmatpush1.bf16.msra.mxu1 %v9745_v50 }
 0x5a6   :  { %5504 = vmatprep.subr.bf16.mxu1 %v10193_v10 }
 0x5a9   :  { %5505 = vmatpush1.bf16.msra.mxu1 %v9746_v52  ;;  %v9761_v52 = vld [vmem:[#allocation5 + $0x10] sm:$0xff]  }
 0x5aa   :  { %5506 = vmatprep.subr.bf16.mxu1 %v10193_v10 }
 0x5ad   :  { %5507 = vmatpush1.bf16.msra.mxu1 %v9747_v31  ;;  %v9762_v31 = vld [vmem:[#allocation5 + $0x18] sm:$0xff]  }
 0x5ae   :  { %5508 = vmatprep.subr.bf16.mxu1 %v10193_v10 }
 0x5b1   :  { %5509 = vmatpush1.bf16.msra.mxu1 %v9748_v57  ;;  %v9763_v57 = vld [vmem:[#allocation5 + $0x20] sm:$0xff]  }
 0x5b2   :  { %5510 = vmatprep.subr.bf16.mxu1 %v10193_v10 }
 0x5b5   :  { %5511 = vmatpush1.bf16.msra.mxu1 %v9749_v1  ;;  %v9764_v1 = vld [vmem:[#allocation5 + $0x28] sm:$0xff]  }
 0x5b6   :  { %5512 = vmatprep.subr.bf16.mxu1 %v10193_v10 }
 0x5b9   :  { %5513 = vmatpush1.bf16.msra.mxu1 %v9750_v51  ;;  %v9766_v51 = vld [vmem:[#allocation5 + $0x38] sm:$0xff]  }
 0x5ba   :  { %5514 = vmatprep.subr.bf16.mxu1 %v10193_v10 }
 0x5bd   :  { %5515 = vmatpush1.bf16.msra.mxu1 %v9751_v63  ;;  %v9767_v63 = vld [vmem:[#allocation5 + $0x40] sm:$0xff]  }
 0x5be   :  { %5516 = vmatprep.subr.bf16.mxu1 %v10193_v10 }
 0x5c1   :  { %5517 = vmatpush1.bf16.msra.mxu1 %v5494_v2  ;;  %v9769_v2 = vld [vmem:[#allocation5 + $0x50] ss:$0 sps:$4 sm:$0xff]  }
 0x5c2   :  { %8958 = vmatprep.subr.bf16.mxu1 %v10194_v4 }
 0x5c4   :  { %5529 = vmatmul.mubr.bf16.vlgmr.msra.gmra.mrb[60].mxu1 %v5404_v11  ;;  %v6010_v11 = vsel %vm3023_vm15, %v9769_v2, 0  ;;  %v9791_v2 = vld [vmem:[#allocation5 + $0x74] sm:$0xff]  }
 0x5c5   :  { %8970 = vmatprep.mubr.msk.bf16.mxu1 %vm10195_vm1, %v10194_v4  ;;  %8959 = vmatpush3.bf16.msra.mxu1 %v9753_v24  ;;  %v9770_v24 = vld [vmem:[#allocation5 + $0xfc] sm:$0xff]  }
 0x5c6   :  { %8960 = vmatprep.subr.bf16.mxu1 %v10194_v4 }
 0x5c9   :  { %8961 = vmatpush3.bf16.msra.mxu1 %v9754_v12  ;;  %v11136_v12 = vld [vmem:[#allocation2 + $0x98] sm:$0xff] }
 0x5ca   :  { %8962 = vmatprep.subr.bf16.mxu1 %v10194_v4 }
 0x5cd   :  { %8963 = vmatpush3.bf16.msra.mxu1 %v9755_v58  ;;  %v9771_v58 = vld [vmem:[#allocation5 + $0x104] sm:$0xff]  }
 0x5ce   :  { %8964 = vmatprep.subr.bf16.mxu1 %v10194_v4 }
 0x5d1   :  { %8965 = vmatpush3.bf16.msra.mxu1 %v9756_v29  ;;  %v9772_v29 = vld [vmem:[#allocation5 + $0x10c] sm:$0xff]  }
 0x5d2   :  { %8966 = vmatprep.subr.bf16.mxu1 %v10194_v4 }
 0x5d5   :  { %8967 = vmatpush3.bf16.msra.mxu1 %v9757_v56  ;;  %v9773_v56 = vld [vmem:[#allocation5 + $0x114] sm:$0xff]  }
 0x5d6   :  { %8968 = vmatprep.subr.bf16.mxu1 %v10194_v4 }
 0x5d9   :  { %8969 = vmatpush3.bf16.msra.mxu1 %v5740_v49  ;;  %v9776_v49 = vld [vmem:[#allocation5 + $0x12c] sm:$0xff]  }
 0x5da   :  { %6012 = vmatprep.subr.bf16.mxu1 %v10193_v10 }
 0x66b   :  { %v5262_v45 = vpop.f32.mrb[56].mxu1 }
 0x66c   :  { %v5263_v18 = vadd.f32 %v5262_v45, %v10841_v9  ;;  %v5264_v34 = vpop.f32.mrb[57].mxu1  ;;  %v9777_v45 = vld [vmem:[#allocation5 + $0x134] sm:$0xff]  }
 0x66d   :  { %v5265_v22 = vpop.f32.mrb[58].mxu1  ;;  %v9779_v34 = vld [vmem:[#allocation5 + $0x144] sm:$0xff]  }
 0x66e   :  { %v5266_v6 = vadd.f32 %v5265_v22, %v10843_v14  ;;  %v5267_v21 = vpop.f32.mrb[59].mxu1  ;;  %v5402_v47 = vadd.f32 %v10882_v35, %v5263_v18  ;;  %v9778_v18 = vld [vmem:[#allocation5 + $0x13c] sm:$0xff]   ;;  %v9780_v22 = vld [vmem:[#allocation5 + $0x14c] ss:$0 sps:$4 sm:$0xff]  }
 0x66f   :  { %v11152_v21 = vld [vmem:[#allocation2 + $0x90] sm:$0xff] }
 0x670   :  { %v5403_v23 = vadd.f32 %v10884_v37, %v5266_v6  ;;  %v6278_v6 = vsel %vm3023_vm15, %v9780_v22, 0  ;;  %v9802_v22 = vld [vmem:[#allocation5 + $0xc8] sm:$0xff]  }
 0x697   :  { %v5530_v25 = vpop.f32.mrb[60].mxu1 }
 0x698   :  { %v5537_v27 = vadd.f32 %v5530_v25, %v5402_v47  ;;  %v5532_v30 = vpop.f32.mrb[61].mxu1  ;;  %v9781_v47 = vld [vmem:[%s11339_s5 + $0xb0] sm:$0xff]   ;;  %v9783_v25 = vld [vmem:[%s11339_s5 + $0xc0] sm:$0xff]  }
 0x699   :  { %v5533_v32 = vpop.f32.mrb[62].mxu1  ;;  %v9785_v30 = vld [vmem:[%s11339_s5 + $0xd0] sm:$0xff]  }
 0x69a   :  { %v5672_v13 = vadd.f32 %v10902_v3, %v5537_v27  ;;  %v5538_v33 = vadd.f32 %v5533_v32, %v5403_v23  ;;  %v5535_v36 = vpop.f32.mrb[63].mxu1  ;;  %v9782_v23 = vld [vmem:[%s11339_s5 + $0xb8] sm:$0xff]   ;;  %v9784_v27 = vld [vmem:[%s11339_s5 + $0xc8] sm:$0xff]  }
 0x69b   :  { %v9786_v32 = vld [vmem:[%s11339_s5 + $0xd8] ss:$0 sps:$4 sm:$0x33]  }
 0x69c   :  { %v5674_v28 = vadd.f32 %v10918_v20, %v5672_v13  ;;  %v5673_v9 = vadd.f32 %v10904_v8, %v5538_v33  ;;  %v9760_v8 = vld [vmem:[#allocation5 + $0x8] sm:$0xff]   ;;  %v6524_v13 = vsel %vm3385_vm0, %v9786_v32, 0  ;;  %v9809_v32 = vld [vmem:[#allocation5 + $0x150] sm:$0xff]  }
 0x69e   :  { %v8613_v40 = vmul.f32 -1.442695, %v5674_v28  ;;  %v5675_v14 = vadd.f32 %v10918_v20, %v5673_v9 }
 0x6a0   :  { %10091 = vpow2.f32 %v8613_v40  ;;  %v8614_v41 = vmul.f32 -1.442695, %v5675_v14 }
 0x6a2   :  { %10093 = vpow2.f32 %v8614_v41 }
 0x6aa   :  { %v10092_v35 = vpop.eup %10091 }
 0x6ab   :  { %v5682_v37 = vadd.f32 1.0, %v10092_v35 }
 0x6ac   :  { %v10094_v43 = vpop.eup %10093 }
 0x6ad   :  { %v5683_v44 = vadd.f32 1.0, %v10094_v43  ;;  %10095 = vrcp.f32 %v5682_v37 }
 0x6af   :  { %10097 = vrcp.f32 %v5683_v44 }
 0x6b7   :  { %v10096_v48 = vpop.eup %10095 }
 0x6b9   :  { %v10098_v3 = vpop.eup %10097 }
 0x6ba   :  { %v5688_v50 = vpack.c.bf16 %v10098_v3, %v10096_v48 }
 0x6bc   :  { %8971 = vmatmul.mubr.msk.bf16.vlgmr.msra.gmra.mrb[32].mxu1 %vm3381_vm2, %v5688_v50 }
 0x6bd   :  { %6013 = vmatpush1.bf16.msra.mxu1 %v9759_v7  ;;  %8656 = vmatprep.mubr.msk.bf16.mxu1 %vm261_vm12, %v10975_v59  ;;  %v9765_v59 = vld [vmem:[#allocation5 + $0x30] sm:$0xff]  }
 0x6be   :  { %6014 = vmatprep.subr.bf16.mxu1 %v10193_v10 }
 0x6c1   :  { %6015 = vmatpush1.bf16.msra.mxu1 %v9760_v8 }
 0x6c2   :  { %6016 = vmatprep.subr.bf16.mxu1 %v10193_v10 }
 0x6c5   :  { %6017 = vmatpush1.bf16.msra.mxu1 %v9761_v52 }
 0x6c6   :  { %6018 = vmatprep.subr.bf16.mxu1 %v10193_v10 }
 0x6c9   :  { %6019 = vmatpush1.bf16.msra.mxu1 %v9762_v31 }
 0x6ca   :  { %6020 = vmatprep.subr.bf16.mxu1 %v10193_v10 }
 0x6cd   :  { %6021 = vmatpush1.bf16.msra.mxu1 %v9763_v57 }
 0x6ce   :  { %6022 = vmatprep.subr.bf16.mxu1 %v10193_v10 }
 0x6d1   :  { %6023 = vmatpush1.bf16.msra.mxu1 %v9764_v1 }
 0x6d2   :  { %6024 = vmatprep.subr.bf16.mxu1 %v10193_v10 }
 0x6d5   :  { %6025 = vmatpush1.bf16.msra.mxu1 %v9765_v59 }
 0x6d6   :  { %6026 = vmatprep.subr.bf16.mxu1 %v10193_v10 }
 0x6d9   :  { %6027 = vmatpush1.bf16.msra.mxu1 %v9766_v51  ;;  %v9787_v51 = vld [vmem:[#allocation5 + $0x54] sm:$0xff]  }
 0x6da   :  { %6028 = vmatprep.subr.bf16.mxu1 %v10193_v10 }
 0x6dd   :  { %6029 = vmatpush1.bf16.msra.mxu1 %v9767_v63 }
 0x6de   :  { %6030 = vmatprep.subr.bf16.mxu1 %v10193_v10 }
 0x6e1   :  { %6031 = vmatpush1.bf16.msra.mxu1 %v9768_v0  ;;  %v9790_v0 = vld [vmem:[#allocation5 + $0x6c] sm:$0xff]  }
 0x6e2   :  { %6032 = vmatprep.subr.bf16.mxu1 %v10193_v10 }
 0x6e5   :  { %6033 = vmatpush1.bf16.msra.mxu1 %v6010_v11  ;;  %v9792_v11 = vld [vmem:[#allocation5 + $0x7c] sm:$0xff]  }
 0x6e6   :  { %6280 = vmatprep.subr.bf16.mxu1 %v10193_v10 }
 0x6e8   :  { %6045 = vmatmul.mubr.bf16.vlgmr.msra.gmra.mrb[64].mxu1 %v11004_v5  ;;  %v9775_v5 = vld [vmem:[#allocation5 + $0x124] sm:$0xff]  }
 0x6e9   :  { %6281 = vmatpush1.bf16.msra.mxu1 %v9770_v24  ;;  %8680 = vmatprep.mubr.msk.bf16.mxu1 %vm261_vm12, %v11136_v12  ;;  %v9793_v24 = vld [vmem:[#allocation5 + $0x84] sm:$0xff]  }
 0x6ea   :  { %6282 = vmatprep.subr.bf16.mxu1 %v10193_v10 }
 0x6ed   :  { %6283 = vmatpush1.bf16.msra.mxu1 %v9771_v58  ;;  %v9795_v58 = vld [vmem:[#allocation5 + $0x94] sm:$0xff]  }
 0x6ee   :  { %6284 = vmatprep.subr.bf16.mxu1 %v10193_v10 }
 0x6f1   :  { %6285 = vmatpush1.bf16.msra.mxu1 %v9772_v29  ;;  %v9796_v29 = vld [vmem:[#allocation5 + $0x9c] sm:$0xff]  }
 0x6f2   :  { %6286 = vmatprep.subr.bf16.mxu1 %v10193_v10 }
 0x6f5   :  { %6287 = vmatpush1.bf16.msra.mxu1 %v9773_v56  ;;  %v9797_v56 = vld [vmem:[#allocation5 + $0xa4] ss:$0 sps:$4 sm:$0xff]  }
 0x6f6   :  { %6288 = vmatprep.subr.bf16.mxu1 %v10193_v10 }
 0x6f9   :  { %6289 = vmatpush1.bf16.msra.mxu1 %v9774_v46  ;;  %v6684_v46 = vsel %vm3023_vm15, %v9797_v56, 0 }
 0x6fa   :  { %6290 = vmatprep.subr.bf16.mxu1 %v10193_v10 }
 0x6fd   :  { %6291 = vmatpush1.bf16.msra.mxu1 %v9775_v5  ;;  %v9798_v5 = vld [vmem:[#allocation5 + $0xa8] sm:$0xff]  }
 0x6fe   :  { %6292 = vmatprep.subr.bf16.mxu1 %v10193_v10 }
 0x701   :  { %6293 = vmatpush1.bf16.msra.mxu1 %v9776_v49  ;;  %v6838_v49 = vld [vmem:[#allocation2 + $0xa8] sm:$0xff] }
 0x702   :  { %6294 = vmatprep.subr.bf16.mxu1 %v10193_v10 }
 0x705   :  { %6295 = vmatpush1.bf16.msra.mxu1 %v9777_v45  ;;  %v9799_v45 = vld [vmem:[#allocation5 + $0xb0] sm:$0xff]  }
 0x706   :  { %6296 = vmatprep.subr.bf16.mxu1 %v10193_v10 }
 0x709   :  { %6297 = vmatpush1.bf16.msra.mxu1 %v9778_v18  ;;  %v9800_v18 = vld [vmem:[#allocation5 + $0xb8] sm:$0xff]  }
 0x70a   :  { %6298 = vmatprep.subr.bf16.mxu1 %v10193_v10 }
 0x70d   :  { %6299 = vmatpush1.bf16.msra.mxu1 %v9779_v34  ;;  %v9801_v34 = vld [vmem:[#allocation5 + $0xc0] sm:$0xff]  }
 0x70e   :  { %6300 = vmatprep.subr.bf16.mxu1 %v10193_v10 }
 0x711   :  { %6301 = vmatpush1.bf16.msra.mxu1 %v6278_v6  ;;  %v9803_v6 = vld [vmem:[#allocation5 + $0xd0] sm:$0xff]  }
 0x712   :  { %8974 = vmatprep.subr.bf16.mxu1 %v10194_v4 }
 0x714   :  { %6313 = vmatmul.mubr.bf16.vlgmr.msra.gmra.mrb[68].mxu1 %v11152_v21 }
 0x715   :  { %8986 = vmatprep.mubr.msk.bf16.mxu1 %vm10195_vm1, %v10194_v4  ;;  %8975 = vmatpush3.bf16.msra.mxu1 %v9781_v47  ;;  %v9805_v47 = vld [vmem:[#allocation5 + $0xe0] sm:$0xff]  }
 0x716   :  { %8976 = vmatprep.subr.bf16.mxu1 %v10194_v4 }
 0x719   :  { %8977 = vmatpush3.bf16.msra.mxu1 %v9782_v23  ;;  %v9806_v23 = vld [vmem:[#allocation5 + $0xe8] sm:$0xff]  }
 0x71a   :  { %8978 = vmatprep.subr.bf16.mxu1 %v10194_v4 }
 0x71d   :  { %8979 = vmatpush3.bf16.msra.mxu1 %v9783_v25  ;;  %v9807_v25 = vld [vmem:[#allocation5 + $0xf0] sm:$0xff]  }
 0x71e   :  { %8980 = vmatprep.subr.bf16.mxu1 %v10194_v4 }
 0x721   :  { %8981 = vmatpush3.bf16.msra.mxu1 %v9784_v27  ;;  %v9808_v27 = vld [vmem:[#allocation5 + $0xf8] ss:$0 sps:$4 sm:$0xff]  }
 0x722   :  { %8982 = vmatprep.subr.bf16.mxu1 %v10194_v4 }
 0x725   :  { %8983 = vmatpush3.bf16.msra.mxu1 %v9785_v30  ;;  %v6927_v30 = vsel %vm3023_vm15, %v9808_v27, 0  ;;  %v9828_v27 = vld [vmem:[#allocation5 + $0xb8] sm:$0xff]  }
 0x726   :  { %8984 = vmatprep.subr.bf16.mxu1 %v10194_v4 }
 0x729   :  { %8985 = vmatpush3.bf16.msra.mxu1 %v6524_v13  ;;  %v6837_v13 = vld [vmem:[#allocation2 + $0xa0] sm:$0xff] }
 0x72a   :  { %6686 = vmatprep.subr.bf16.mxu1 %v10193_v10 }
 0x7bb   :  { %v6046_v33 = vpop.f32.mrb[64].mxu1 }
 0x7bc   :  { %v6047_v36 = vadd.f32 %v6046_v33, %v10926_v38  ;;  %v6048_v28 = vpop.f32.mrb[65].mxu1  ;;  %v11219_v33 = vld [vmem:[#allocation2 + $0xc8] sm:$0xff] }
 0x7bd   :  { %v6049_v9 = vpop.f32.mrb[66].mxu1  ;;  %v9811_v28 = vld [vmem:[#allocation5 + $0x160] sm:$0xff]  }
 0x7be   :  { %v6050_v40 = vadd.f32 %v6049_v9, %v10928_v42  ;;  %v6051_v14 = vpop.f32.mrb[67].mxu1  ;;  %v6186_v41 = vadd.f32 %v10955_v17, %v6047_v36  ;;  %v9810_v36 = vld [vmem:[#allocation5 + $0x158] sm:$0xff]   ;;  %v9812_v9 = vld [vmem:[#allocation5 + $0x168] sm:$0xff]  }
 0x7bf   :  { %v9814_v14 = vld [vmem:[#allocation5 + $0x178] sm:$0xff]  }
 0x7c0   :  { %v6187_v35 = vadd.f32 %v10958_v19, %v6050_v40  ;;  %v9813_v40 = vld [vmem:[#allocation5 + $0x170] sm:$0xff]  }
 0x7e7   :  { %v6314_v37 = vpop.f32.mrb[68].mxu1 }
 0x7e8   :  { %v6321_v43 = vadd.f32 %v6314_v37, %v6186_v41  ;;  %v6316_v44 = vpop.f32.mrb[69].mxu1  ;;  %v9815_v41 = vld [vmem:[#allocation5 + $0x180] sm:$0xff]   ;;  %v9817_v37 = vld [vmem:[#allocation5 + $0x190] sm:$0xff]  }
 0x7e9   :  { %v6317_v48 = vpop.f32.mrb[70].mxu1  ;;  %v9819_v44 = vld [vmem:[#allocation5 + $0x1a0] ss:$0 sps:$4 sm:$0xff]  }
 0x7ea   :  { %v6456_v3 = vadd.f32 %v10992_v53, %v6321_v43  ;;  %v6322_v7 = vadd.f32 %v6317_v48, %v6187_v35  ;;  %v6319_v50 = vpop.f32.mrb[71].mxu1  ;;  %v9816_v35 = vld [vmem:[#allocation5 + $0x188] sm:$0xff]   ;;  %v9818_v43 = vld [vmem:[#allocation5 + $0x198] sm:$0xff]   ;;  %v7197_v48 = vsel %vm3023_vm15, %v9819_v44, 0 }
 0x7eb   :  { %v9821_v50 = vld [vmem:[%s11339_s5 + $0xe4] sm:$0xff]   ;;  %v9842_v44 = vld [vmem:[%s11339_s5 + $0x130] ss:$0 sps:$4 sm:$0x33]  }
 0x7ec   :  { %v6458_v8 = vadd.f32 %v10918_v20, %v6456_v3  ;;  %v6457_v38 = vadd.f32 %v10995_v55, %v6322_v7  ;;  %v9789_v55 = vld [vmem:[#allocation5 + $0x64] sm:$0xff]   ;;  %v9820_v7 = vld [vmem:[%s11339_s5 + $0xdc] sm:$0xff]  }
 0x7ed   :  { %v11235_v3 = vld [vmem:[#allocation2 + $0xc0] sm:$0xff] }
 0x7ee   :  { %v8693_v52 = vmul.f32 -1.442695, %v6458_v8  ;;  %v6459_v42 = vadd.f32 %v10918_v20, %v6457_v38  ;;  %v9788_v20 = vld [vmem:[#allocation5 + $0x5c] sm:$0xff]   ;;  %v9822_v8 = vld [vmem:[%s11339_s5 + $0xec] sm:$0xff]   ;;  %v9823_v38 = vld [vmem:[%s11339_s5 + $0xf4] sm:$0xff]  }
 0x7f0   :  { %10099 = vpow2.f32 %v8693_v52  ;;  %v8694_v31 = vmul.f32 -1.442695, %v6459_v42  ;;  %v9824_v52 = vld [vmem:[%s11339_s5 + $0xfc] sm:$0xff]   ;;  %v9825_v42 = vld [vmem:[%s11339_s5 + $0x104] ss:$0 sps:$4 sm:$0x33]  }
 0x7f2   :  { %10101 = vpow2.f32 %v8694_v31  ;;  %v7308_v31 = vsel %vm3385_vm0, %v9825_v42, 0 }
 0x7fa   :  { %v10100_v17 = vpop.eup %10099 }
 0x7fb   :  { %v6466_v19 = vadd.f32 1.0, %v10100_v17 }
 0x7fc   :  { %v10102_v57 = vpop.eup %10101 }
 0x7fd   :  { %v6467_v1 = vadd.f32 1.0, %v10102_v57  ;;  %10103 = vrcp.f32 %v6466_v19 }
 0x7ff   :  { %10105 = vrcp.f32 %v6467_v1 }
 0x807   :  { %v10104_v59 = vpop.eup %10103 }
 0x809   :  { %v10106_v53 = vpop.eup %10105 }
 0x80a   :  { %v6472_v63 = vpack.c.bf16 %v10106_v53, %v10104_v59 }
 0x80c   :  { %8987 = vmatmul.mubr.msk.bf16.vlgmr.msra.gmra.mrb[32].mxu1 %vm3381_vm2, %v6472_v63 }
 0x80d   :  { %6687 = vmatpush1.bf16.msra.mxu1 %v9787_v51  ;;  %8724 = vmatprep.mubr.msk.bf16.mxu1 %vm261_vm12, %v11136_v12  ;;  %v9794_v12 = vld [vmem:[#allocation5 + $0x8c] sm:$0xff]  }
 0x80e   :  { %6688 = vmatprep.subr.bf16.mxu1 %v10193_v10 }
 0x811   :  { %6689 = vmatpush1.bf16.msra.mxu1 %v9788_v20 }
 0x812   :  { %6690 = vmatprep.subr.bf16.mxu1 %v10193_v10 }
 0x815   :  { %6691 = vmatpush1.bf16.msra.mxu1 %v9789_v55 }
 0x816   :  { %6692 = vmatprep.subr.bf16.mxu1 %v10193_v10 }
 0x819   :  { %6693 = vmatpush1.bf16.msra.mxu1 %v9790_v0 }
 0x81a   :  { %6694 = vmatprep.subr.bf16.mxu1 %v10193_v10 }
 0x81d   :  { %6695 = vmatpush1.bf16.msra.mxu1 %v9791_v2 }
 0x81e   :  { %6696 = vmatprep.subr.bf16.mxu1 %v10193_v10 }
 0x821   :  { %6697 = vmatpush1.bf16.msra.mxu1 %v9792_v11 }
 0x822   :  { %6698 = vmatprep.subr.bf16.mxu1 %v10193_v10 }
 0x825   :  { %6699 = vmatpush1.bf16.msra.mxu1 %v9793_v24 }
 0x826   :  { %6700 = vmatprep.subr.bf16.mxu1 %v10193_v10 }
 0x829   :  { %6701 = vmatpush1.bf16.msra.mxu1 %v9794_v12 }
 0x82a   :  { %6702 = vmatprep.subr.bf16.mxu1 %v10193_v10 }
 0x82d   :  { %6703 = vmatpush1.bf16.msra.mxu1 %v9795_v58 }
 0x82e   :  { %6704 = vmatprep.subr.bf16.mxu1 %v10193_v10 }
 0x831   :  { %6705 = vmatpush1.bf16.msra.mxu1 %v9796_v29 }
 0x832   :  { %6706 = vmatprep.subr.bf16.mxu1 %v10193_v10 }
 0x835   :  { %6707 = vmatpush1.bf16.msra.mxu1 %v6684_v46 }
 0x836   :  { %6929 = vmatprep.subr.bf16.mxu1 %v10193_v10 }
 0x838   :  { %6719 = vmatmul.mubr.bf16.vlgmr.msra.gmra.mrb[72].mxu1 %v11152_v21  ;;  %v9804_v21 = vld [vmem:[#allocation5 + $0xd8] sm:$0xff]  }
 0x839   :  { %6930 = vmatpush1.bf16.msra.mxu1 %v9798_v5  ;;  %8748 = vmatprep.mubr.msk.bf16.mxu1 %vm261_vm12, %v6838_v49 }
 0x83a   :  { %6931 = vmatprep.subr.bf16.mxu1 %v10193_v10 }
 0x83d   :  { %6932 = vmatpush1.bf16.msra.mxu1 %v9799_v45 }
 0x83e   :  { %6933 = vmatprep.subr.bf16.mxu1 %v10193_v10 }
 0x841   :  { %6934 = vmatpush1.bf16.msra.mxu1 %v9800_v18 }
 0x842   :  { %6935 = vmatprep.subr.bf16.mxu1 %v10193_v10 }
 0x845   :  { %6936 = vmatpush1.bf16.msra.mxu1 %v9801_v34 }
 0x846   :  { %6937 = vmatprep.subr.bf16.mxu1 %v10193_v10 }
 0x849   :  { %6938 = vmatpush1.bf16.msra.mxu1 %v9802_v22 }
 0x84a   :  { %6939 = vmatprep.subr.bf16.mxu1 %v10193_v10 }
 0x84d   :  { %6940 = vmatpush1.bf16.msra.mxu1 %v9803_v6 }
 0x84e   :  { %6941 = vmatprep.subr.bf16.mxu1 %v10193_v10 }
 0x851   :  { %6942 = vmatpush1.bf16.msra.mxu1 %v9804_v21 }
 0x852   :  { %6943 = vmatprep.subr.bf16.mxu1 %v10193_v10 }
 0x855   :  { %6944 = vmatpush1.bf16.msra.mxu1 %v9805_v47  ;;  %v9826_v47 = vld [vmem:[#allocation5 + $0xa8] sm:$0xff]  }
 0x856   :  { %6945 = vmatprep.subr.bf16.mxu1 %v10193_v10 }
 0x859   :  { %6946 = vmatpush1.bf16.msra.mxu1 %v9806_v23 }
 0x85a   :  { %6947 = vmatprep.subr.bf16.mxu1 %v10193_v10 }
 0x85d   :  { %6948 = vmatpush1.bf16.msra.mxu1 %v9807_v25  ;;  %v9827_v25 = vld [vmem:[#allocation5 + $0xb0] sm:$0xff]  }
 0x85e   :  { %6949 = vmatprep.subr.bf16.mxu1 %v10193_v10 }
 0x861   :  { %6950 = vmatpush1.bf16.msra.mxu1 %v6927_v30  ;;  %v9829_v30 = vld [vmem:[#allocation5 + $0xc0] sm:$0xff]  }
 0x862   :  { %7199 = vmatprep.subr.bf16.mxu1 %v10193_v10 }
 0x864   :  { %6962 = vmatmul.mubr.bf16.vlgmr.msra.gmra.mrb[76].mxu1 %v6837_v13  ;;  %v9831_v13 = vld [vmem:[#allocation5 + $0xd0] sm:$0xff]  }
 0x865   :  { %7200 = vmatpush1.bf16.msra.mxu1 %v9809_v32  ;;  %8772 = vmatprep.mubr.msk.bf16.mxu1 %vm261_vm12, %v11219_v33  ;;  %v9830_v32 = vld [vmem:[#allocation5 + $0xc8] sm:$0xff]  }
 0x866   :  { %7201 = vmatprep.subr.bf16.mxu1 %v10193_v10 }
 0x869   :  { %7202 = vmatpush1.bf16.msra.mxu1 %v9810_v36  ;;  %v9833_v36 = vld [vmem:[#allocation5 + $0xe0] sm:$0xff]  }
 0x86a   :  { %7203 = vmatprep.subr.bf16.mxu1 %v10193_v10 }
 0x86d   :  { %7204 = vmatpush1.bf16.msra.mxu1 %v9811_v28  ;;  %v9834_v28 = vld [vmem:[#allocation5 + $0xe8] sm:$0xff]  }
 0x86e   :  { %7205 = vmatprep.subr.bf16.mxu1 %v10193_v10 }
 0x871   :  { %7206 = vmatpush1.bf16.msra.mxu1 %v9812_v9  ;;  %v9835_v9 = vld [vmem:[#allocation5 + $0xf0] sm:$0xff]  }
 0x872   :  { %7207 = vmatprep.subr.bf16.mxu1 %v10193_v10 }
 0x875   :  { %7208 = vmatpush1.bf16.msra.mxu1 %v9813_v40  ;;  %v9836_v40 = vld [vmem:[#allocation5 + $0xf8] ss:$0 sps:$4 sm:$0xff]  }
 0x876   :  { %7209 = vmatprep.subr.bf16.mxu1 %v10193_v10 }
 0x879   :  { %7210 = vmatpush1.bf16.msra.mxu1 %v9814_v14  ;;  %v7711_v14 = vsel %vm3023_vm15, %v9836_v40, 0 }
 0x87a   :  { %7211 = vmatprep.subr.bf16.mxu1 %v10193_v10 }
 0x87d   :  { %7212 = vmatpush1.bf16.msra.mxu1 %v9815_v41  ;;  %v9837_v41 = vld [vmem:[%s11339_s5 + $0x108] sm:$0xff]  }
 0x87e   :  { %7213 = vmatprep.subr.bf16.mxu1 %v10193_v10 }
 0x881   :  { %7214 = vmatpush1.bf16.msra.mxu1 %v9816_v35  ;;  %v9839_v35 = vld [vmem:[%s11339_s5 + $0x118] sm:$0xff]  }
 0x882   :  { %7215 = vmatprep.subr.bf16.mxu1 %v10193_v10 }
 0x885   :  { %7216 = vmatpush1.bf16.msra.mxu1 %v9817_v37  ;;  %v9840_v37 = vld [vmem:[%s11339_s5 + $0x120] sm:$0xff]  }
 0x886   :  { %7217 = vmatprep.subr.bf16.mxu1 %v10193_v10 }
 0x889   :  { %7218 = vmatpush1.bf16.msra.mxu1 %v9818_v43  ;;  %v9841_v43 = vld [vmem:[%s11339_s5 + $0x128] sm:$0xff]  }
 0x88a   :  { %7219 = vmatprep.subr.bf16.mxu1 %v10193_v10 }
 0x88d   :  { %7220 = vmatpush1.bf16.msra.mxu1 %v7197_v48  ;;  %v7957_v48 = vsel %vm3385_vm0, %v9842_v44, 0 }
 0x88e   :  { %8990 = vmatprep.subr.bf16.mxu1 %v10194_v4 }
 0x890   :  { %7232 = vmatmul.mubr.bf16.vlgmr.msra.gmra.mrb[80].mxu1 %v11235_v3 }
 0x891   :  { %9002 = vmatprep.mubr.msk.bf16.mxu1 %vm10195_vm1, %v10194_v4  ;;  %8991 = vmatpush3.bf16.msra.mxu1 %v9820_v7 }
 0x892   :  { %8992 = vmatprep.subr.bf16.mxu1 %v10194_v4 }
 0x895   :  { %8993 = vmatpush3.bf16.msra.mxu1 %v9821_v50 }
 0x896   :  { %8994 = vmatprep.subr.bf16.mxu1 %v10194_v4 }
 0x899   :  { %8995 = vmatpush3.bf16.msra.mxu1 %v9822_v8 }
 0x89a   :  { %8996 = vmatprep.subr.bf16.mxu1 %v10194_v4 }
 0x89d   :  { %8997 = vmatpush3.bf16.msra.mxu1 %v9823_v38 }
 0x89e   :  { %8998 = vmatprep.subr.bf16.mxu1 %v10194_v4 }
 0x8a1   :  { %8999 = vmatpush3.bf16.msra.mxu1 %v9824_v52 }
 0x8a2   :  { %9000 = vmatprep.subr.bf16.mxu1 %v10194_v4 }
 0x8a5   :  { %9001 = vmatpush3.bf16.msra.mxu1 %v7308_v31 }
 0x8a6   :  { %7713 = vmatprep.subr.bf16.mxu1 %v10193_v10 }
 0x90b   :  { %v6720_v17 = vpop.f32.mrb[72].mxu1 }
 0x90c   :  { %v6831_v19 = vadd.f32 %v11009_v26, %v6720_v17  ;;  %v6722_v57 = vpop.f32.mrb[73].mxu1  ;;  %v11272_v26 = vld [vmem:[%s11338_s4] ss:$0 sm:$0xff] }
 0x90d   :  { %v6723_v1 = vpop.f32.mrb[74].mxu1 }
 0x90e   :  { %v6834_v59 = vadd.f32 %v11011_v15, %v6723_v1  ;;  %v6725_v53 = vpop.f32.mrb[75].mxu1 }
 0x937   :  { %v6963_v51 = vpop.f32.mrb[76].mxu1 }
 0x938   :  { %v6970_v63 = vadd.f32 %v6963_v51, %v6831_v19  ;;  %v6965_v20 = vpop.f32.mrb[77].mxu1 }
 0x939   :  { %v6966_v55 = vpop.f32.mrb[78].mxu1 }
 0x93a   :  { %v6971_v0 = vadd.f32 %v6966_v55, %v6834_v59  ;;  %v6968_v2 = vpop.f32.mrb[79].mxu1  ;;  %v7105_v11 = vadd.f32 %v11013_v16, %v6970_v63 }
 0x93c   :  { %v7106_v24 = vadd.f32 %v11015_v54, %v6971_v0 }
 0x963   :  { %v7233_v12 = vpop.f32.mrb[80].mxu1 }
 0x964   :  { %v7240_v58 = vadd.f32 %v7233_v12, %v7105_v11  ;;  %v7235_v29 = vpop.f32.mrb[81].mxu1 }
 0x965   :  { %v7236_v56 = vpop.f32.mrb[82].mxu1 }
 0x966   :  { %v7242_v15 = vadd.f32 %v11272_v26, %v7240_v58  ;;  %v7241_v46 = vadd.f32 %v7236_v56, %v7106_v24  ;;  %v7238_v5 = vpop.f32.mrb[83].mxu1 }
 0x968   :  { %v8773_v49 = vmul.f32 -1.442695, %v7242_v15  ;;  %v7243_v45 = vadd.f32 %v11272_v26, %v7241_v46 }
 0x96a   :  { %10107 = vpow2.f32 %v8773_v49  ;;  %v8774_v16 = vmul.f32 -1.442695, %v7243_v45 }
 0x96c   :  { %10109 = vpow2.f32 %v8774_v16 }
 0x974   :  { %v10108_v54 = vpop.eup %10107 }
 0x975   :  { %v7250_v18 = vadd.f32 1.0, %v10108_v54 }
 0x976   :  { %v10110_v34 = vpop.eup %10109 }
 0x977   :  { %v7251_v22 = vadd.f32 1.0, %v10110_v34  ;;  %10111 = vrcp.f32 %v7250_v18 }
 0x979   :  { %10113 = vrcp.f32 %v7251_v22 }
 0x981   :  { %v10112_v6 = vpop.eup %10111 }
 0x983   :  { %v10114_v21 = vpop.eup %10113 }
 0x984   :  { %v7256_v23 = vpack.c.bf16 %v10114_v21, %v10112_v6 }
 0x986   :  { %9003 = vmatmul.mubr.msk.bf16.vlgmr.msra.gmra.mrb[32].mxu1 %vm3381_vm2, %v7256_v23 }
 0x987   :  { %7714 = vmatpush1.bf16.msra.mxu1 %v9826_v47  ;;  %8828 = vmatprep.mubr.msk.bf16.mxu1 %vm261_vm12, %v11219_v33  ;;  %v9832_v33 = vld [vmem:[#allocation5 + $0xd8] sm:$0xff]  }
 0x988   :  { %7715 = vmatprep.subr.bf16.mxu1 %v10193_v10 }
 0x98b   :  { %7716 = vmatpush1.bf16.msra.mxu1 %v9827_v25 }
 0x98c   :  { %7717 = vmatprep.subr.bf16.mxu1 %v10193_v10 }
 0x98f   :  { %7718 = vmatpush1.bf16.msra.mxu1 %v9828_v27 }
 0x990   :  { %7719 = vmatprep.subr.bf16.mxu1 %v10193_v10 }
 0x993   :  { %7720 = vmatpush1.bf16.msra.mxu1 %v9829_v30 }
 0x994   :  { %7721 = vmatprep.subr.bf16.mxu1 %v10193_v10 }
 0x997   :  { %7722 = vmatpush1.bf16.msra.mxu1 %v9830_v32 }
 0x998   :  { %7723 = vmatprep.subr.bf16.mxu1 %v10193_v10 }
 0x99b   :  { %7724 = vmatpush1.bf16.msra.mxu1 %v9831_v13 }
 0x99c   :  { %7725 = vmatprep.subr.bf16.mxu1 %v10193_v10 }
 0x99f   :  { %7726 = vmatpush1.bf16.msra.mxu1 %v9832_v33 }
 0x9a0   :  { %7727 = vmatprep.subr.bf16.mxu1 %v10193_v10 }
 0x9a3   :  { %7728 = vmatpush1.bf16.msra.mxu1 %v9833_v36 }
 0x9a4   :  { %7729 = vmatprep.subr.bf16.mxu1 %v10193_v10 }
 0x9a7   :  { %7730 = vmatpush1.bf16.msra.mxu1 %v9834_v28 }
 0x9a8   :  { %7731 = vmatprep.subr.bf16.mxu1 %v10193_v10 }
 0x9ab   :  { %7732 = vmatpush1.bf16.msra.mxu1 %v9835_v9 }
 0x9ac   :  { %7733 = vmatprep.subr.bf16.mxu1 %v10193_v10  ;;  %v9838_v10 = vld [vmem:[%s11339_s5 + $0x110] sm:$0xff]  }
 0x9af   :  { %7734 = vmatpush1.bf16.msra.mxu1 %v7711_v14 }
 0x9b0   :  { %9006 = vmatprep.subr.bf16.mxu1 %v10194_v4 }
 0x9b2   :  { %7746 = vmatmul.mubr.bf16.vlgmr.msra.gmra.mrb[84].mxu1 %v11235_v3 }
 0x9b3   :  { %9018 = vmatprep.mubr.msk.bf16.mxu1 %vm10195_vm1, %v10194_v4  ;;  %9007 = vmatpush3.bf16.msra.mxu1 %v9837_v41 }
 0x9b4   :  { %9008 = vmatprep.subr.bf16.mxu1 %v10194_v4 }
 0x9b7   :  { %9009 = vmatpush3.bf16.msra.mxu1 %v9838_v10 }
 0x9b8   :  { %9010 = vmatprep.subr.bf16.mxu1 %v10194_v4 }
 0x9bb   :  { %9011 = vmatpush3.bf16.msra.mxu1 %v9839_v35 }
 0x9bc   :  { %9012 = vmatprep.subr.bf16.mxu1 %v10194_v4 }
 0x9bf   :  { %9013 = vmatpush3.bf16.msra.mxu1 %v9840_v37 }
 0x9c0   :  { %9014 = vmatprep.subr.bf16.mxu1 %v10194_v4 }
 0x9c3   :  { %9015 = vmatpush3.bf16.msra.mxu1 %v9841_v43 }
 0x9c4   :  { %9016 = vmatprep.subr.bf16.mxu1 %v10194_v4 }
 0x9c7   :  { %9017 = vmatpush3.bf16.msra.mxu1 %v7957_v48 }
 0xa85   :  { %v7747_v3 = vpop.f32.mrb[84].mxu1 }
 0xa86   :  { %v7754_v7 = vadd.f32 %v7747_v3, %v11042_v60  ;;  %v7749_v50 = vpop.f32.mrb[85].mxu1 }
 0xa87   :  { %v7750_v8 = vpop.f32.mrb[86].mxu1 }
 0xa88   :  { %v7889_v38 = vadd.f32 %v11050_v61, %v7754_v7  ;;  %v7755_v52 = vadd.f32 %v7750_v8, %v11044_v39  ;;  %v7752_v42 = vpop.f32.mrb[87].mxu1 }
 0xa8a   :  { %v7891_v31 = vadd.f32 %v11272_v26, %v7889_v38  ;;  %v7890_v17 = vadd.f32 %v11052_v62, %v7755_v52  ;;  %v8346_v62 = vld [vmem:[%s11340_s6] ss:$0 sm:$0xff] }
 0xa8c   :  { %v8841_v19 = vmul.f32 -1.442695, %v7891_v31  ;;  %v7892_v4 = vadd.f32 %v11272_v26, %v7890_v17 }
 0xa8e   :  { %10115 = vpow2.f32 %v8841_v19  ;;  %v8842_v57 = vmul.f32 -1.442695, %v7892_v4 }
 0xa90   :  { %10117 = vpow2.f32 %v8842_v57 }
 0xa98   :  { %v10116_v1 = vpop.eup %10115 }
 0xa99   :  { %v7899_v59 = vadd.f32 1.0, %v10116_v1 }
 0xa9a   :  { %v10118_v60 = vpop.eup %10117 }
 0xa9b   :  { %v7900_v53 = vadd.f32 1.0, %v10118_v60  ;;  %10119 = vrcp.f32 %v7899_v59 }
 0xa9d   :  { %10121 = vrcp.f32 %v7900_v53 }
 0xaa5   :  { %v10120_v61 = vpop.eup %10119 }
 0xaa7   :  { %v10122_v51 = vpop.eup %10121 }
 0xaa8   :  { %v7905_v39 = vpack.c.bf16 %v10122_v51, %v10120_v61 }
 0xaaa   :  { %9019 = vmatmul.mubr.msk.bf16.vlgmr.msra.gmra.mrb[32].mxu1 %vm3381_vm2, %v7905_v39 }
 0xb7d   :  { %v7993_v63 = vpop.f32.mrb[32].mxu1 }
 0xb7e   :  { %v9024_v20 = vadd.f32 %v8346_v62, %v7993_v63  ;;  %v9020_v55 = vpop.f32.mrb[33].mxu1 }
 0xb7f   :  { %v7996_v0 = vpop.f32.mrb[34].mxu1 }
 0xb80   :  { %8002 = vst [vmem:[%s11341_s7] sm:$0xff] %v9024_v20  ;;  %v9027_v2 = vadd.f32 %v8346_v62, %v7996_v0  ;;  %v9021_v11 = vpop.f32.mrb[35].mxu1 }
 0xb82   :  { %8003 = vst [vmem:[%s11341_s7 + $0x8] sm:$0xff] %v9027_v2 }
 0xb83   :  { %8008 = vsyncpa [#allocation4], 1 }
 0xb84   :  { %8009 = vsyncpa [#allocation6], 1 }

</bundles_post_ra>
